<compile_context>
chip_gen: v7x
topology: tpu7x:2x2x1
jax: 0.10.0
libtpu: 0.0.40
codegen_flags: <defaults>
</compile_context>

<pallas_src>
import jax
import jax.numpy as jnp
from jax.experimental import pallas as pl
from jax.experimental.pallas import tpu as pltpu

# ----------------------------- config ---------------------------------------
SIGMA_DATA = 0.5
SIGMA_OFFSET_NOISE = 0.3
N_COND = 2                       # cfg.conditioned_unet.num_conditioning_steps
NOISE_PREVIOUS_OBS = True
SIGMA_LOC, SIGMA_SCALE = -0.4, 1.2
SIGMA_MIN, SIGMA_MAX = 2e-3, 20.0
HIDDEN = 32
EMB = 32
POS_WEIGHT = 10.0                # nn.BCEWithLogitsLoss(pos_weight=10.0)
DICE_SMOOTH = 1.0

# fixed 3x3 tap ordering shared by the weight stacking, masks and the kernel
OFFS = [(-1, -1), (-1, 0), (-1, 1),
        (0, -1), (0, 0), (0, 1),
        (1, -1), (1, 0), (1, 1)]


# --------------------------- fused kernel ------------------------------------
def fused_denoiser_call(obs_flat, add_obs, add_prev, pm, cpack, mask9,
                        w1s, b1, w2s, b2, w3s, b3, img_h, img_w, n_cond):
    """One pallas_call for the whole sequence loop.

    grid = (B, L): B parallel (megacore), L (time) arbitrary/serial.
    Per (b, t): apply_noise + rescale -> 3x tap-stacked 3x3 conv (FiLM+SiLU
    fused) -> MSE / BCE+dice partial sums -> wrap/quantize write-back kept in
    a VMEM scratch frame buffer that feeds the next steps' conditioning.
    Output: (B, L, 8, 128) packed loss partials (lane-dense).
    """
    B, T, C, S = obs_flat.shape
    L = T - n_cond
    CIN = n_cond * C + C
    HID = w1s.shape[0]
    CO = w3s.shape[0]

    def kernel(obs_ref, addo_ref, addp_ref, pm_ref, cpk_ref, m9_ref,
               w1_ref, b1_ref, w2_ref, b2_ref, w3_ref, b3_ref,
               loss_ref, den_ref, x0_ref, xs_ref):
        t = pl.program_id(1)

        # -- per-sequence denoised-frame buffer: seed the first n_cond frames --
        @pl.when(t == 0)
        def _():
            den_ref[0:n_cond] = obs_ref[0:n_cond]

        cv = cpk_ref[...]                       # (HID, 8) packed conditioning
        scale = cv[:, 0:1]                      # FiLM scale  (HID, 1)
        shift = cv[:, 1:2]                      # FiLM shift  (HID, 1)
        c_in = cv[0:1, 2:3]                     # (1, 1) scalars (broadcast)
        c_skip = cv[0:1, 3:4]
        c_out = cv[0:1, 4:5]
        inv_c_out = cv[0:1, 5:6]
        valid = cv[0:1, 6:7]

        m9 = m9_ref[...]                        # (9, S) hoisted boundary masks

        # ------------- prep: apply_noise + rescale, staged into x0 ----------
        addp = addp_ref[...]                    # (n*C, S) precomputed additive
        for k in range(n_cond):                 # prev frames: orig or denoised
            f = den_ref[t + k]                  # (C, S)
            x0_ref[k * C:(k + 1) * C, :] = (
                (f + addp[k * C:(k + 1) * C, :]) * (1.0 / SIGMA_DATA))
        obs_cur = obs_ref[n_cond + t]           # (C, S) original target frame
        noisy = obs_cur + addo_ref[...]         # apply_noise on current obs
        x0_ref[n_cond * C:, :] = noisy * c_in
        x0 = x0_ref[...]                        # (CIN, S) UNet input

        # -------- conv helper: tap-stacked single MXU contraction -----------
        def conv(h, cin, w_ref, b_ref):
            for ti, (dh, dw) in enumerate(OFFS):
                kk = dh * img_w + dw
                s = h if kk == 0 else pltpu.roll(h, shift=(-kk) % S, axis=1)
                if not (dh == 0 and dw == 0):
                    s = s * m9[ti:ti + 1, :]
                xs_ref[ti * cin:(ti + 1) * cin, :] = s.astype(jnp.bfloat16)
            xs = xs_ref[0:9 * cin, :]
            return jnp.dot(w_ref[...], xs,
                           preferred_element_type=jnp.float32) + b_ref[...]

        h1 = conv(x0, CIN, w1_ref, b1_ref)      # conv1
        h1 = h1 * (1.0 + scale) + shift         # FiLM (fused epilogue)
        h1 = h1 * jax.nn.sigmoid(h1)            # SiLU
        h2 = conv(h1, HID, w2_ref, b2_ref)      # conv2
        h2 = h2 * jax.nn.sigmoid(h2)
        out = conv(h2, HID, w3_ref, b3_ref)     # fused out-head + seg-head

        model = out[0:C, :]                     # (C, S)
        seg = out[C:C + 1, :]                   # (1, S)

        # ------------------------------ losses ------------------------------
        target = (obs_cur - c_skip * noisy) * inv_c_out
        d = model - target
        mse = jnp.sum(d * d)

        y = pm_ref[...]                         # (1, S) path mask
        sp = lambda z: jnp.maximum(z, 0.0) + jnp.log(1.0 + jnp.exp(-jnp.abs(z)))
        bce = -(POS_WEIGHT * y * (-sp(-seg)) + (1.0 - y) * (-sp(seg)))
        p = jax.nn.sigmoid(seg)
        bce_s = jnp.sum(bce)
        inter = jnp.sum(p * y)
        psum = jnp.sum(p)
        tsum = jnp.sum(y)

        # --------------- wrap_model_output / in-VMEM write-back -------------
        den = jnp.clip(c_skip * noisy + c_out * model, -1.0, 1.0)
        q = jnp.floor((den + 1.0) * (255.0 / 2.0)) * (2.0 / 255.0) - 1.0
        den_ref[n_cond + t] = jnp.where(valid > 0.5, q, obs_cur)

        # --------------- packed lane-dense loss partials --------------------
        lane = jax.lax.broadcasted_iota(jnp.int32, (8, 128), 1)
        packed = jnp.where(lane == 0, mse, 0.0)
        packed = jnp.where(lane == 1, bce_s, packed)
        packed = jnp.where(lane == 2, inter, packed)
        packed = jnp.where(lane == 3, psum, packed)
        packed = jnp.where(lane == 4, tsum, packed)
        loss_ref[0, 0] = packed

    return pl.pallas_call(
        kernel,
        out_shape=jax.ShapeDtypeStruct((B, L, 8, 128), jnp.float32),
        grid=(B, L),
        in_specs=[
            pl.BlockSpec((None, T, C, S), lambda b, t: (b, 0, 0, 0)),       # obs
            pl.BlockSpec((None, None, C, S), lambda b, t: (b, t, 0, 0)),    # add_obs
            pl.BlockSpec((None, None, n_cond * C, S),
                         lambda b, t: (b, t, 0, 0)),                        # add_prev
            pl.BlockSpec((None, None, 1, S), lambda b, t: (b, t, 0, 0)),    # path mask
            pl.BlockSpec((None, None, HID, 8), lambda b, t: (b, t, 0, 0)),  # cond pack
            pl.BlockSpec((9, S), lambda b, t: (0, 0)),                      # tap masks
            pl.BlockSpec(w1s.shape, lambda b, t: (0, 0)),
            pl.BlockSpec(b1.shape, lambda b, t: (0, 0)),
            pl.BlockSpec(w2s.shape, lambda b, t: (0, 0)),
            pl.BlockSpec(b2.shape, lambda b, t: (0, 0)),
            pl.BlockSpec(w3s.shape, lambda b, t: (0, 0)),
            pl.BlockSpec(b3.shape, lambda b, t: (0, 0)),
        ],
        out_specs=pl.BlockSpec((1, 1, 8, 128), lambda b, t: (b, t, 0, 0)),
        scratch_shapes=[
            pltpu.VMEM((T, C, S), jnp.float32),       # denoised frame buffer
            pltpu.VMEM((CIN, S), jnp.float32),        # staged conv1 input
            pltpu.VMEM((9 * HID, S), jnp.bfloat16),   # tap stack (reused)
        ],
        compiler_params=pltpu.CompilerParams(
            dimension_semantics=("parallel", "arbitrary")),
    )(obs_flat, add_obs, add_prev, pm, cpack, mask9, w1s, b1, w2s, b2, w3s, b3)


# ------------------------- params / conditioners -----------------------------
def init_params(key, in_ch, out_ch):
    ks = jax.random.split(key, 6)
    w = lambda k, shape: 0.05 * jax.random.normal(k, shape, jnp.float32)
    z = lambda *shape: jnp.zeros(shape, jnp.float32)
    head_cout = ((out_ch + 1 + 7) // 8) * 8           # out(4) + seg(1) padded to 8
    head_w = jnp.concatenate(
        [w(ks[4], (9, out_ch, HIDDEN)),               # model-output head
         w(ks[5], (9, 1, HIDDEN)),                    # seg head
         jnp.zeros((9, head_cout - out_ch - 1, HIDDEN), jnp.float32)], axis=1)
    return dict(
        emb_w1=w(ks[0], (2, EMB)), emb_b1=z(EMB),
        emb_w2=w(ks[1], (EMB, 2 * HIDDEN)), emb_b2=z(2 * HIDDEN),
        conv1_w=w(ks[2], (9, HIDDEN, in_ch)), conv1_b=z(HIDDEN),
        conv2_w=w(ks[3], (9, HIDDEN, HIDDEN)), conv2_b=z(HIDDEN),
        head_w=head_w, head_b=z(head_cout),
    )


def sample_sigma(key, shape):
    s = jax.random.normal(key, shape, jnp.float32) * SIGMA_SCALE + SIGMA_LOC
    return jnp.clip(jnp.exp(s), SIGMA_MIN, SIGMA_MAX)


# ----------------------------- Denoiser --------------------------------------
def denoiser_forward(params, obs_batch, mask, path_mask, key):
    B, T, C, H, W = obs_batch.shape
    S = H * W
    n = N_COND
    L = T - n

    obs_flat = obs_batch.reshape(B, T, C, S).astype(jnp.float32)
    maskf = mask.astype(jnp.float32)
    validBL = maskf[:, n:]                                    # (B, L)

    # ------ batched per-step randomness (whole sequence at once) ------------
    key, k_sc, k_s, k_pn, k_po, k_on, k_oo = jax.random.split(key, 7)
    sigma = sample_sigma(k_s, (B, L))
    noise_obs = jax.random.normal(k_on, (B, L, C, S), jnp.float32)
    off_obs = SIGMA_OFFSET_NOISE * jax.random.normal(k_oo, (B, L, C, 1), jnp.float32)
    add_obs = off_obs + noise_obs * sigma[..., None, None]    # apply_noise additive

    if NOISE_PREVIOUS_OBS:
        sigma_cond = sample_sigma(k_sc, (B, L))
        noise_prev = jax.random.normal(k_pn, (B, L, n * C, S), jnp.float32)
        off_prev = SIGMA_OFFSET_NOISE * jax.random.normal(
            k_po, (B, L, n * C, 1), jnp.float32)
        add_prev = off_prev + noise_prev * sigma_cond[..., None, None]
        c_noise_cond = jnp.log(sigma_cond) / 4.0
    else:
        add_prev = jnp.zeros((B, L, n * C, S), jnp.float32)
        c_noise_cond = jnp.zeros((B, L), jnp.float32)

    # ------ conditioners (B, L) ----------------------------------------------
    sigma_adj = jnp.sqrt(sigma ** 2 + SIGMA_OFFSET_NOISE ** 2)
    c_in = 1.0 / jnp.sqrt(sigma_adj ** 2 + SIGMA_DATA ** 2)
    c_skip = SIGMA_DATA ** 2 / (sigma_adj ** 2 + SIGMA_DATA ** 2)
    c_out = sigma_adj * jnp.sqrt(c_skip)
    inv_c_out = 1.0 / c_out
    c_noise = jnp.log(sigma_adj) / 4.0

    # ------ FiLM embedding MLP for the whole sequence (tiny; plain jnp) ------
    emb_in = jnp.stack([c_noise, c_noise_cond], axis=-1)      # (B, L, 2)
    e = jax.nn.silu(emb_in @ params['emb_w1'] + params['emb_b1'])
    e = e @ params['emb_w2'] + params['emb_b2']               # (B, L, 2*HID)
    scale = e[..., :HIDDEN]
    shift = e[..., HIDDEN:]

    # ------ packed per-step conditioning block: (B, L, HID, 8) --------------
    bcol = lambda v: jnp.broadcast_to(v[..., None], (B, L, HIDDEN))
    cpack = jnp.stack(
        [scale, shift, bcol(c_in), bcol(c_skip), bcol(c_out), bcol(inv_c_out),
         bcol(validBL), jnp.zeros((B, L, HIDDEN), jnp.float32)], axis=-1)

    # ------ static 3x3 tap boundary masks (9, S), hoisted out of the kernel --
    col = jnp.arange(S, dtype=jnp.int32)
    hh = col // W
    ww = col % W
    mask9 = jnp.stack(
        [((hh + dh >= 0) & (hh + dh < H) & (ww + dw >= 0) & (ww + dw < W)
          ).astype(jnp.float32) for dh, dw in OFFS], axis=0)

    # ------ tap-stacked conv weights (Cout, 9*Cin) in bf16 -------------------
    stack_w = lambda w: jnp.transpose(w, (1, 0, 2)).reshape(
        w.shape[1], -1).astype(jnp.bfloat16)
    w1s = stack_w(params['conv1_w'])
    w2s = stack_w(params['conv2_w'])
    w3s = stack_w(params['head_w'])
    b1 = params['conv1_b'].reshape(-1, 1)
    b2 = params['conv2_b'].reshape(-1, 1)
    b3 = params['head_b'].reshape(-1, 1)

    pm = (path_mask.reshape(B, T, 1, S)[:, n:].astype(jnp.float32)
          if path_mask is not None else jnp.zeros((B, L, 1, S), jnp.float32))

    partials = fused_denoiser_call(obs_flat, add_obs, add_prev, pm, cpack,
                                   mask9, w1s, b1, w2s, b2, w3s, b3, H, W, n)

    mse_b = partials[:, :, 0, 0]
    bce_b = partials[:, :, 0, 1]
    inter_b = partials[:, :, 0, 2]
    psum_b = partials[:, :, 0, 3]
    tsum_b = partials[:, :, 0, 4]

    loss = jnp.sum(validBL * mse_b)
    total_valid = jnp.sum(validBL)

    if path_mask is not None:
        dice_b = 1.0 - ((2.0 * inter_b + DICE_SMOOTH)
                        / (psum_b + tsum_b + DICE_SMOOTH))
        path_loss = jnp.sum(validBL * (bce_b + dice_b))
        total_path_px = total_valid * (H * W)
    else:
        path_loss = jnp.float32(0.0)
        total_path_px = jnp.float32(0.0)

    denom = total_valid * (C * H * W)
    loss_d = jnp.where(total_valid > 0, loss / jnp.maximum(denom, 1.0), loss)
    loss_p = jnp.where(total_path_px > 0,
                       path_loss / jnp.maximum(total_path_px, 1.0), path_loss)
    total = loss_d + loss_p
    logs = {'loss_denoising': loss_d, 'loss_path': loss_p, 'loss_total': total}
    return total, logs


# ------------------------------- main ----------------------------------------
if __name__ == "__main__":
    key = jax.random.PRNGKey(0)
    b, t, c, H, W = 2, 6, 4, 16, 16                 # batch.obs: (B,T,C,H,W)
    k_obs, k_pm, k_par, k_fwd = jax.random.split(key, 4)
    obs = jax.random.uniform(k_obs, (b, t, c, H, W), jnp.float32, -1.0, 1.0)
    mask = jnp.ones((b, t), dtype=bool)
    path_mask = (jax.random.uniform(k_pm, (b, t, H, W)) < 0.2).astype(jnp.float32)
    params = init_params(k_par, in_ch=c * (1 + N_COND), out_ch=c)

    fwd = jax.jit(denoiser_forward)
    total_loss, logs = fwd(params, obs, mask, path_mask, k_fwd)
    jax.block_until_ready(total_loss)
    logs = {k: float(v) for k, v in logs.items()}   # host logging outside jit
    print("KERNEL_OK")
</pallas_src>

<mosaic_0001>
module attributes {stable_mosaic.version = 11 : i64} {
  func.func @kernel(%arg0: i32, %arg1: i32, %arg2: memref<1x6x4x256xf32, #tpu.memory_space<vmem>>, %arg3: memref<1x1x4x256xf32, #tpu.memory_space<vmem>>, %arg4: memref<1x1x8x256xf32, #tpu.memory_space<vmem>>, %arg5: memref<1x1x1x256xf32, #tpu.memory_space<vmem>>, %arg6: memref<1x1x32x8xf32, #tpu.memory_space<vmem>>, %arg7: memref<9x256xf32, #tpu.memory_space<vmem>>, %arg8: memref<32x108xbf16, #tpu.memory_space<vmem>>, %arg9: memref<32x1xf32, #tpu.memory_space<vmem>>, %arg10: memref<32x288xbf16, #tpu.memory_space<vmem>>, %arg11: memref<32x1xf32, #tpu.memory_space<vmem>>, %arg12: memref<8x288xbf16, #tpu.memory_space<vmem>>, %arg13: memref<8x1xf32, #tpu.memory_space<vmem>>, %arg14: memref<1x1x8x128xf32, #tpu.memory_space<vmem>>, %arg15: memref<6x4x256xf32, #tpu.memory_space<vmem>>, %arg16: memref<12x256xf32, #tpu.memory_space<vmem>>, %arg17: memref<288x256xbf16, #tpu.memory_space<vmem>>) attributes {dimension_semantics = [#tpu.dimension_semantics<parallel>, #tpu.dimension_semantics<arbitrary>], iteration_bounds = array<i64: 2, 4>, scalar_prefetch = 0 : i64, scratch_operands = 3 : i64, tpu.core_type = #tpu.core_type<tc>, window_params = [{transform_indices = @transform_0, window_bounds = array<i64: 1, 6, 4, 256>}, {transform_indices = @transform_1, window_bounds = array<i64: 1, 1, 4, 256>}, {transform_indices = @transform_2, window_bounds = array<i64: 1, 1, 8, 256>}, {transform_indices = @transform_3, window_bounds = array<i64: 1, 1, 1, 256>}, {transform_indices = @transform_4, window_bounds = array<i64: 1, 1, 32, 8>}, {pipeline_mode = #tpu.pipeline_mode<synchronous>, transform_indices = @transform_5, window_bounds = array<i64: 9, 256>}, {pipeline_mode = #tpu.pipeline_mode<synchronous>, transform_indices = @transform_6, window_bounds = array<i64: 32, 108>}, {pipeline_mode = #tpu.pipeline_mode<synchronous>, transform_indices = @transform_7, window_bounds = array<i64: 32, 1>}, {pipeline_mode = #tpu.pipeline_mode<synchronous>, transform_indices = @transform_8, window_bounds = array<i64: 32, 288>}, {pipeline_mode = #tpu.pipeline_mode<synchronous>, transform_indices = @transform_9, window_bounds = array<i64: 32, 1>}, {pipeline_mode = #tpu.pipeline_mode<synchronous>, transform_indices = @transform_10, window_bounds = array<i64: 8, 288>}, {pipeline_mode = #tpu.pipeline_mode<synchronous>, transform_indices = @transform_11, window_bounds = array<i64: 8, 1>}, {transform_indices = @transform_12, window_bounds = array<i64: 1, 1, 8, 128>}]} {
    %c0_i32 = arith.constant 0 : i32
    %0 = arith.cmpi eq, %arg1, %c0_i32 : i32
    %1 = arith.extui %0 : i1 to i32
    %c0_i32_0 = arith.constant 0 : i32
    %2 = arith.cmpi ne, %1, %c0_i32_0 : i32
    scf.if %2 {
      %c0_149 = arith.constant 0 : index
      %c0_150 = arith.constant 0 : index
      %c0_151 = arith.constant 0 : index
      %c0_152 = arith.constant 0 : index
      %355 = vector.load %arg2[%c0_149, %c0_150, %c0_151, %c0_152] : memref<1x6x4x256xf32, #tpu.memory_space<vmem>>, vector<1x2x4x256xf32>
      %356 = vector.shape_cast %355 : vector<1x2x4x256xf32> to vector<2x4x256xf32>
      %c0_153 = arith.constant 0 : index
      %c0_154 = arith.constant 0 : index
      %c0_155 = arith.constant 0 : index
      %357 = vector.load %arg15[%c0_153, %c0_154, %c0_155] : memref<6x4x256xf32, #tpu.memory_space<vmem>>, vector<2x4x256xf32>
      tpu.vector_store %arg15[%c0_153, %c0_154, %c0_155], %356 {strides = array<i32>} : memref<6x4x256xf32, #tpu.memory_space<vmem>>, vector<2x4x256xf32>,
    } else {
    }
    %c0 = arith.constant 0 : index
    %c0_1 = arith.constant 0 : index
    %c0_2 = arith.constant 0 : index
    %c0_3 = arith.constant 0 : index
    %3 = vector.load %arg6[%c0, %c0_1, %c0_2, %c0_3] : memref<1x1x32x8xf32, #tpu.memory_space<vmem>>, vector<1x1x32x8xf32>
    %4 = vector.shape_cast %3 : vector<1x1x32x8xf32> to vector<32x8xf32>
    %5 = vector.extract_strided_slice %4 {offsets = [0, 0], sizes = [32, 1], strides = [1, 1]} : vector<32x8xf32> to vector<32x1xf32>
    %6 = vector.extract_strided_slice %4 {offsets = [0, 1], sizes = [32, 1], strides = [1, 1]} : vector<32x8xf32> to vector<32x1xf32>
    %7 = vector.extract_strided_slice %4 {offsets = [0, 2], sizes = [1, 1], strides = [1, 1]} : vector<32x8xf32> to vector<1x1xf32>
    %8 = vector.extract_strided_slice %4 {offsets = [0, 3], sizes = [1, 1], strides = [1, 1]} : vector<32x8xf32> to vector<1x1xf32>
    %9 = vector.extract_strided_slice %4 {offsets = [0, 4], sizes = [1, 1], strides = [1, 1]} : vector<32x8xf32> to vector<1x1xf32>
    %10 = vector.extract_strided_slice %4 {offsets = [0, 5], sizes = [1, 1], strides = [1, 1]} : vector<32x8xf32> to vector<1x1xf32>
    %11 = vector.extract_strided_slice %4 {offsets = [0, 6], sizes = [1, 1], strides = [1, 1]} : vector<32x8xf32> to vector<1x1xf32>
    %c0_4 = arith.constant 0 : index
    %c0_5 = arith.constant 0 : index
    %12 = vector.load %arg7[%c0_4, %c0_5] : memref<9x256xf32, #tpu.memory_space<vmem>>, vector<9x256xf32>
    %c0_6 = arith.constant 0 : index
    %c0_7 = arith.constant 0 : index
    %c0_8 = arith.constant 0 : index
    %c0_9 = arith.constant 0 : index
    %13 = vector.load %arg4[%c0_6, %c0_7, %c0_8, %c0_9] : memref<1x1x8x256xf32, #tpu.memory_space<vmem>>, vector<1x1x8x256xf32>
    %14 = vector.shape_cast %13 : vector<1x1x8x256xf32> to vector<8x256xf32>
    %c0_i32_10 = arith.constant 0 : i32
    %15 = arith.addi %arg1, %c0_i32_10 : i32
    %16 = arith.index_cast %15 : i32 to index
    %c0_11 = arith.constant 0 : index
    %c0_12 = arith.constant 0 : index
    %17 = vector.load %arg15[%16, %c0_11, %c0_12] : memref<6x4x256xf32, #tpu.memory_space<vmem>>, vector<1x4x256xf32>
    %18 = vector.shape_cast %17 : vector<1x4x256xf32> to vector<4x256xf32>
    %19 = vector.extract_strided_slice %14 {offsets = [0, 0], sizes = [4, 256], strides = [1, 1]} : vector<8x256xf32> to vector<4x256xf32>
    %20 = arith.addf %18, %19 : vector<4x256xf32>
    %cst = arith.constant 2.000000e+00 : f32
    %21 = vector.broadcast %cst : f32 to vector<4x256xf32>
    %22 = arith.mulf %20, %21 : vector<4x256xf32>
    %c0_13 = arith.constant 0 : index
    %c0_14 = arith.constant 0 : index
    %23 = vector.load %arg16[%c0_13, %c0_14] : memref<12x256xf32, #tpu.memory_space<vmem>>, vector<4x256xf32>
    tpu.vector_store %arg16[%c0_13, %c0_14], %22 {strides = array<i32>} : memref<12x256xf32, #tpu.memory_space<vmem>>, vector<4x256xf32>,
    %c1_i32 = arith.constant 1 : i32
    %24 = arith.addi %arg1, %c1_i32 : i32
    %25 = arith.index_cast %24 : i32 to index
    %c0_15 = arith.constant 0 : index
    %c0_16 = arith.constant 0 : index
    %26 = vector.load %arg15[%25, %c0_15, %c0_16] : memref<6x4x256xf32, #tpu.memory_space<vmem>>, vector<1x4x256xf32>
    %27 = vector.shape_cast %26 : vector<1x4x256xf32> to vector<4x256xf32>
    %28 = vector.extract_strided_slice %14 {offsets = [4, 0], sizes = [4, 256], strides = [1, 1]} : vector<8x256xf32> to vector<4x256xf32>
    %29 = arith.addf %27, %28 : vector<4x256xf32>
    %cst_17 = arith.constant 2.000000e+00 : f32
    %30 = vector.broadcast %cst_17 : f32 to vector<4x256xf32>
    %31 = arith.mulf %29, %30 : vector<4x256xf32>
    %c4 = arith.constant 4 : index
    %c0_18 = arith.constant 0 : index
    %32 = vector.load %arg16[%c4, %c0_18] : memref<12x256xf32, #tpu.memory_space<vmem>>, vector<4x256xf32>
    tpu.vector_store %arg16[%c4, %c0_18], %31 {strides = array<i32>} : memref<12x256xf32, #tpu.memory_space<vmem>>, vector<4x256xf32>,
    %c2_i32 = arith.constant 2 : i32
    %33 = arith.addi %c2_i32, %arg1 : i32
    %c0_19 = arith.constant 0 : index
    %34 = arith.index_cast %33 : i32 to index
    %c0_20 = arith.constant 0 : index
    %c0_21 = arith.constant 0 : index
    %35 = vector.load %arg2[%c0_19, %34, %c0_20, %c0_21] : memref<1x6x4x256xf32, #tpu.memory_space<vmem>>, vector<1x1x4x256xf32>
    %36 = vector.shape_cast %35 : vector<1x1x4x256xf32> to vector<4x256xf32>
    %c0_22 = arith.constant 0 : index
    %c0_23 = arith.constant 0 : index
    %c0_24 = arith.constant 0 : index
    %c0_25 = arith.constant 0 : index
    %37 = vector.load %arg3[%c0_22, %c0_23, %c0_24, %c0_25] : memref<1x1x4x256xf32, #tpu.memory_space<vmem>>, vector<1x1x4x256xf32>
    %38 = vector.shape_cast %37 : vector<1x1x4x256xf32> to vector<4x256xf32>
    %39 = arith.addf %36, %38 : vector<4x256xf32>
    %40 = vector.broadcast %7 : vector<1x1xf32> to vector<4x256xf32>
    %41 = arith.mulf %39, %40 : vector<4x256xf32>
    %c8 = arith.constant 8 : index
    %c0_26 = arith.constant 0 : index
    %42 = vector.load %arg16[%c8, %c0_26] : memref<12x256xf32, #tpu.memory_space<vmem>>, vector<4x256xf32>
    tpu.vector_store %arg16[%c8, %c0_26], %41 {strides = array<i32>} : memref<12x256xf32, #tpu.memory_space<vmem>>, vector<4x256xf32>,
    %c0_27 = arith.constant 0 : index
    %c0_28 = arith.constant 0 : index
    %43 = vector.load %arg16[%c0_27, %c0_28] : memref<12x256xf32, #tpu.memory_space<vmem>>, vector<12x256xf32>
    %c17_i32 = arith.constant 17 : i32
    %44 = tpu.dynamic_rotate %43 by %c17_i32 dim 1 : vector<12x256xf32>, i32 -> vector<12x256xf32>
    %45 = vector.extract_strided_slice %12 {offsets = [0, 0], sizes = [1, 256], strides = [1, 1]} : vector<9x256xf32> to vector<1x256xf32>
    %46 = vector.broadcast %45 : vector<1x256xf32> to vector<12x256xf32>
    %47 = arith.mulf %44, %46 : vector<12x256xf32>
    %48 = arith.truncf %47 : vector<12x256xf32> to vector<12x256xbf16>
    %c0_29 = arith.constant 0 : index
    %c0_30 = arith.constant 0 : index
    %49 = vector.load %arg17[%c0_29, %c0_30] : memref<288x256xbf16, #tpu.memory_space<vmem>>, vector<12x256xbf16>
    tpu.vector_store %arg17[%c0_29, %c0_30], %48 {strides = array<i32>} : memref<288x256xbf16, #tpu.memory_space<vmem>>, vector<12x256xbf16>,
    %c16_i32 = arith.constant 16 : i32
    %50 = tpu.dynamic_rotate %43 by %c16_i32 dim 1 : vector<12x256xf32>, i32 -> vector<12x256xf32>
    %51 = vector.extract_strided_slice %12 {offsets = [1, 0], sizes = [1, 256], strides = [1, 1]} : vector<9x256xf32> to vector<1x256xf32>
    %52 = vector.broadcast %51 : vector<1x256xf32> to vector<12x256xf32>
    %53 = arith.mulf %50, %52 : vector<12x256xf32>
    %54 = arith.truncf %53 : vector<12x256xf32> to vector<12x256xbf16>
    %c12 = arith.constant 12 : index
    %c0_31 = arith.constant 0 : index
    %55 = vector.load %arg17[%c12, %c0_31] : memref<288x256xbf16, #tpu.memory_space<vmem>>, vector<12x256xbf16>
    tpu.vector_store %arg17[%c12, %c0_31], %54 {strides = array<i32>} : memref<288x256xbf16, #tpu.memory_space<vmem>>, vector<12x256xbf16>,
    %c15_i32 = arith.constant 15 : i32
    %56 = tpu.dynamic_rotate %43 by %c15_i32 dim 1 : vector<12x256xf32>, i32 -> vector<12x256xf32>
    %57 = vector.extract_strided_slice %12 {offsets = [2, 0], sizes = [1, 256], strides = [1, 1]} : vector<9x256xf32> to vector<1x256xf32>
    %58 = vector.broadcast %57 : vector<1x256xf32> to vector<12x256xf32>
    %59 = arith.mulf %56, %58 : vector<12x256xf32>
    %60 = arith.truncf %59 : vector<12x256xf32> to vector<12x256xbf16>
    %c24 = arith.constant 24 : index
    %c0_32 = arith.constant 0 : index
    %61 = vector.load %arg17[%c24, %c0_32] : memref<288x256xbf16, #tpu.memory_space<vmem>>, vector<12x256xbf16>
    tpu.vector_store %arg17[%c24, %c0_32], %60 {strides = array<i32>} : memref<288x256xbf16, #tpu.memory_space<vmem>>, vector<12x256xbf16>,
    %c1_i32_33 = arith.constant 1 : i32
    %62 = tpu.dynamic_rotate %43 by %c1_i32_33 dim 1 : vector<12x256xf32>, i32 -> vector<12x256xf32>
    %63 = vector.extract_strided_slice %12 {offsets = [3, 0], sizes = [1, 256], strides = [1, 1]} : vector<9x256xf32> to vector<1x256xf32>
    %64 = vector.broadcast %63 : vector<1x256xf32> to vector<12x256xf32>
    %65 = arith.mulf %62, %64 : vector<12x256xf32>
    %66 = arith.truncf %65 : vector<12x256xf32> to vector<12x256xbf16>
    %c36 = arith.constant 36 : index
    %c0_34 = arith.constant 0 : index
    %67 = vector.load %arg17[%c36, %c0_34] : memref<288x256xbf16, #tpu.memory_space<vmem>>, vector<12x256xbf16>
    tpu.vector_store %arg17[%c36, %c0_34], %66 {strides = array<i32>} : memref<288x256xbf16, #tpu.memory_space<vmem>>, vector<12x256xbf16>,
    %68 = arith.truncf %43 : vector<12x256xf32> to vector<12x256xbf16>
    %c48 = arith.constant 48 : index
    %c0_35 = arith.constant 0 : index
    %69 = vector.load %arg17[%c48, %c0_35] : memref<288x256xbf16, #tpu.memory_space<vmem>>, vector<12x256xbf16>
    tpu.vector_store %arg17[%c48, %c0_35], %68 {strides = array<i32>} : memref<288x256xbf16, #tpu.memory_space<vmem>>, vector<12x256xbf16>,
    %c255_i32 = arith.constant 255 : i32
    %70 = tpu.dynamic_rotate %43 by %c255_i32 dim 1 : vector<12x256xf32>, i32 -> vector<12x256xf32>
    %71 = vector.extract_strided_slice %12 {offsets = [5, 0], sizes = [1, 256], strides = [1, 1]} : vector<9x256xf32> to vector<1x256xf32>
    %72 = vector.broadcast %71 : vector<1x256xf32> to vector<12x256xf32>
    %73 = arith.mulf %70, %72 : vector<12x256xf32>
    %74 = arith.truncf %73 : vector<12x256xf32> to vector<12x256xbf16>
    %c60 = arith.constant 60 : index
    %c0_36 = arith.constant 0 : index
    %75 = vector.load %arg17[%c60, %c0_36] : memref<288x256xbf16, #tpu.memory_space<vmem>>, vector<12x256xbf16>
    tpu.vector_store %arg17[%c60, %c0_36], %74 {strides = array<i32>} : memref<288x256xbf16, #tpu.memory_space<vmem>>, vector<12x256xbf16>,
    %c241_i32 = arith.constant 241 : i32
    %76 = tpu.dynamic_rotate %43 by %c241_i32 dim 1 : vector<12x256xf32>, i32 -> vector<12x256xf32>
    %77 = vector.extract_strided_slice %12 {offsets = [6, 0], sizes = [1, 256], strides = [1, 1]} : vector<9x256xf32> to vector<1x256xf32>
    %78 = vector.broadcast %77 : vector<1x256xf32> to vector<12x256xf32>
    %79 = arith.mulf %76, %78 : vector<12x256xf32>
    %80 = arith.truncf %79 : vector<12x256xf32> to vector<12x256xbf16>
    %c72 = arith.constant 72 : index
    %c0_37 = arith.constant 0 : index
    %81 = vector.load %arg17[%c72, %c0_37] : memref<288x256xbf16, #tpu.memory_space<vmem>>, vector<12x256xbf16>
    tpu.vector_store %arg17[%c72, %c0_37], %80 {strides = array<i32>} : memref<288x256xbf16, #tpu.memory_space<vmem>>, vector<12x256xbf16>,
    %c240_i32 = arith.constant 240 : i32
    %82 = tpu.dynamic_rotate %43 by %c240_i32 dim 1 : vector<12x256xf32>, i32 -> vector<12x256xf32>
    %83 = vector.extract_strided_slice %12 {offsets = [7, 0], sizes = [1, 256], strides = [1, 1]} : vector<9x256xf32> to vector<1x256xf32>
    %84 = vector.broadcast %83 : vector<1x256xf32> to vector<12x256xf32>
    %85 = arith.mulf %82, %84 : vector<12x256xf32>
    %86 = arith.truncf %85 : vector<12x256xf32> to vector<12x256xbf16>
    %c84 = arith.constant 84 : index
    %c0_38 = arith.constant 0 : index
    %87 = vector.load %arg17[%c84, %c0_38] : memref<288x256xbf16, #tpu.memory_space<vmem>>, vector<12x256xbf16>
    tpu.vector_store %arg17[%c84, %c0_38], %86 {strides = array<i32>} : memref<288x256xbf16, #tpu.memory_space<vmem>>, vector<12x256xbf16>,
    %c239_i32 = arith.constant 239 : i32
    %88 = tpu.dynamic_rotate %43 by %c239_i32 dim 1 : vector<12x256xf32>, i32 -> vector<12x256xf32>
    %89 = vector.extract_strided_slice %12 {offsets = [8, 0], sizes = [1, 256], strides = [1, 1]} : vector<9x256xf32> to vector<1x256xf32>
    %90 = vector.broadcast %89 : vector<1x256xf32> to vector<12x256xf32>
    %91 = arith.mulf %88, %90 : vector<12x256xf32>
    %92 = arith.truncf %91 : vector<12x256xf32> to vector<12x256xbf16>
    %c96 = arith.constant 96 : index
    %c0_39 = arith.constant 0 : index
    %93 = vector.load %arg17[%c96, %c0_39] : memref<288x256xbf16, #tpu.memory_space<vmem>>, vector<12x256xbf16>
    tpu.vector_store %arg17[%c96, %c0_39], %92 {strides = array<i32>} : memref<288x256xbf16, #tpu.memory_space<vmem>>, vector<12x256xbf16>,
    %c0_40 = arith.constant 0 : index
    %c0_41 = arith.constant 0 : index
    %94 = vector.load %arg17[%c0_40, %c0_41] : memref<288x256xbf16, #tpu.memory_space<vmem>>, vector<108x256xbf16>
    %c0_42 = arith.constant 0 : index
    %c0_43 = arith.constant 0 : index
    %95 = vector.load %arg8[%c0_42, %c0_43] : memref<32x108xbf16, #tpu.memory_space<vmem>>, vector<32x108xbf16>
    %cst_44 = arith.constant dense<0.000000e+00> : vector<32x256xf32>
    %96 = tpu.matmul %95, %94, %cst_44 {dimension_numbers = #tpu.dot_dimension_numbers<[1], [0], [0], [1], [0, 0, 1, 1], [], []>} : vector<32x108xbf16>, vector<108x256xbf16>, vector<32x256xf32> -> vector<32x256xf32>
    %c0_45 = arith.constant 0 : index
    %c0_46 = arith.constant 0 : index
    %97 = vector.load %arg9[%c0_45, %c0_46] : memref<32x1xf32, #tpu.memory_space<vmem>>, vector<32x1xf32>
    %98 = vector.broadcast %97 : vector<32x1xf32> to vector<32x256xf32>
    %99 = arith.addf %96, %98 : vector<32x256xf32>
    %cst_47 = arith.constant 1.000000e+00 : f32
    %100 = vector.broadcast %cst_47 : f32 to vector<32x1xf32>
    %101 = arith.addf %100, %5 : vector<32x1xf32>
    %102 = vector.broadcast %101 : vector<32x1xf32> to vector<32x256xf32>
    %103 = arith.mulf %99, %102 : vector<32x256xf32>
    %104 = vector.broadcast %6 : vector<32x1xf32> to vector<32x256xf32>
    %105 = arith.addf %103, %104 : vector<32x256xf32>
    %106 = arith.negf %105 : vector<32x256xf32>
    %107 = math.exp %106 : vector<32x256xf32>
    %cst_48 = arith.constant 1.000000e+00 : f32
    %108 = vector.broadcast %cst_48 : f32 to vector<32x256xf32>
    %109 = arith.addf %108, %107 : vector<32x256xf32>
    %110 = arith.divf %108, %109 : vector<32x256xf32>
    %111 = arith.mulf %105, %110 : vector<32x256xf32>
    %c17_i32_49 = arith.constant 17 : i32
    %112 = tpu.dynamic_rotate %111 by %c17_i32_49 dim 1 : vector<32x256xf32>, i32 -> vector<32x256xf32>
    %113 = vector.extract_strided_slice %12 {offsets = [0, 0], sizes = [1, 256], strides = [1, 1]} : vector<9x256xf32> to vector<1x256xf32>
    %114 = vector.broadcast %113 : vector<1x256xf32> to vector<32x256xf32>
    %115 = arith.mulf %112, %114 : vector<32x256xf32>
    %116 = arith.truncf %115 : vector<32x256xf32> to vector<32x256xbf16>
    %c0_50 = arith.constant 0 : index
    %c0_51 = arith.constant 0 : index
    %117 = vector.load %arg17[%c0_50, %c0_51] : memref<288x256xbf16, #tpu.memory_space<vmem>>, vector<32x256xbf16>
    tpu.vector_store %arg17[%c0_50, %c0_51], %116 {strides = array<i32>} : memref<288x256xbf16, #tpu.memory_space<vmem>>, vector<32x256xbf16>,
    %c16_i32_52 = arith.constant 16 : i32
    %118 = tpu.dynamic_rotate %111 by %c16_i32_52 dim 1 : vector<32x256xf32>, i32 -> vector<32x256xf32>
    %119 = vector.extract_strided_slice %12 {offsets = [1, 0], sizes = [1, 256], strides = [1, 1]} : vector<9x256xf32> to vector<1x256xf32>
    %120 = vector.broadcast %119 : vector<1x256xf32> to vector<32x256xf32>
    %121 = arith.mulf %118, %120 : vector<32x256xf32>
    %122 = arith.truncf %121 : vector<32x256xf32> to vector<32x256xbf16>
    %c32 = arith.constant 32 : index
    %c0_53 = arith.constant 0 : index
    %123 = vector.load %arg17[%c32, %c0_53] : memref<288x256xbf16, #tpu.memory_space<vmem>>, vector<32x256xbf16>
    tpu.vector_store %arg17[%c32, %c0_53], %122 {strides = array<i32>} : memref<288x256xbf16, #tpu.memory_space<vmem>>, vector<32x256xbf16>,
    %c15_i32_54 = arith.constant 15 : i32
    %124 = tpu.dynamic_rotate %111 by %c15_i32_54 dim 1 : vector<32x256xf32>, i32 -> vector<32x256xf32>
    %125 = vector.extract_strided_slice %12 {offsets = [2, 0], sizes = [1, 256], strides = [1, 1]} : vector<9x256xf32> to vector<1x256xf32>
    %126 = vector.broadcast %125 : vector<1x256xf32> to vector<32x256xf32>
    %127 = arith.mulf %124, %126 : vector<32x256xf32>
    %128 = arith.truncf %127 : vector<32x256xf32> to vector<32x256xbf16>
    %c64 = arith.constant 64 : index
    %c0_55 = arith.constant 0 : index
    %129 = vector.load %arg17[%c64, %c0_55] : memref<288x256xbf16, #tpu.memory_space<vmem>>, vector<32x256xbf16>
    tpu.vector_store %arg17[%c64, %c0_55], %128 {strides = array<i32>} : memref<288x256xbf16, #tpu.memory_space<vmem>>, vector<32x256xbf16>,
    %c1_i32_56 = arith.constant 1 : i32
    %130 = tpu.dynamic_rotate %111 by %c1_i32_56 dim 1 : vector<32x256xf32>, i32 -> vector<32x256xf32>
    %131 = vector.extract_strided_slice %12 {offsets = [3, 0], sizes = [1, 256], strides = [1, 1]} : vector<9x256xf32> to vector<1x256xf32>
    %132 = vector.broadcast %131 : vector<1x256xf32> to vector<32x256xf32>
    %133 = arith.mulf %130, %132 : vector<32x256xf32>
    %134 = arith.truncf %133 : vector<32x256xf32> to vector<32x256xbf16>
    %c96_57 = arith.constant 96 : index
    %c0_58 = arith.constant 0 : index
    %135 = vector.load %arg17[%c96_57, %c0_58] : memref<288x256xbf16, #tpu.memory_space<vmem>>, vector<32x256xbf16>
    tpu.vector_store %arg17[%c96_57, %c0_58], %134 {strides = array<i32>} : memref<288x256xbf16, #tpu.memory_space<vmem>>, vector<32x256xbf16>,
    %136 = arith.truncf %111 : vector<32x256xf32> to vector<32x256xbf16>
    %c128 = arith.constant 128 : index
    %c0_59 = arith.constant 0 : index
    %137 = vector.load %arg17[%c128, %c0_59] : memref<288x256xbf16, #tpu.memory_space<vmem>>, vector<32x256xbf16>
    tpu.vector_store %arg17[%c128, %c0_59], %136 {strides = array<i32>} : memref<288x256xbf16, #tpu.memory_space<vmem>>, vector<32x256xbf16>,
    %c255_i32_60 = arith.constant 255 : i32
    %138 = tpu.dynamic_rotate %111 by %c255_i32_60 dim 1 : vector<32x256xf32>, i32 -> vector<32x256xf32>
    %139 = vector.extract_strided_slice %12 {offsets = [5, 0], sizes = [1, 256], strides = [1, 1]} : vector<9x256xf32> to vector<1x256xf32>
    %140 = vector.broadcast %139 : vector<1x256xf32> to vector<32x256xf32>
    %141 = arith.mulf %138, %140 : vector<32x256xf32>
    %142 = arith.truncf %141 : vector<32x256xf32> to vector<32x256xbf16>
    %c160 = arith.constant 160 : index
    %c0_61 = arith.constant 0 : index
    %143 = vector.load %arg17[%c160, %c0_61] : memref<288x256xbf16, #tpu.memory_space<vmem>>, vector<32x256xbf16>
    tpu.vector_store %arg17[%c160, %c0_61], %142 {strides = array<i32>} : memref<288x256xbf16, #tpu.memory_space<vmem>>, vector<32x256xbf16>,
    %c241_i32_62 = arith.constant 241 : i32
    %144 = tpu.dynamic_rotate %111 by %c241_i32_62 dim 1 : vector<32x256xf32>, i32 -> vector<32x256xf32>
    %145 = vector.extract_strided_slice %12 {offsets = [6, 0], sizes = [1, 256], strides = [1, 1]} : vector<9x256xf32> to vector<1x256xf32>
    %146 = vector.broadcast %145 : vector<1x256xf32> to vector<32x256xf32>
    %147 = arith.mulf %144, %146 : vector<32x256xf32>
    %148 = arith.truncf %147 : vector<32x256xf32> to vector<32x256xbf16>
    %c192 = arith.constant 192 : index
    %c0_63 = arith.constant 0 : index
    %149 = vector.load %arg17[%c192, %c0_63] : memref<288x256xbf16, #tpu.memory_space<vmem>>, vector<32x256xbf16>
    tpu.vector_store %arg17[%c192, %c0_63], %148 {strides = array<i32>} : memref<288x256xbf16, #tpu.memory_space<vmem>>, vector<32x256xbf16>,
    %c240_i32_64 = arith.constant 240 : i32
    %150 = tpu.dynamic_rotate %111 by %c240_i32_64 dim 1 : vector<32x256xf32>, i32 -> vector<32x256xf32>
    %151 = vector.extract_strided_slice %12 {offsets = [7, 0], sizes = [1, 256], strides = [1, 1]} : vector<9x256xf32> to vector<1x256xf32>
    %152 = vector.broadcast %151 : vector<1x256xf32> to vector<32x256xf32>
    %153 = arith.mulf %150, %152 : vector<32x256xf32>
    %154 = arith.truncf %153 : vector<32x256xf32> to vector<32x256xbf16>
    %c224 = arith.constant 224 : index
    %c0_65 = arith.constant 0 : index
    %155 = vector.load %arg17[%c224, %c0_65] : memref<288x256xbf16, #tpu.memory_space<vmem>>, vector<32x256xbf16>
    tpu.vector_store %arg17[%c224, %c0_65], %154 {strides = array<i32>} : memref<288x256xbf16, #tpu.memory_space<vmem>>, vector<32x256xbf16>,
    %c239_i32_66 = arith.constant 239 : i32
    %156 = tpu.dynamic_rotate %111 by %c239_i32_66 dim 1 : vector<32x256xf32>, i32 -> vector<32x256xf32>
    %157 = vector.extract_strided_slice %12 {offsets = [8, 0], sizes = [1, 256], strides = [1, 1]} : vector<9x256xf32> to vector<1x256xf32>
    %158 = vector.broadcast %157 : vector<1x256xf32> to vector<32x256xf32>
    %159 = arith.mulf %156, %158 : vector<32x256xf32>
    %160 = arith.truncf %159 : vector<32x256xf32> to vector<32x256xbf16>
    %c256 = arith.constant 256 : index
    %c0_67 = arith.constant 0 : index
    %161 = vector.load %arg17[%c256, %c0_67] : memref<288x256xbf16, #tpu.memory_space<vmem>>, vector<32x256xbf16>
    tpu.vector_store %arg17[%c256, %c0_67], %160 {strides = array<i32>} : memref<288x256xbf16, #tpu.memory_space<vmem>>, vector<32x256xbf16>,
    %c0_68 = arith.constant 0 : index
    %c0_69 = arith.constant 0 : index
    %162 = vector.load %arg17[%c0_68, %c0_69] : memref<288x256xbf16, #tpu.memory_space<vmem>>, vector<288x256xbf16>
    %c0_70 = arith.constant 0 : index
    %c0_71 = arith.constant 0 : index
    %163 = vector.load %arg10[%c0_70, %c0_71] : memref<32x288xbf16, #tpu.memory_space<vmem>>, vector<32x288xbf16>
    %cst_72 = arith.constant dense<0.000000e+00> : vector<32x256xf32>
    %164 = tpu.matmul %163, %162, %cst_72 {dimension_numbers = #tpu.dot_dimension_numbers<[1], [0], [0], [1], [0, 0, 1, 1], [], []>} : vector<32x288xbf16>, vector<288x256xbf16>, vector<32x256xf32> -> vector<32x256xf32>
    %c0_73 = arith.constant 0 : index
    %c0_74 = arith.constant 0 : index
    %165 = vector.load %arg11[%c0_73, %c0_74] : memref<32x1xf32, #tpu.memory_space<vmem>>, vector<32x1xf32>
    %166 = vector.broadcast %165 : vector<32x1xf32> to vector<32x256xf32>
    %167 = arith.addf %164, %166 : vector<32x256xf32>
    %168 = arith.negf %167 : vector<32x256xf32>
    %169 = math.exp %168 : vector<32x256xf32>
    %cst_75 = arith.constant 1.000000e+00 : f32
    %170 = vector.broadcast %cst_75 : f32 to vector<32x256xf32>
    %171 = arith.addf %170, %169 : vector<32x256xf32>
    %172 = arith.divf %170, %171 : vector<32x256xf32>
    %173 = arith.mulf %167, %172 : vector<32x256xf32>
    %c17_i32_76 = arith.constant 17 : i32
    %174 = tpu.dynamic_rotate %173 by %c17_i32_76 dim 1 : vector<32x256xf32>, i32 -> vector<32x256xf32>
    %175 = vector.extract_strided_slice %12 {offsets = [0, 0], sizes = [1, 256], strides = [1, 1]} : vector<9x256xf32> to vector<1x256xf32>
    %176 = vector.broadcast %175 : vector<1x256xf32> to vector<32x256xf32>
    %177 = arith.mulf %174, %176 : vector<32x256xf32>
    %178 = arith.truncf %177 : vector<32x256xf32> to vector<32x256xbf16>
    %c0_77 = arith.constant 0 : index
    %c0_78 = arith.constant 0 : index
    %179 = vector.load %arg17[%c0_77, %c0_78] : memref<288x256xbf16, #tpu.memory_space<vmem>>, vector<32x256xbf16>
    tpu.vector_store %arg17[%c0_77, %c0_78], %178 {strides = array<i32>} : memref<288x256xbf16, #tpu.memory_space<vmem>>, vector<32x256xbf16>,
    %c16_i32_79 = arith.constant 16 : i32
    %180 = tpu.dynamic_rotate %173 by %c16_i32_79 dim 1 : vector<32x256xf32>, i32 -> vector<32x256xf32>
    %181 = vector.extract_strided_slice %12 {offsets = [1, 0], sizes = [1, 256], strides = [1, 1]} : vector<9x256xf32> to vector<1x256xf32>
    %182 = vector.broadcast %181 : vector<1x256xf32> to vector<32x256xf32>
    %183 = arith.mulf %180, %182 : vector<32x256xf32>
    %184 = arith.truncf %183 : vector<32x256xf32> to vector<32x256xbf16>
    %c32_80 = arith.constant 32 : index
    %c0_81 = arith.constant 0 : index
    %185 = vector.load %arg17[%c32_80, %c0_81] : memref<288x256xbf16, #tpu.memory_space<vmem>>, vector<32x256xbf16>
    tpu.vector_store %arg17[%c32_80, %c0_81], %184 {strides = array<i32>} : memref<288x256xbf16, #tpu.memory_space<vmem>>, vector<32x256xbf16>,
    %c15_i32_82 = arith.constant 15 : i32
    %186 = tpu.dynamic_rotate %173 by %c15_i32_82 dim 1 : vector<32x256xf32>, i32 -> vector<32x256xf32>
    %187 = vector.extract_strided_slice %12 {offsets = [2, 0], sizes = [1, 256], strides = [1, 1]} : vector<9x256xf32> to vector<1x256xf32>
    %188 = vector.broadcast %187 : vector<1x256xf32> to vector<32x256xf32>
    %189 = arith.mulf %186, %188 : vector<32x256xf32>
    %190 = arith.truncf %189 : vector<32x256xf32> to vector<32x256xbf16>
    %c64_83 = arith.constant 64 : index
    %c0_84 = arith.constant 0 : index
    %191 = vector.load %arg17[%c64_83, %c0_84] : memref<288x256xbf16, #tpu.memory_space<vmem>>, vector<32x256xbf16>
    tpu.vector_store %arg17[%c64_83, %c0_84], %190 {strides = array<i32>} : memref<288x256xbf16, #tpu.memory_space<vmem>>, vector<32x256xbf16>,
    %c1_i32_85 = arith.constant 1 : i32
    %192 = tpu.dynamic_rotate %173 by %c1_i32_85 dim 1 : vector<32x256xf32>, i32 -> vector<32x256xf32>
    %193 = vector.extract_strided_slice %12 {offsets = [3, 0], sizes = [1, 256], strides = [1, 1]} : vector<9x256xf32> to vector<1x256xf32>
    %194 = vector.broadcast %193 : vector<1x256xf32> to vector<32x256xf32>
    %195 = arith.mulf %192, %194 : vector<32x256xf32>
    %196 = arith.truncf %195 : vector<32x256xf32> to vector<32x256xbf16>
    %c96_86 = arith.constant 96 : index
    %c0_87 = arith.constant 0 : index
    %197 = vector.load %arg17[%c96_86, %c0_87] : memref<288x256xbf16, #tpu.memory_space<vmem>>, vector<32x256xbf16>
    tpu.vector_store %arg17[%c96_86, %c0_87], %196 {strides = array<i32>} : memref<288x256xbf16, #tpu.memory_space<vmem>>, vector<32x256xbf16>,
    %198 = arith.truncf %173 : vector<32x256xf32> to vector<32x256xbf16>
    %c128_88 = arith.constant 128 : index
    %c0_89 = arith.constant 0 : index
    %199 = vector.load %arg17[%c128_88, %c0_89] : memref<288x256xbf16, #tpu.memory_space<vmem>>, vector<32x256xbf16>
    tpu.vector_store %arg17[%c128_88, %c0_89], %198 {strides = array<i32>} : memref<288x256xbf16, #tpu.memory_space<vmem>>, vector<32x256xbf16>,
    %c255_i32_90 = arith.constant 255 : i32
    %200 = tpu.dynamic_rotate %173 by %c255_i32_90 dim 1 : vector<32x256xf32>, i32 -> vector<32x256xf32>
    %201 = vector.extract_strided_slice %12 {offsets = [5, 0], sizes = [1, 256], strides = [1, 1]} : vector<9x256xf32> to vector<1x256xf32>
    %202 = vector.broadcast %201 : vector<1x256xf32> to vector<32x256xf32>
    %203 = arith.mulf %200, %202 : vector<32x256xf32>
    %204 = arith.truncf %203 : vector<32x256xf32> to vector<32x256xbf16>
    %c160_91 = arith.constant 160 : index
    %c0_92 = arith.constant 0 : index
    %205 = vector.load %arg17[%c160_91, %c0_92] : memref<288x256xbf16, #tpu.memory_space<vmem>>, vector<32x256xbf16>
    tpu.vector_store %arg17[%c160_91, %c0_92], %204 {strides = array<i32>} : memref<288x256xbf16, #tpu.memory_space<vmem>>, vector<32x256xbf16>,
    %c241_i32_93 = arith.constant 241 : i32
    %206 = tpu.dynamic_rotate %173 by %c241_i32_93 dim 1 : vector<32x256xf32>, i32 -> vector<32x256xf32>
    %207 = vector.extract_strided_slice %12 {offsets = [6, 0], sizes = [1, 256], strides = [1, 1]} : vector<9x256xf32> to vector<1x256xf32>
    %208 = vector.broadcast %207 : vector<1x256xf32> to vector<32x256xf32>
    %209 = arith.mulf %206, %208 : vector<32x256xf32>
    %210 = arith.truncf %209 : vector<32x256xf32> to vector<32x256xbf16>
    %c192_94 = arith.constant 192 : index
    %c0_95 = arith.constant 0 : index
    %211 = vector.load %arg17[%c192_94, %c0_95] : memref<288x256xbf16, #tpu.memory_space<vmem>>, vector<32x256xbf16>
    tpu.vector_store %arg17[%c192_94, %c0_95], %210 {strides = array<i32>} : memref<288x256xbf16, #tpu.memory_space<vmem>>, vector<32x256xbf16>,
    %c240_i32_96 = arith.constant 240 : i32
    %212 = tpu.dynamic_rotate %173 by %c240_i32_96 dim 1 : vector<32x256xf32>, i32 -> vector<32x256xf32>
    %213 = vector.extract_strided_slice %12 {offsets = [7, 0], sizes = [1, 256], strides = [1, 1]} : vector<9x256xf32> to vector<1x256xf32>
    %214 = vector.broadcast %213 : vector<1x256xf32> to vector<32x256xf32>
    %215 = arith.mulf %212, %214 : vector<32x256xf32>
    %216 = arith.truncf %215 : vector<32x256xf32> to vector<32x256xbf16>
    %c224_97 = arith.constant 224 : index
    %c0_98 = arith.constant 0 : index
    %217 = vector.load %arg17[%c224_97, %c0_98] : memref<288x256xbf16, #tpu.memory_space<vmem>>, vector<32x256xbf16>
    tpu.vector_store %arg17[%c224_97, %c0_98], %216 {strides = array<i32>} : memref<288x256xbf16, #tpu.memory_space<vmem>>, vector<32x256xbf16>,
    %c239_i32_99 = arith.constant 239 : i32
    %218 = tpu.dynamic_rotate %173 by %c239_i32_99 dim 1 : vector<32x256xf32>, i32 -> vector<32x256xf32>
    %219 = vector.extract_strided_slice %12 {offsets = [8, 0], sizes = [1, 256], strides = [1, 1]} : vector<9x256xf32> to vector<1x256xf32>
    %220 = vector.broadcast %219 : vector<1x256xf32> to vector<32x256xf32>
    %221 = arith.mulf %218, %220 : vector<32x256xf32>
    %222 = arith.truncf %221 : vector<32x256xf32> to vector<32x256xbf16>
    %c256_100 = arith.constant 256 : index
    %c0_101 = arith.constant 0 : index
    %223 = vector.load %arg17[%c256_100, %c0_101] : memref<288x256xbf16, #tpu.memory_space<vmem>>, vector<32x256xbf16>
    tpu.vector_store %arg17[%c256_100, %c0_101], %222 {strides = array<i32>} : memref<288x256xbf16, #tpu.memory_space<vmem>>, vector<32x256xbf16>,
    %c0_102 = arith.constant 0 : index
    %c0_103 = arith.constant 0 : index
    %224 = vector.load %arg17[%c0_102, %c0_103] : memref<288x256xbf16, #tpu.memory_space<vmem>>, vector<288x256xbf16>
    %c0_104 = arith.constant 0 : index
    %c0_105 = arith.constant 0 : index
    %225 = vector.load %arg12[%c0_104, %c0_105] : memref<8x288xbf16, #tpu.memory_space<vmem>>, vector<8x288xbf16>
    %cst_106 = arith.constant dense<0.000000e+00> : vector<8x256xf32>
    %226 = tpu.matmul %225, %224, %cst_106 {dimension_numbers = #tpu.dot_dimension_numbers<[1], [0], [0], [1], [0, 0, 1, 1], [], []>} : vector<8x288xbf16>, vector<288x256xbf16>, vector<8x256xf32> -> vector<8x256xf32>
    %c0_107 = arith.constant 0 : index
    %c0_108 = arith.constant 0 : index
    %227 = vector.load %arg13[%c0_107, %c0_108] : memref<8x1xf32, #tpu.memory_space<vmem>>, vector<8x1xf32>
    %228 = vector.broadcast %227 : vector<8x1xf32> to vector<8x256xf32>
    %229 = arith.addf %226, %228 : vector<8x256xf32>
    %230 = vector.extract_strided_slice %229 {offsets = [0, 0], sizes = [4, 256], strides = [1, 1]} : vector<8x256xf32> to vector<4x256xf32>
    %231 = vector.extract_strided_slice %229 {offsets = [4, 0], sizes = [1, 256], strides = [1, 1]} : vector<8x256xf32> to vector<1x256xf32>
    %232 = vector.broadcast %8 : vector<1x1xf32> to vector<4x256xf32>
    %233 = arith.mulf %232, %39 : vector<4x256xf32>
    %234 = arith.subf %36, %233 : vector<4x256xf32>
    %235 = vector.broadcast %10 : vector<1x1xf32> to vector<4x256xf32>
    %236 = arith.mulf %234, %235 : vector<4x256xf32>
    %237 = arith.subf %230, %236 : vector<4x256xf32>
    %238 = arith.mulf %237, %237 : vector<4x256xf32>
    %239 = vector.shape_cast %238 : vector<4x256xf32> to vector<1x4x256xf32>
    %cst_109 = arith.constant dense<0.000000e+00> : vector<1xf32>
    %240 = vector.multi_reduction <add>, %239, %cst_109 [1, 2] : vector<1x4x256xf32> to vector<1xf32>
    %241 = vector.shape_cast %240 : vector<1xf32> to vector<1x1x1xf32>
    %242 = vector.extract %241[0, 0, 0] : f32 from vector<1x1x1xf32>
    %c0_110 = arith.constant 0 : index
    %c0_111 = arith.constant 0 : index
    %c0_112 = arith.constant 0 : index
    %c0_113 = arith.constant 0 : index
    %243 = vector.load %arg5[%c0_110, %c0_111, %c0_112, %c0_113] : memref<1x1x1x256xf32, #tpu.memory_space<vmem>>, vector<1x1x1x256xf32>
    %244 = vector.shape_cast %243 : vector<1x1x1x256xf32> to vector<1x256xf32>
    %cst_114 = arith.constant 1.000000e+01 : f32
    %245 = vector.broadcast %cst_114 : f32 to vector<1x256xf32>
    %246 = arith.mulf %245, %244 : vector<1x256xf32>
    %cst_115 = arith.constant 0.000000e+00 : f32
    %247 = vector.broadcast %cst_115 : f32 to vector<1x256xf32>
    %248 = arith.subf %247, %231 : vector<1x256xf32>
    %cst_116 = arith.constant 0.000000e+00 : f32
    %249 = vector.broadcast %cst_116 : f32 to vector<1x256xf32>
    %250 = arith.maximumf %248, %249 : vector<1x256xf32>
    %251 = math.absf %248 : vector<1x256xf32>
    %cst_117 = arith.constant 0.000000e+00 : f32
    %252 = vector.broadcast %cst_117 : f32 to vector<1x256xf32>
    %253 = arith.subf %252, %251 : vector<1x256xf32>
    %254 = math.exp %253 : vector<1x256xf32>
    %cst_118 = arith.constant 1.000000e+00 : f32
    %255 = vector.broadcast %cst_118 : f32 to vector<1x256xf32>
    %256 = arith.addf %255, %254 : vector<1x256xf32>
    %257 = math.log %256 : vector<1x256xf32>
    %258 = arith.addf %250, %257 : vector<1x256xf32>
    %cst_119 = arith.constant 0.000000e+00 : f32
    %259 = vector.broadcast %cst_119 : f32 to vector<1x256xf32>
    %260 = arith.subf %259, %258 : vector<1x256xf32>
    %261 = arith.mulf %246, %260 : vector<1x256xf32>
    %cst_120 = arith.constant 1.000000e+00 : f32
    %262 = vector.broadcast %cst_120 : f32 to vector<1x256xf32>
    %263 = arith.subf %262, %244 : vector<1x256xf32>
    %cst_121 = arith.constant 0.000000e+00 : f32
    %264 = vector.broadcast %cst_121 : f32 to vector<1x256xf32>
    %265 = arith.maximumf %231, %264 : vector<1x256xf32>
    %266 = math.absf %231 : vector<1x256xf32>
    %cst_122 = arith.constant 0.000000e+00 : f32
    %267 = vector.broadcast %cst_122 : f32 to vector<1x256xf32>
    %268 = arith.subf %267, %266 : vector<1x256xf32>
    %269 = math.exp %268 : vector<1x256xf32>
    %cst_123 = arith.constant 1.000000e+00 : f32
    %270 = vector.broadcast %cst_123 : f32 to vector<1x256xf32>
    %271 = arith.addf %270, %269 : vector<1x256xf32>
    %272 = math.log %271 : vector<1x256xf32>
    %273 = arith.addf %265, %272 : vector<1x256xf32>
    %cst_124 = arith.constant 0.000000e+00 : f32
    %274 = vector.broadcast %cst_124 : f32 to vector<1x256xf32>
    %275 = arith.subf %274, %273 : vector<1x256xf32>
    %276 = arith.mulf %263, %275 : vector<1x256xf32>
    %277 = arith.addf %261, %276 : vector<1x256xf32>
    %cst_125 = arith.constant 0.000000e+00 : f32
    %278 = vector.broadcast %cst_125 : f32 to vector<1x256xf32>
    %279 = arith.subf %278, %277 : vector<1x256xf32>
    %280 = arith.negf %231 : vector<1x256xf32>
    %281 = math.exp %280 : vector<1x256xf32>
    %cst_126 = arith.constant 1.000000e+00 : f32
    %282 = vector.broadcast %cst_126 : f32 to vector<1x256xf32>
    %283 = arith.addf %282, %281 : vector<1x256xf32>
    %284 = arith.divf %282, %283 : vector<1x256xf32>
    %285 = vector.shape_cast %279 : vector<1x256xf32> to vector<1x1x256xf32>
    %cst_127 = arith.constant dense<0.000000e+00> : vector<1xf32>
    %286 = vector.multi_reduction <add>, %285, %cst_127 [1, 2] : vector<1x1x256xf32> to vector<1xf32>
    %287 = vector.shape_cast %286 : vector<1xf32> to vector<1x1x1xf32>
    %288 = vector.extract %287[0, 0, 0] : f32 from vector<1x1x1xf32>
    %289 = arith.mulf %284, %244 : vector<1x256xf32>
    %290 = vector.shape_cast %289 : vector<1x256xf32> to vector<1x1x256xf32>
    %cst_128 = arith.constant dense<0.000000e+00> : vector<1xf32>
    %291 = vector.multi_reduction <add>, %290, %cst_128 [1, 2] : vector<1x1x256xf32> to vector<1xf32>
    %292 = vector.shape_cast %291 : vector<1xf32> to vector<1x1x1xf32>
    %293 = vector.extract %292[0, 0, 0] : f32 from vector<1x1x1xf32>
    %294 = vector.shape_cast %284 : vector<1x256xf32> to vector<1x1x256xf32>
    %cst_129 = arith.constant dense<0.000000e+00> : vector<1xf32>
    %295 = vector.multi_reduction <add>, %294, %cst_129 [1, 2] : vector<1x1x256xf32> to vector<1xf32>
    %296 = vector.shape_cast %295 : vector<1xf32> to vector<1x1x1xf32>
    %297 = vector.extract %296[0, 0, 0] : f32 from vector<1x1x1xf32>
    %298 = vector.shape_cast %244 : vector<1x256xf32> to vector<1x1x256xf32>
    %cst_130 = arith.constant dense<0.000000e+00> : vector<1xf32>
    %299 = vector.multi_reduction <add>, %298, %cst_130 [1, 2] : vector<1x1x256xf32> to vector<1xf32>
    %300 = vector.shape_cast %299 : vector<1xf32> to vector<1x1x1xf32>
    %301 = vector.extract %300[0, 0, 0] : f32 from vector<1x1x1xf32>
    %302 = vector.broadcast %8 : vector<1x1xf32> to vector<4x256xf32>
    %303 = arith.mulf %302, %39 : vector<4x256xf32>
    %304 = vector.broadcast %9 : vector<1x1xf32> to vector<4x256xf32>
    %305 = arith.mulf %304, %230 : vector<4x256xf32>
    %306 = arith.addf %303, %305 : vector<4x256xf32>
    %cst_131 = arith.constant -1.000000e+00 : f32
    %cst_132 = arith.constant 1.000000e+00 : f32
    %307 = vector.broadcast %cst_131 : f32 to vector<4x256xf32>
    %308 = arith.maximumf %307, %306 : vector<4x256xf32>
    %309 = vector.broadcast %cst_132 : f32 to vector<4x256xf32>
    %310 = arith.minimumf %309, %308 : vector<4x256xf32>
    %cst_133 = arith.constant 1.000000e+00 : f32
    %311 = vector.broadcast %cst_133 : f32 to vector<4x256xf32>
    %312 = arith.addf %310, %311 : vector<4x256xf32>
    %cst_134 = arith.constant 1.275000e+02 : f32
    %313 = vector.broadcast %cst_134 : f32 to vector<4x256xf32>
    %314 = arith.mulf %312, %313 : vector<4x256xf32>
    %315 = math.floor %314 : vector<4x256xf32>
    %cst_135 = arith.constant 0.00784313772 : f32
    %316 = vector.broadcast %cst_135 : f32 to vector<4x256xf32>
    %317 = arith.mulf %315, %316 : vector<4x256xf32>
    %cst_136 = arith.constant 1.000000e+00 : f32
    %318 = vector.broadcast %cst_136 : f32 to vector<4x256xf32>
    %319 = arith.subf %317, %318 : vector<4x256xf32>
    %cst_137 = arith.constant 5.000000e-01 : f32
    %320 = vector.broadcast %cst_137 : f32 to vector<1x1xf32>
    %321 = arith.cmpf ogt, %11, %320 : vector<1x1xf32>
    %322 = vector.shape_cast %321 : vector<1x1xi1> to vector<1x1xi1>
    %323 = vector.broadcast %322 : vector<1x1xi1> to vector<4x256xi1>
    %324 = arith.select %323, %319, %36 : vector<4x256xi1>, vector<4x256xf32>
    %c2_i32_138 = arith.constant 2 : i32
    %325 = arith.addi %c2_i32_138, %arg1 : i32
    %326 = arith.index_cast %325 : i32 to index
    %c0_139 = arith.constant 0 : index
    %c0_140 = arith.constant 0 : index
    %327 = vector.load %arg15[%326, %c0_139, %c0_140] : memref<6x4x256xf32, #tpu.memory_space<vmem>>, vector<1x4x256xf32>
    %328 = vector.shape_cast %327 : vector<1x4x256xf32> to vector<4x256xf32>
    %329 = vector.shape_cast %324 : vector<4x256xf32> to vector<1x4x256xf32>
    tpu.vector_store %arg15[%326, %c0_139, %c0_140], %329 {strides = array<i32>} : memref<6x4x256xf32, #tpu.memory_space<vmem>>, vector<1x4x256xf32>,
    %330 = tpu.iota {dimensions = array<i32: 1>} : vector<8x128xi32>
    %c0_i32_141 = arith.constant 0 : i32
    %331 = vector.broadcast %c0_i32_141 : i32 to vector<8x128xi32>
    %332 = arith.cmpi eq, %330, %331 : vector<8x128xi32>
    %cst_142 = arith.constant 0.000000e+00 : f32
    %333 = vector.broadcast %242 : f32 to vector<8x128xf32>
    %334 = vector.broadcast %cst_142 : f32 to vector<8x128xf32>
    %335 = arith.select %332, %333, %334 : vector<8x128xi1>, vector<8x128xf32>
    %c1_i32_143 = arith.constant 1 : i32
    %336 = vector.broadcast %c1_i32_143 : i32 to vector<8x128xi32>
    %337 = arith.cmpi eq, %330, %336 : vector<8x128xi32>
    %338 = vector.broadcast %288 : f32 to vector<8x128xf32>
    %339 = arith.select %337, %338, %335 : vector<8x128xi1>, vector<8x128xf32>
    %c2_i32_144 = arith.constant 2 : i32
    %340 = vector.broadcast %c2_i32_144 : i32 to vector<8x128xi32>
    %341 = arith.cmpi eq, %330, %340 : vector<8x128xi32>
    %342 = vector.broadcast %293 : f32 to vector<8x128xf32>
    %343 = arith.select %341, %342, %339 : vector<8x128xi1>, vector<8x128xf32>
    %c3_i32 = arith.constant 3 : i32
    %344 = vector.broadcast %c3_i32 : i32 to vector<8x128xi32>
    %345 = arith.cmpi eq, %330, %344 : vector<8x128xi32>
    %346 = vector.broadcast %297 : f32 to vector<8x128xf32>
    %347 = arith.select %345, %346, %343 : vector<8x128xi1>, vector<8x128xf32>
    %c4_i32 = arith.constant 4 : i32
    %348 = vector.broadcast %c4_i32 : i32 to vector<8x128xi32>
    %349 = arith.cmpi eq, %330, %348 : vector<8x128xi32>
    %350 = vector.broadcast %301 : f32 to vector<8x128xf32>
    %351 = arith.select %349, %350, %347 : vector<8x128xi1>, vector<8x128xf32>
    %c0_145 = arith.constant 0 : index
    %c0_146 = arith.constant 0 : index
    %c0_147 = arith.constant 0 : index
    %c0_148 = arith.constant 0 : index
    %352 = vector.load %arg14[%c0_145, %c0_146, %c0_147, %c0_148] : memref<1x1x8x128xf32, #tpu.memory_space<vmem>>, vector<1x1x8x128xf32>
    %353 = vector.shape_cast %352 : vector<1x1x8x128xf32> to vector<8x128xf32>
    %354 = vector.shape_cast %351 : vector<8x128xf32> to vector<1x1x8x128xf32>
    tpu.vector_store %arg14[%c0_145, %c0_146, %c0_147, %c0_148], %354 {strides = array<i32>} : memref<1x1x8x128xf32, #tpu.memory_space<vmem>>, vector<1x1x8x128xf32>,
    return
  }
  func.func @transform_0(%arg0: i32, %arg1: i32) -> (i32, i32, i32, i32) {
    %c0_i32 = arith.constant 0 : i32
    %c0_i32_0 = arith.constant 0 : i32
    %c0_i32_1 = arith.constant 0 : i32
    %c0_i32_2 = arith.constant 0 : i32
    return %arg0, %c0_i32, %c0_i32_0, %c0_i32_1 : i32, i32, i32, i32
  }
  func.func @transform_1(%arg0: i32, %arg1: i32) -> (i32, i32, i32, i32) {
    %c0_i32 = arith.constant 0 : i32
    %c0_i32_0 = arith.constant 0 : i32
    %c0_i32_1 = arith.constant 0 : i32
    return %arg0, %arg1, %c0_i32, %c0_i32_0 : i32, i32, i32, i32
  }
  func.func @transform_2(%arg0: i32, %arg1: i32) -> (i32, i32, i32, i32) {
    %c0_i32 = arith.constant 0 : i32
    %c0_i32_0 = arith.constant 0 : i32
    %c0_i32_1 = arith.constant 0 : i32
    return %arg0, %arg1, %c0_i32, %c0_i32_0 : i32, i32, i32, i32
  }
  func.func @transform_3(%arg0: i32, %arg1: i32) -> (i32, i32, i32, i32) {
    %c0_i32 = arith.constant 0 : i32
    %c0_i32_0 = arith.constant 0 : i32
    %c0_i32_1 = arith.constant 0 : i32
    return %arg0, %arg1, %c0_i32, %c0_i32_0 : i32, i32, i32, i32
  }
  func.func @transform_4(%arg0: i32, %arg1: i32) -> (i32, i32, i32, i32) {
    %c0_i32 = arith.constant 0 : i32
    %c0_i32_0 = arith.constant 0 : i32
    %c0_i32_1 = arith.constant 0 : i32
    return %arg0, %arg1, %c0_i32, %c0_i32_0 : i32, i32, i32, i32
  }
  func.func @transform_5(%arg0: i32, %arg1: i32) -> (i32, i32) {
    %c0_i32 = arith.constant 0 : i32
    %c0_i32_0 = arith.constant 0 : i32
    %c0_i32_1 = arith.constant 0 : i32
    return %c0_i32, %c0_i32_0 : i32, i32
  }
  func.func @transform_6(%arg0: i32, %arg1: i32) -> (i32, i32) {
    %c0_i32 = arith.constant 0 : i32
    %c0_i32_0 = arith.constant 0 : i32
    %c0_i32_1 = arith.constant 0 : i32
    return %c0_i32, %c0_i32_0 : i32, i32
  }
  func.func @transform_7(%arg0: i32, %arg1: i32) -> (i32, i32) {
    %c0_i32 = arith.constant 0 : i32
    %c0_i32_0 = arith.constant 0 : i32
    %c0_i32_1 = arith.constant 0 : i32
    return %c0_i32, %c0_i32_0 : i32, i32
  }
  func.func @transform_8(%arg0: i32, %arg1: i32) -> (i32, i32) {
    %c0_i32 = arith.constant 0 : i32
    %c0_i32_0 = arith.constant 0 : i32
    %c0_i32_1 = arith.constant 0 : i32
    return %c0_i32, %c0_i32_0 : i32, i32
  }
  func.func @transform_9(%arg0: i32, %arg1: i32) -> (i32, i32) {
    %c0_i32 = arith.constant 0 : i32
    %c0_i32_0 = arith.constant 0 : i32
    %c0_i32_1 = arith.constant 0 : i32
    return %c0_i32, %c0_i32_0 : i32, i32
  }
  func.func @transform_10(%arg0: i32, %arg1: i32) -> (i32, i32) {
    %c0_i32 = arith.constant 0 : i32
    %c0_i32_0 = arith.constant 0 : i32
    %c0_i32_1 = arith.constant 0 : i32
    return %c0_i32, %c0_i32_0 : i32, i32
  }
  func.func @transform_11(%arg0: i32, %arg1: i32) -> (i32, i32) {
    %c0_i32 = arith.constant 0 : i32
    %c0_i32_0 = arith.constant 0 : i32
    %c0_i32_1 = arith.constant 0 : i32
    return %c0_i32, %c0_i32_0 : i32, i32
  }
  func.func @transform_12(%arg0: i32, %arg1: i32) -> (i32, i32, i32, i32) {
    %c0_i32 = arith.constant 0 : i32
    %c0_i32_0 = arith.constant 0 : i32
    %c0_i32_1 = arith.constant 0 : i32
    return %arg0, %arg1, %c0_i32, %c0_i32_0 : i32, i32, i32, i32
  }
}

</mosaic_0001>

<bundles_post_ra>
// kernel: denoiser_forward.3
= control target key start
LH: loop header
LB: loop body
LE: loop exit
PB: predicated region body
PF: predicated region fallthrough
CT: control target
= control target key end

     0   :  { %s3052_s21 = smov 0   ;;  %s3054_s22 = smov 0   ;;  %s4408_s0 = inlined_call_operand.vmem [shape: f32[2,6,4,256], index: 0, kind: input, shape index: {}]   ;;  %s4409_s1 = inlined_call_operand.vmem [shape: f32[2,4,4,256], index: 1, kind: input, shape index: {}]   ;;  %s4410_s2 = inlined_call_operand.vmem [shape: f32[2,4,8,256], index: 2, kind: input, shape index: {}]   ;;  %s4411_s3 = inlined_call_operand.vmem [shape: f32[2,4,1,256], index: 3, kind: input, shape index: {}]   ;;  %s4412_s4 = inlined_call_operand.vmem [shape: f32[2,4,32,8], index: 4, kind: input, shape index: {}]   ;;  %s4413_s5 = inlined_call_operand.vmem [shape: f32[9,256], index: 5, kind: input, shape index: {}]   ;;  %s4414_s6 = inlined_call_operand.vmem [shape: bf16[32,108], index: 6, kind: input, shape index: {}]   ;;  %s4415_s7 = inlined_call_operand.vmem [shape: f32[32,1], index: 7, kind: input, shape index: {}]   ;;  %s4416_s8 = inlined_call_operand.vmem [shape: bf16[32,288], index: 8, kind: input, shape index: {}]   ;;  %s4417_s9 = inlined_call_operand.vmem [shape: f32[32,1], index: 9, kind: input, shape index: {}]   ;;  %s4418_s10 = inlined_call_operand.vmem [shape: bf16[8,288], index: 10, kind: input, shape index: {}]   ;;  %s4419_s11 = inlined_call_operand.vmem [shape: f32[8,1], index: 11, kind: input, shape index: {}]   ;;  %s4420_s12 = inlined_call_operand.vmem [shape: f32[2,4,8,128], index: 12, kind: output, shape index: {}]  }
   0x1   :  { %4432 = sst [smem:[#allocation11_spill]] %s4408_s0  ;;  %s3056_s23 = smov 0  }
   0x2   :  { %4433 = sst [smem:[#allocation12_spill]] %s4413_s5  ;;  %s3058_s24 = smov 0  }
   0x3   :  { %4434 = sst [smem:[#allocation13_spill]] %s4414_s6  ;;  %s3060_s25 = smov 0  }
   0x4   :  { %4435 = sst [smem:[#allocation14_spill]] %s4416_s8 }
   0x5   :  { %4436 = sst [smem:[#allocation15_spill]] %s4417_s9 }
   0x6   :  { %4437 = sst [smem:[#allocation16_spill]] %s4418_s10 }
   0x7   :  { %4438 = sst [smem:[#allocation17_spill]] %s4419_s11 }
   0x8 LB: > { %4439 = sst [smem:[#allocation5_spill]] %s2961_s23  ;;  %s31_s26 = sadd.s32 1, %s2961_s23  ;;  %s2969_s25 = sphi %s3060_s25, %s22_s25   ;;  %s2965_s24 = sphi %s3058_s24, %s4464_s24   ;;  %s2961_s23 = sphi %s3056_s23, %s4463_s23   ;;  %s2957_s22 = sphi %s3054_s22, %s4462_s22   ;;  %s2953_s21 = sphi %s3052_s21, %s4461_s21  }
   0x9   : > { %4440 = sst [smem:[#allocation6_spill]] %s2965_s24  ;;  %s34_s27 = sadd.s32 1, %s2965_s24 }
   0xa   : > { %4441 = sst [smem:[#allocation7_spill]] %s2969_s25  ;;  %p32_p0 = scmp.ge.s32.totalorder %s31_s26, 4 }
   0xb   : > { %p2653_p1 = scmp.ge.s32.totalorder %s2969_s25, 1  ;;  %p439_p2 = scmp.lt.s32.totalorder %s2969_s25, 9 }
   0xc   : > { %s4466_s26 = smov (%p32_p0, %s31_s26), 0  ;;  %s4468_s27 = smov (!%p32_p0, %s34_s27), %s2965_s24 }
   0xd   : > { %4442 = sst [smem:[#allocation8_spill]] %s4466_s26  ;;  %p440_p3 = pnand %p2653_p1, %p439_p2 }
   0xe   : > { %p36_p4 = scmp.ge.s32.totalorder %s4468_s27, 2 }
   0xf   : > { %443 = sbr.rel (%p440_p3) target bundleno = 1876 (0x754), region = 68 }
  0x10   : > { %s4470_s27 = smov (%p36_p4, %s4468_s27), 0 }
  0x11   : > { %4443 = sst [smem:[#allocation9_spill]] %s4470_s27 }
  0x16   : > { %p519_p5 = scmp.lt.s32.totalorder %s2957_s22, 1  ;;  %p526_p6 = scmp.lt.s32.totalorder %s2953_s21, 3 }
  0x17   : > { %s4444_s0 = sld [smem:[#allocation11_spill]]  ;;  %p2668_p7 = scmp.ne.s32.totalorder %s2953_s21, 0 }
  0x18   : > { %s4472_s22 = smov (!%p519_p5, %s2957_s22), 1 }
  0x19   : > { %s527_s28 = scalar_select %p526_p6, %s2953_s21, 3 }
  0x1a   : > { %s2739_s29 = smul.u32 48, %s4472_s22  ;;  %s2656_s30 = sshll.u32 %s4472_s22, 3 }
  0x1b   : > { %s2655_s13 = sshll.u32 %s527_s28, 1  ;;  %s2663_s14 = sshll.u32 %s527_s28, 2 }
  0x1c   : > { %s3091_s18 = sadd.s32 %s2656_s30, %s2655_s13  ;;  %s2664_s30 = sshll.u32 %s4472_s22, 4 }
  0x1d   : > { %s3089_s17 = scalar_lea.vmem %s4444_s0, %s2739_s29  ;;  %s2657_s19 = sshll.u32 %s3091_s18, 2 }
  0x1e   : > { %s2660_s20 = sshll.u32 %s3091_s18, 3  ;;  %s3098_s24 = scalar_lea.vmem %s4409_s1, %s2657_s19  ;;  %v572_v0 = vld [vmem:[%s3089_s17] sm:$0xff] (!%p2668_p7)  ;;  %v573_v1 = vld [vmem:[%s3089_s17 + $0x8] sm:$0xff] (!%p2668_p7) }
  0x1f   : > { %s541_s11 = scalar_lea.vmem %s4410_s2, %s2660_s20  ;;  %s549_s29 = scalar_lea.vmem %s4411_s3, %s3091_s18  ;;  %574 = vst [vmem:[#allocation2] sm:$0xff] (!%p2668_p7), %v572_v0  ;;  %575 = vst [vmem:[#allocation2 + $0x8] sm:$0xff] (!%p2668_p7), %v573_v1 }
  0x20   : > { %s556_s13 = sadd.s32 %s2664_s30, %s2663_s14  ;;  %s2666_s16 = sshll.u32 %s4472_s22, 2 }
  0x21   : > { %s2665_s0 = sshll.u32 %s556_s13, 3  ;;  %s564_s9 = sadd.s32 %s2666_s16, %s527_s28 }
  0x22   : > { %s3110_s5 = scalar_lea.vmem %s4412_s4, %s2665_s0  ;;  %s2667_s26 = sshll.u32 %s564_s9, 3 }
  0x23   : > { %s3115_s23 = scalar_lea.vmem %s4420_s12, %s2667_s26  ;;  %571 = sbr.rel (%p2668_p7) target bundleno = 42 (0x2a), region = 72 }
  0x2a PF: > { %v3121_v2 = vld [vmem:[%s3110_s5] sm:$0xff]  ;;  %s2718_s0 = sshll.u32 %s2953_s21, 3  ;;  %s2971_s6 = smov 126   ;;  %v4429_v26 = vmov 0   ;;  %v2981_v29 = vmov 1   ;;  %v577_v30 = vld [vmem:[%s3110_s5 + $0x8] sm:$0xff]  ;;  %v646_v51 = vlaneseq }
  0x2b   : > { %623 = vrot.lane.b32.xlu0 %v3121_v2, %s2971_s6  ;;  %v2823_v3 = vld [vmem:[%s541_s11] ss:$8 sps:$4 sm:$0xff]   ;;  %v2825_v4 = vld [vmem:[%s541_s11 + $0x4] ss:$8 sps:$4 sm:$0xff]   ;;  %s588_s8 = scalar_lea.vmem [#allocation2], %s2718_s0  ;;  %s2972_s9 = smov 16   ;;  %1018 = vmatprep.mubr.bf16.mxu0 %v4429_v26 }
  0x2c   : > { %v589_v5 = vld [vmem:[%s588_s8] sm:$0xff]  ;;  %v2672_v6 = vld [vmem:[%s588_s8 + $0x8] sm:$0xff]  ;;  %s2973_s10 = smov 17   ;;  %s2974_s11 = smov 15   ;;  %2816 = vset.pattern.permute.xlu1 %v4429_v26  ;;  %v1039_v28 = vadd.f32 1.0, %v3121_v2  ;;  %2817 = vset.pattern.permute.xlu0 %v2981_v29  ;;  %v1040_v32 = vadd.f32 1.0, %v577_v30 }
  0x2d   : > { %v594_v7 = vadd.f32 %v2823_v3, %v589_v5  ;;  %v608_v8 = vadd.f32 %v2825_v4, %v2672_v6  ;;  %s2975_s22 = smov 1   ;;  %s2976_s25 = smov 127   ;;  %v620_v17 = vld [vmem:[%s3098_s24] sm:$0xff]  ;;  %v939_v31 = vld [vmem:[%s4415_s7 + $0x8] sm:$0xff]  ;;  %v940_v33 = vld [vmem:[%s4415_s7 + $0x10] sm:$0xff]  ;;  %v3199_v53 = vshrl.u32 %v646_v51, 7 }
  0x2e   : > { %s3139_s28 = scalar_lea.vmem %s3089_s17, %s2718_s0  ;;  %s2977_s21 = smov 113   ;;  %v938_v27 = vld [vmem:[%s4415_s7] sm:$0xff]  ;;  %v579_v34 = vld [vmem:[%s3110_s5 + $0x18] sm:$0xff]  ;;  %v578_v38 = vld [vmem:[%s3110_s5 + $0x10] sm:$0xff]  ;;  %v3201_v55 = vand.u32 127, %v646_v51  ;;  %vm979_vm8 = vcmask 1045504  }
  0x2f   : > { %v595_v9 = vmul.f32 2.0, %v594_v7  ;;  %v609_v10 = vmul.f32 2.0, %v608_v8  ;;  %v2674_v16 = vld [vmem:[%s3139_s28 + $0x10] sm:$0xff]  ;;  %s2978_s24 = smov 112   ;;  %s2979_s17 = smov 111   ;;  %v941_v35 = vld [vmem:[%s4415_s7 + $0x18] sm:$0xff] }
  0x30   : > { %v3143_v18 = vadd.f32 %v2674_v16, %v620_v17  ;;  %v1042_v36 = vadd.f32 1.0, %v579_v34  ;;  %v1041_v40 = vadd.f32 1.0, %v578_v38  ;;  %4445 = vst [vmem:[#allocation10_spill] sm:$0xff] %v3199_v53  ;;  %v3206_v57 = vsub.s32 1, %v3199_v53  ;;  %s4446_s8 = sld [smem:[#allocation12_spill]]  ;;  %s4447_s19 = sld [smem:[#allocation13_spill]] }
  0x31   : > { %v597_v11 = vcombine.high %v595_v9, %v595_v9  ;;  %614 = vst [vmem:[#allocation3 + $0x8] sm:$0xf0] %v609_v10  ;;  %599 = vst [vmem:[#allocation3] sm:$0xf] %v595_v9  ;;  %v611_v12 = vcombine.low %v609_v10, %v609_v10  ;;  %vm677_vm0 = vcmp.lt.s32.totalorder %v3201_v55, 16  ;;  %v3222_v61 = vsub.s32 0, %v3199_v53 }
  0x32   : > { %vm648_vm1 = vcmp.lt.s32.totalorder %v3201_v55, 17  ;;  %v721_v3 = vsub.s32 2, %v3199_v53  ;;  %vm714_vm2 = vcmp.lt.s32.totalorder %v3201_v55, 15  ;;  %vm751_vm3 = vcmp.lt.s32.totalorder %v3201_v55, 1  ;;  %s4448_s15 = sld [smem:[#allocation14_spill]]  ;;  %s4449_s16 = sld [smem:[#allocation15_spill]] }
  0x33   : > { %600 = vst [vmem:[#allocation3 + $0x8] sm:$0xf] %v597_v11  ;;  %613 = vst [vmem:[#allocation3] sm:$0xf0] %v611_v12  ;;  %v758_v17 = vsub.s32 3, %v3199_v53  ;;  %vm790_vm4 = vcmp.lt.s32.totalorder %v3201_v55, 127 }
  0x34   : > { %vm827_vm5 = vcmp.lt.s32.totalorder %v3201_v55, 113  ;;  %vm864_vm6 = vcmp.lt.s32.totalorder %v3201_v55, 112  ;;  %vm899_vm7 = vcmp.lt.s32.totalorder %v3201_v55, 111  ;;  %vm972_vm9 = vcmask 883712   ;;  %s2982_s26 = smov 125   ;;  %s2985_s18 = smov 124  }
  0x35   : > { %vm1580_vm10 = vcmask 261120   ;;  %vm2236_vm11 = vcmask 1043456   ;;  %vm2357_vm12 = vcmask 1040384   ;;  %vm2461_vm14 = vcmp.eq.s32.totalorder %v3201_v55, 0 }
  0x36   : > { %v3211_v58 = vld [vmem:[%s4446_s8] sm:$0xff]  ;;  %v3218_v60 = vld [vmem:[%s4446_s8 + $0x8] sm:$0xff]  ;;  %vm2464_vm15 = vcmp.eq.s32.totalorder %v3201_v55, 1 }
  0x37   : > { %v3228_v63 = vrot.slane %v3211_v58, %v3206_v57  ;;  %v3233_v0 = vrot.slane %v3218_v60, %v3206_v57  ;;  %v3244_v5 = vrot.slane %v3211_v58, %v3222_v61  ;;  %v3248_v6 = vrot.slane %v3218_v60, %v3222_v61 }
  0x38   : > { %v3264_v16 = vrot.slane %v3211_v58, %v721_v3 }
  0x3a   : > { %v635_v13 = vld [vmem:[#allocation3 + $0x8] sm:$0xff]  ;;  %v634_v14 = vld [vmem:[#allocation3] sm:$0xff] }
  0x3b   : > { %673 = vrot.lane.b32.xlu1 %v635_v13, %s2972_s9  ;;  %669 = vrot.lane.b32.xlu0 %v634_v14, %s2972_s9 }
  0x3f   : > { %638 = vrot.lane.b32.xlu1 %v634_v14, %s2973_s10 }
  0x43   : > { %642 = vrot.lane.b32.xlu1 %v635_v13, %s2973_s10 }
  0x47   : > { %706 = vrot.lane.b32.xlu1 %v634_v14, %s2974_s11 }
  0x4b   : > { %710 = vrot.lane.b32.xlu1 %v635_v13, %s2974_s11 }
  0x4f   : > { %743 = vrot.lane.b32.xlu1 %v634_v14, %s2975_s22 }
  0x53   : > { %747 = vrot.lane.b32.xlu1 %v635_v13, %s2975_s22 }
  0x57   : > { %782 = vrot.lane.b32.xlu1 %v634_v14, %s2976_s25 }
  0x9d   : > { %v624_v15 = vpop.permute.xlu0 %623 }
  0x9e   : > { %2740 = vpush %v624_v15 }
  0xad   : > { %v674_v37 = vpop.permute.xlu1 %673  ;;  %v670_v44 = vpop.permute.xlu0 %669 }
  0xae   : > { %v680_v1 = vsel %vm677_vm0, %v674_v37, %v670_v44  ;;  %v678_v4 = vsel %vm677_vm0, %v670_v44, %v674_v37  ;;  %v797_v37 = vsub.s32 5, %v3199_v53 }
  0xaf   : > { %v690_v9 = vmul.f32 %v3228_v63, %v680_v1 }
  0xb1   : > { %v639_v39 = vpop.permute.xlu1 %638 }
  0xb5   : > { %v643_v41 = vpop.permute.xlu1 %642 }
  0xb6   : > { %v651_v8 = vsel %vm648_vm1, %v643_v41, %v639_v39  ;;  %v649_v12 = vsel %vm648_vm1, %v639_v39, %v643_v41 }
  0xb9   : > { %v707_v42 = vpop.permute.xlu1 %706 }
  0xbd   : > { %v711_v43 = vpop.permute.xlu1 %710 }
  0xc1   : > { %v744_v45 = vpop.permute.xlu1 %743 }
  0xc5   : > { %v748_v47 = vpop.permute.xlu1 %747 }
  0xc6   : > { %v754_v39 = vsel %vm751_vm3, %v748_v47, %v744_v45 }
  0xc9   : > { %v3193_v49 = vpop.permute.xlu1 %782 }
  0xcf   : > { %s2741_s14 = spop %2740 }
  0xd0   : > { %v626_v19 = vstv %s2741_s14 }
  0xd1   : > { %v628_v20 = vmul.f32 %v626_v19, %v3143_v18  ;;  %v661_v19 = vmul.f32 %v3244_v5, %v651_v8 }
  0xd3   : > { %v630_v21 = vcombine.high %v628_v20, %v628_v20  ;;  %632 = vst [vmem:[#allocation3 + $0x10] sm:$0xf] %v628_v20  ;;  %v3270_v20 = vrot.slane %v3218_v60, %v721_v3 }
  0xd5   : > { %633 = vst [vmem:[#allocation3 + $0x18] sm:$0xf] %v630_v21 }
  0xda   : > { %v636_v22 = vld [vmem:[#allocation3 + $0x10] sm:$0xf] }
  0xdb   : > { %640 = vrot.lane.b32.xlu0 %v636_v22, %s2973_s10  ;;  %671 = vrot.lane.b32.xlu1 %v636_v22, %s2972_s9  ;;  %v778_v23 = vpack.c.bf16 %v636_v22, %v634_v14 }
  0xdc   : > { %v637_v24 = vld [vmem:[#allocation3 + $0x18] sm:$0xf] }
  0xdd   : > { %v779_v25 = vpack.c.bf16 %v637_v24, %v635_v13  ;;  %780 = vst [vmem:[#allocation4 + $0x30] sm:$0x3f] %v778_v23 }
  0xdf   : > { %708 = vrot.lane.b32.xlu0 %v636_v22, %s2974_s11  ;;  %786 = vrot.lane.b32.xlu1 %v635_v13, %s2976_s25  ;;  %781 = vst [vmem:[#allocation4 + $0x38] sm:$0x3f] %v779_v25  ;;  %v662_v25 = vmul.f32 %v3248_v6, %v649_v12 }
  0xe3   : > { %745 = vrot.lane.b32.xlu0 %v636_v22, %s2975_s22  ;;  %819 = vrot.lane.b32.xlu1 %v634_v14, %s2977_s21 }
  0xe7   : > { %784 = vrot.lane.b32.xlu0 %v636_v22, %s2976_s25  ;;  %823 = vrot.lane.b32.xlu1 %v635_v13, %s2977_s21 }
  0xeb   : > { %821 = vrot.lane.b32.xlu0 %v636_v22, %s2977_s21  ;;  %856 = vrot.lane.b32.xlu1 %v634_v14, %s2978_s24 }
  0xef   : > { %858 = vrot.lane.b32.xlu0 %v636_v22, %s2978_s24  ;;  %860 = vrot.lane.b32.xlu1 %v635_v13, %s2978_s24 }
  0xf3   : > { %675 = vrot.lane.b32.xlu0 %v637_v24, %s2972_s9  ;;  %891 = vrot.lane.b32.xlu1 %v634_v14, %s2979_s17 }
  0xf7   : > { %644 = vrot.lane.b32.xlu0 %v637_v24, %s2973_s10  ;;  %895 = vrot.lane.b32.xlu1 %v635_v13, %s2979_s17  ;;  %v691_v13 = vmul.f32 %v3233_v0, %v678_v4  ;;  %v3308_v4 = vrot.slane %v3211_v58, %v797_v37 }
  0xfb   : > { %712 = vrot.lane.b32.xlu0 %v637_v24, %s2974_s11  ;;  %944 = vperm.xlu1 %2816, %v938_v27   ;;  %v717_v27 = vsel %vm714_vm2, %v711_v43, %v707_v42 }
  0xff   : > { %749 = vrot.lane.b32.xlu0 %v637_v24, %s2975_s22  ;;  %1045 = vperm.xlu1 %2816, %v1039_v28  }
 0x103   : > { %788 = vrot.lane.b32.xlu0 %v637_v24, %s2976_s25  ;;  %1050 = vperm.xlu1 %2816, %v1040_v32  }
 0x107   : > { %825 = vrot.lane.b32.xlu0 %v637_v24, %s2977_s21  ;;  %959 = vperm.xlu1 %2816, %v941_v35   ;;  %v3284_v35 = vrot.slane %v3211_v58, %v758_v17 }
 0x109   : > { %v764_v1 = vmul.f32 %v3284_v35, %v754_v39 }
 0x10b   : > { %862 = vrot.lane.b32.xlu0 %v637_v24, %s2978_s24  ;;  %2819 = vset.pattern.permute.xlu1 %v2981_v29 }
 0x10c   : > { %1077 = vperm.xlu1 %2819, %v577_v30  }
 0x10f   : > { %893 = vrot.lane.b32.xlu0 %v636_v22, %s2979_s17 }
 0x110   : > { %2820 = vset.pattern.permute.xlu1 %v4429_v26 }
 0x111   : > { %1055 = vperm.xlu1 %2820, %v1041_v40  }
 0x113   : > { %897 = vrot.lane.b32.xlu0 %v637_v24, %s2979_s17 }
 0x115   : > { %2821 = vset.pattern.permute.xlu1 %v2981_v29 }
 0x116   : > { %1082 = vperm.xlu1 %2821, %v578_v38   ;;  %v752_v38 = vsel %vm751_vm3, %v744_v45, %v748_v47 }
 0x117   : > { %1072 = vperm.xlu0 %2817, %v3121_v2  }
 0x11a   : > { %1087 = vperm.xlu1 %2821, %v579_v34   ;;  %v715_v34 = vsel %vm714_vm2, %v707_v42, %v711_v43  ;;  %v727_v42 = vmul.f32 %v3264_v16, %v717_v27 }
 0x11b   : > { %2818 = vset.pattern.permute.xlu0 %v4429_v26  ;;  %v728_v51 = vmul.f32 %v3270_v20, %v715_v34 }
 0x11c   : > { %949 = vperm.xlu0 %2818, %v939_v31  }
 0x11e   : > { %2822 = vset.pattern.permute.xlu1 %v4429_v26 }
 0x120   : > { %954 = vperm.xlu0 %2818, %v940_v33  }
 0x124   : > { %1060 = vperm.xlu0 %2818, %v1042_v36   ;;  %v3287_v36 = vrot.slane %v3218_v60, %v758_v17 }
 0x126   : > { %v765_v3 = vmul.f32 %v3287_v36, %v752_v38 }
 0x14d   : > { %v641_v46 = vpop.permute.xlu0 %640  ;;  %v672_v54 = vpop.permute.xlu1 %671 }
 0x151   : > { %v3191_v48 = vpop.permute.xlu0 %708  ;;  %v3213_v59 = vpop.permute.xlu1 %786 }
 0x152   : > { %v793_v12 = vsel %vm790_vm4, %v3213_v59, %v3193_v49 }
 0x155   : > { %v3195_v50 = vpop.permute.xlu0 %745  ;;  %v3237_v2 = vpop.permute.xlu1 %819 }
 0x159   : > { %v3197_v52 = vpop.permute.xlu0 %784  ;;  %v824_v24 = vpop.permute.xlu1 %823 }
 0x15d   : > { %v3203_v56 = vpop.permute.xlu0 %821 }
 0x161   : > { %v3224_v62 = vpop.permute.xlu0 %858 }
 0x165   : > { %v676_v7 = vpop.permute.xlu0 %675 }
 0x166   : > { %v679_v10 = vsel %vm677_vm0, %v672_v54, %v676_v7  ;;  %v681_v11 = vsel %vm677_vm0, %v676_v7, %v672_v54  ;;  %v857_v54 = vpop.permute.xlu1 %856  ;;  %v3312_v7 = vrot.slane %v3218_v60, %v797_v37 }
 0x167   : > { %v692_v14 = vmul.f32 %v3228_v63, %v681_v11  ;;  %v693_v15 = vmul.f32 %v3233_v0, %v679_v10  ;;  %v791_v11 = vsel %vm790_vm4, %v3193_v49, %v3213_v59  ;;  %v871_v49 = vsub.s32 7, %v3199_v53 }
 0x168   : > { %v803_v59 = vmul.f32 %v3308_v4, %v791_v11 }
 0x169   : > { %v694_v21 = vpack.c.bf16 %v692_v14, %v690_v9  ;;  %v695_v22 = vpack.c.bf16 %v693_v15, %v691_v13  ;;  %v645_v23 = vpop.permute.xlu0 %644 }
 0x16a   : > { %v650_v28 = vsel %vm648_vm1, %v641_v46, %v645_v23  ;;  %v652_v29 = vsel %vm648_vm1, %v645_v23, %v641_v46 }
 0x16b   : > { %v698_v30 = vrot.slane %v694_v21, 2  ;;  %v699_v31 = vrot.slane %v695_v22, 2  ;;  %v663_v32 = vmul.f32 %v3244_v5, %v652_v29  ;;  %v664_v33 = vmul.f32 %v3248_v6, %v650_v28  ;;  %v861_v29 = vpop.permute.xlu1 %860 }
 0x16d   : > { %702 = vst [vmem:[#allocation4 + $0x10] ss:$-12 sps:$4 sm:$0xcf] %v698_v30   ;;  %703 = vst [vmem:[#allocation4 + $0x18] ss:$-12 sps:$4 sm:$0xcf] %v699_v31   ;;  %v665_v40 = vpack.c.bf16 %v663_v32, %v661_v19  ;;  %v666_v41 = vpack.c.bf16 %v664_v33, %v662_v25  ;;  %v713_v44 = vpop.permute.xlu0 %712  ;;  %v828_v30 = vsel %vm827_vm5, %v3237_v2, %v824_v24 }
 0x16e   : > { %v716_v43 = vsel %vm714_vm2, %v3191_v48, %v713_v44  ;;  %v718_v46 = vsel %vm714_vm2, %v713_v44, %v3191_v48  ;;  %v834_v48 = vsub.s32 6, %v3199_v53  ;;  %v830_v31 = vsel %vm827_vm5, %v824_v24, %v3237_v2 }
 0x16f   : > { %667 = vst [vmem:[#allocation4] sm:$0x3f] %v665_v40  ;;  %668 = vst [vmem:[#allocation4 + $0x8] sm:$0x3f] %v666_v41  ;;  %v729_v45 = vmul.f32 %v3264_v16, %v718_v46  ;;  %v730_v47 = vmul.f32 %v3270_v20, %v716_v43  ;;  %v3356_v2 = vrot.slane %v3211_v58, %v871_v49 }
 0x170   : > { %v3332_v22 = vrot.slane %v3211_v58, %v834_v48  ;;  %v3335_v23 = vrot.slane %v3218_v60, %v834_v48  ;;  %v3359_v24 = vrot.slane %v3218_v60, %v871_v49 }
 0x171   : > { %v731_v8 = vpack.c.bf16 %v729_v45, %v727_v42  ;;  %v732_v9 = vpack.c.bf16 %v730_v47, %v728_v51  ;;  %v750_v10 = vpop.permute.xlu0 %749  ;;  %v865_v51 = vsel %vm864_vm6, %v857_v54, %v861_v29  ;;  %v867_v45 = vsel %vm864_vm6, %v861_v29, %v857_v54 }
 0x172   : > { %v753_v13 = vsel %vm751_vm3, %v3195_v50, %v750_v10  ;;  %v755_v14 = vsel %vm751_vm3, %v750_v10, %v3195_v50  ;;  %v804_v50 = vmul.f32 %v3312_v7, %v793_v12  ;;  %v840_v44 = vmul.f32 %v3332_v22, %v828_v30 }
 0x173   : > { %v735_v15 = vrot.slane %v731_v8, 4  ;;  %v736_v17 = vrot.slane %v732_v9, 4  ;;  %v766_v19 = vmul.f32 %v3284_v35, %v755_v14  ;;  %v767_v21 = vmul.f32 %v3287_v36, %v753_v13  ;;  %v892_v8 = vpop.permute.xlu1 %891 }
 0x174   : > { %v877_v13 = vmul.f32 %v3356_v2, %v865_v51  ;;  %v878_v14 = vmul.f32 %v3359_v24, %v867_v45 }
 0x175   : > { %739 = vst [vmem:[#allocation4 + $0x20] ss:$-12 sps:$4 sm:$0xf3] %v735_v15   ;;  %740 = vst [vmem:[#allocation4 + $0x28] ss:$-12 sps:$4 sm:$0xf3] %v736_v17   ;;  %v768_v25 = vpack.c.bf16 %v766_v19, %v764_v1  ;;  %v769_v27 = vpack.c.bf16 %v767_v21, %v765_v3  ;;  %v789_v28 = vpop.permute.xlu0 %788 }
 0x176   : > { %v792_v32 = vsel %vm790_vm4, %v3197_v52, %v789_v28  ;;  %v794_v33 = vsel %vm790_vm4, %v789_v28, %v3197_v52  ;;  %v921_v34 = vld [vmem:[#allocation4 + $0x8] sm:$0xff]  ;;  %v920_v37 = vld [vmem:[#allocation4] sm:$0xff]  ;;  %v841_v52 = vmul.f32 %v3335_v23, %v830_v31 }
 0x177   : > { %v772_v38 = vrot.slane %v768_v25, 6  ;;  %v773_v39 = vrot.slane %v769_v27, 6  ;;  %v805_v40 = vmul.f32 %v3308_v4, %v792_v32  ;;  %v806_v41 = vmul.f32 %v3312_v7, %v794_v33  ;;  %986 = vmatprep.subr.bf16.mxu0 %v921_v34  ;;  %v896_v28 = vpop.permute.xlu1 %895  ;;  %v3389_v31 = vld [vmem:[%s4446_s8 + $0x10] ss:$0 sm:$0xff]  ;;  %v3394_v32 = vld [vmem:[%s4446_s8 + $0x18] ss:$0 sm:$0xff] }
 0x178   : > { %987 = vmatpush1.bf16.msra.mxu0 %v920_v37  ;;  %v900_v33 = vsel %vm899_vm7, %v892_v8, %v896_v28  ;;  %v902_v34 = vsel %vm899_vm7, %v896_v28, %v892_v8  ;;  %v2826_v8 = vld [vmem:[%s4447_s19] sm:$0xff]  }
 0x179   : > { %776 = vst [vmem:[#allocation4 + $0x20] sm:$0xfc] %v772_v38  ;;  %777 = vst [vmem:[#allocation4 + $0x28] sm:$0xfc] %v773_v39  ;;  %v807_v42 = vpack.c.bf16 %v805_v40, %v803_v59  ;;  %v808_v43 = vpack.c.bf16 %v806_v41, %v804_v50  ;;  %v826_v46 = vpop.permute.xlu0 %825 }
 0x17a   : > { %v829_v58 = vsel %vm827_vm5, %v3203_v56, %v826_v46  ;;  %v831_v60 = vsel %vm827_vm5, %v826_v46, %v3203_v56 }
 0x17b   : > { %v811_v47 = vrot.slane %v807_v42, 2  ;;  %v812_v1 = vrot.slane %v808_v43, 2  ;;  %v842_v3 = vmul.f32 %v3332_v22, %v829_v58  ;;  %v843_v48 = vmul.f32 %v3335_v23, %v831_v60 }
 0x17c   : > { %v923_v9 = vld [vmem:[#allocation4 + $0x18] sm:$0xff]  ;;  %v922_v10 = vld [vmem:[#allocation4 + $0x10] sm:$0xff] }
 0x17d   : > { %815 = vst [vmem:[#allocation4 + $0x40] ss:$-12 sps:$4 sm:$0xcf] %v811_v47   ;;  %816 = vst [vmem:[#allocation4 + $0x48] ss:$-12 sps:$4 sm:$0xcf] %v812_v1   ;;  %v844_v54 = vpack.c.bf16 %v842_v3, %v840_v44  ;;  %v845_v11 = vpack.c.bf16 %v843_v48, %v841_v52  ;;  %988 = vmatprep.subr.bf16.mxu0 %v923_v9  ;;  %v863_v12 = vpop.permute.xlu0 %862  ;;  %v912_v44 = vmul.f32 %v3389_v31, %v900_v33 }
 0x17e   : > { %v866_v56 = vsel %vm864_vm6, %v3224_v62, %v863_v12  ;;  %v868_v15 = vsel %vm864_vm6, %v863_v12, %v3224_v62  ;;  %989 = vmatpush1.bf16.msra.mxu0 %v922_v10  ;;  %v913_v52 = vmul.f32 %v3394_v32, %v902_v34  ;;  %v2827_v9 = vld [vmem:[%s4447_s19 + $0x8] sm:$0xff]   ;;  %v945_v10 = vpop.permute.xlu1 %944 }
 0x17f   : > { %v848_v17 = vrot.slane %v844_v54, 4  ;;  %v849_v19 = vrot.slane %v845_v11, 4  ;;  %v879_v21 = vmul.f32 %v3356_v2, %v866_v56  ;;  %v880_v49 = vmul.f32 %v3359_v24, %v868_v15 }
 0x180   : > { %v925_v59 = vld [vmem:[#allocation4 + $0x28] sm:$0xff]  ;;  %v924_v50 = vld [vmem:[#allocation4 + $0x20] sm:$0xff] }
 0x181   : > { %852 = vst [vmem:[#allocation4 + $0x50] ss:$-12 sps:$4 sm:$0xf3] %v848_v17   ;;  %853 = vst [vmem:[#allocation4 + $0x58] ss:$-12 sps:$4 sm:$0xf3] %v849_v19   ;;  %v881_v25 = vpack.c.bf16 %v879_v21, %v877_v13  ;;  %v882_v27 = vpack.c.bf16 %v880_v49, %v878_v14  ;;  %990 = vmatprep.subr.bf16.mxu0 %v925_v59  ;;  %v894_v29 = vpop.permute.xlu0 %893 }
 0x182   : > { %991 = vmatpush1.bf16.msra.mxu0 %v924_v50  ;;  %v1046_v54 = vpop.permute.xlu1 %1045 }
 0x183   : > { %v885_v62 = vrot.slane %v881_v25, 6  ;;  %v886_v30 = vrot.slane %v882_v27, 6 }
 0x184   : > { %v927_v37 = vld [vmem:[#allocation4 + $0x38] sm:$0xff]  ;;  %v926_v38 = vld [vmem:[#allocation4 + $0x30] sm:$0xff] }
 0x185   : > { %889 = vst [vmem:[#allocation4 + $0x50] sm:$0xfc] %v885_v62  ;;  %890 = vst [vmem:[#allocation4 + $0x58] sm:$0xfc] %v886_v30  ;;  %992 = vmatprep.subr.bf16.mxu0 %v927_v37  ;;  %v898_v39 = vpop.permute.xlu0 %897 }
 0x186   : > { %v901_v40 = vsel %vm899_vm7, %v894_v29, %v898_v39  ;;  %v903_v41 = vsel %vm899_vm7, %v898_v39, %v894_v29  ;;  %993 = vmatpush1.bf16.msra.mxu0 %v926_v38  ;;  %v1051_v12 = vpop.permute.xlu1 %1050 }
 0x187   : > { %v914_v42 = vmul.f32 %v3389_v31, %v901_v40  ;;  %v915_v43 = vmul.f32 %v3394_v32, %v903_v41 }
 0x188   : > { %v929_v46 = vld [vmem:[#allocation4 + $0x48] sm:$0xff]  ;;  %v928_v51 = vld [vmem:[#allocation4 + $0x40] sm:$0xff] }
 0x189   : > { %v916_v45 = vpack.c.bf16 %v914_v42, %v912_v44  ;;  %v917_v58 = vpack.c.bf16 %v915_v43, %v913_v52  ;;  %994 = vmatprep.subr.bf16.mxu0 %v929_v46 }
 0x18a   : > { %995 = vmatpush1.bf16.msra.mxu0 %v928_v51  ;;  %v960_v17 = vpop.permute.xlu1 %959 }
 0x18b   : > { %918 = vst [vmem:[#allocation4 + $0x60] sm:$0x3f] %v916_v45  ;;  %919 = vst [vmem:[#allocation4 + $0x68] sm:$0x3f] %v917_v58 }
 0x18c   : > { %v931_v60 = vld [vmem:[#allocation4 + $0x58] sm:$0xff]  ;;  %v930_v47 = vld [vmem:[#allocation4 + $0x50] sm:$0xff] }
 0x18d   : > { %996 = vmatprep.subr.bf16.mxu0 %v931_v60 }
 0x18e   : > { %997 = vmatpush1.bf16.msra.mxu0 %v930_v47  ;;  %v1078_v27 = vpop.permute.xlu1 %1077 }
 0x192   : > { %v933_v1 = vld [vmem:[#allocation4 + $0x68] sm:$0x3f]  ;;  %v932_v3 = vld [vmem:[#allocation4 + $0x60] sm:$0x3f]  ;;  %v1056_v42 = vpop.permute.xlu1 %1055 }
 0x193   : > { %2679 = vmatprep.subr.msk.bf16.mxu0 %vm979_vm8, %v933_v1  ;;  %v981_v48 = vsel %vm979_vm8, %v932_v3, 0 }
 0x194   : > { %999 = vmatpush1.bf16.msra.mxu0 %v981_v48 }
 0x196   : > { %v1073_v11 = vpop.permute.xlu0 %1072  ;;  %v1083_v3 = vpop.permute.xlu1 %1082 }
 0x197   : > { %2680 = vmatmul.mubr.msk.bf16.vlgmr.msra.gmra.mrb[0].mxu0 %vm972_vm9, %v2826_v8 }
 0x198   : > { %1028 = vmatprep.mubr.bf16.mxu0 %v4429_v26 }
 0x19b   : > { %v950_v14 = vpop.permute.xlu0 %949 }
 0x19f   : > { %2681 = vmatmul.mubr.msk.bf16.gmra.mrb[4].mxu0 %vm972_vm9, %v2827_v9  ;;  %v955_v60 = vpop.permute.xlu0 %954 }
 0x1a3   : > { %v1061_v9 = vpop.permute.xlu0 %1060 }
 0x26a   : > { %v1020_v13 = vpop.f32.mrb[0].mxu0 }
 0x26b   : > { %v1021_v56 = vadd.f32 %v1020_v13, %v945_v10  ;;  %v1022_v15 = vpop.f32.mrb[1].mxu0 }
 0x26c   : > { %v1024_v19 = vpop.f32.mrb[2].mxu0  ;;  %v1023_v29 = vadd.f32 %v1022_v15, %v945_v10 }
 0x26d   : > { %v1063_v21 = vmul.f32 %v1046_v54, %v1021_v56  ;;  %v1025_v49 = vadd.f32 %v1024_v19, %v950_v14  ;;  %v1026_v59 = vpop.f32.mrb[3].mxu0 }
 0x26e   : > { %v1027_v34 = vadd.f32 %v1026_v59, %v950_v14  ;;  %v1064_v39 = vmul.f32 %v1046_v54, %v1023_v29  ;;  %v1088_v54 = vpop.permute.xlu1 %1087 }
 0x26f   : > { %v1090_v50 = vadd.f32 %v1073_v11, %v1063_v21  ;;  %v1065_v25 = vmul.f32 %v1051_v12, %v1025_v49 }
 0x270   : > { %v1066_v41 = vmul.f32 %v1051_v12, %v1027_v34  ;;  %v1091_v44 = vadd.f32 %v1073_v11, %v1064_v39 }
 0x271   : > { %v2682_v28 = vmul.f32 -1.442695, %v1090_v50  ;;  %v1092_v62 = vadd.f32 %v1078_v27, %v1065_v25 }
 0x272   : > { %v1030_v30 = vpop.f32.mrb[4].mxu0  ;;  %v1093_v52 = vadd.f32 %v1078_v27, %v1066_v41  ;;  %v2683_v46 = vmul.f32 -1.442695, %v1091_v44 }
 0x273   : > { %2839 = vpow2.f32 %v2682_v28  ;;  %v2684_v33 = vmul.f32 -1.442695, %v1092_v62  ;;  %v1032_v37 = vpop.f32.mrb[5].mxu0  ;;  %v1031_v1 = vadd.f32 %v1030_v30, %v955_v60 }
 0x274   : > { %v1034_v38 = vpop.f32.mrb[6].mxu0  ;;  %v2685_v58 = vmul.f32 -1.442695, %v1093_v52  ;;  %v1033_v28 = vadd.f32 %v1032_v37, %v955_v60 }
 0x275   : > { %2841 = vpow2.f32 %v2684_v33  ;;  %v1036_v40 = vpop.f32.mrb[7].mxu0  ;;  %v1035_v48 = vadd.f32 %v1034_v38, %v960_v17  ;;  %v1067_v8 = vmul.f32 %v1056_v42, %v1031_v1 }
 0x276   : > { %v1068_v29 = vmul.f32 %v1056_v42, %v1033_v28  ;;  %v1527_v28 = vld [vmem:[%s4449_s16 + $0x8] sm:$0xff] }
 0x277   : > { %v1069_v10 = vmul.f32 %v1061_v9, %v1035_v48  ;;  %v1094_v11 = vadd.f32 %v1083_v3, %v1067_v8 }
 0x278   : > { %v1095_v30 = vadd.f32 %v1083_v3, %v1068_v29  ;;  %v1529_v29 = vld [vmem:[%s4449_s16 + $0x18] sm:$0xff] }
 0x279   : > { %v1096_v56 = vadd.f32 %v1088_v54, %v1069_v10  ;;  %v2686_v49 = vmul.f32 -1.442695, %v1094_v11  ;;  %v2830_v10 = vld [vmem:[%s4448_s15 + $0x4] ss:$12 sps:$4 sm:$0xff]  }
 0x27a   : > { %v2687_v38 = vmul.f32 -1.442695, %v1095_v30  ;;  %1619 = vmatprep.mubr.bf16.mxu1 %v2830_v10 }
 0x27b   : > { %v2688_v25 = vmul.f32 -1.442695, %v1096_v56 }
 0x27d   : > { %v2840_v43 = vpop.eup %2839 }
 0x27e   : > { %v1122_v51 = vadd.f32 1.0, %v2840_v43 }
 0x27f   : > { %v2842_v45 = vpop.eup %2841 }
 0x280   : > { %2843 = vrcp.f32 %v1122_v51  ;;  %v1124_v47 = vadd.f32 1.0, %v2842_v45 }
 0x281   : > { %2845 = vpow2.f32 %v2683_v46 }
 0x282   : > { %2847 = vrcp.f32 %v1124_v47 }
 0x283   : > { %2849 = vpow2.f32 %v2685_v58 }
 0x284   : > { %2851 = vpow2.f32 %v2686_v49 }
 0x28a   : > { %v2844_v12 = vpop.eup %2843 }
 0x28b   : > { %v2846_v13 = vpop.eup %2845  ;;  %v3415_v14 = vmul.f32 %v2844_v12, %v1090_v50  ;;  %v1037_v50 = vadd.f32 %v1036_v40, %v960_v17 }
 0x28c   : > { %v2848_v15 = vpop.eup %2847  ;;  %v1123_v59 = vadd.f32 1.0, %v2846_v13 }
 0x28d   : > { %v2850_v19 = vpop.eup %2849  ;;  %v3417_v21 = vmul.f32 %v2848_v15, %v1092_v62  ;;  %1154 = vrot.lane.b32.xlu0 %v3415_v14, %s2973_s10  ;;  %v1070_v62 = vmul.f32 %v1061_v9, %v1037_v50 }
 0x28e   : > { %v1125_v27 = vadd.f32 1.0, %v2850_v19  ;;  %2853 = vrcp.f32 %v1123_v59  ;;  %v2852_v33 = vpop.eup %2851  ;;  %v1526_v19 = vld [vmem:[%s4449_s16] sm:$0xff] }
 0x28f   : > { %1156 = vrot.lane.b32.xlu1 %v3417_v21, %s2973_s10  ;;  %2855 = vpow2.f32 %v2688_v25  ;;  %v1097_v34 = vadd.f32 %v1088_v54, %v1070_v62  ;;  %v1126_v40 = vadd.f32 1.0, %v2852_v33  ;;  %v1528_v25 = vld [vmem:[%s4449_s16 + $0x10] sm:$0xff] }
 0x290   : > { %2857 = vrcp.f32 %v1125_v27 }
 0x291   : > { %1194 = vrot.lane.b32.xlu0 %v3415_v14, %s2972_s9  ;;  %v2689_v42 = vmul.f32 -1.442695, %v1097_v34  ;;  %2859 = vpow2.f32 %v2687_v38 }
 0x292   : > { %2861 = vrcp.f32 %v1126_v40 }
 0x293   : > { %1196 = vrot.lane.b32.xlu1 %v3417_v21, %s2972_s9  ;;  %2863 = vpow2.f32 %v2689_v42 }
 0x295   : > { %1234 = vrot.lane.b32.xlu0 %v3415_v14, %s2974_s11 }
 0x297   : > { %1236 = vrot.lane.b32.xlu1 %v3417_v21, %s2974_s11 }
 0x298   : > { %v2854_v17 = vpop.eup %2853 }
 0x299   : > { %1274 = vrot.lane.b32.xlu0 %v3415_v14, %s2975_s22  ;;  %v2856_v37 = vpop.eup %2855  ;;  %v3437_v41 = vmul.f32 %v2854_v17, %v1091_v44 }
 0x29a   : > { %v2858_v39 = vpop.eup %2857  ;;  %v1128_v43 = vadd.f32 1.0, %v2856_v37 }
 0x29b   : > { %1276 = vrot.lane.b32.xlu1 %v3417_v21, %s2975_s22  ;;  %v3441_v46 = vmul.f32 %v2858_v39, %v1093_v52  ;;  %v2860_v44 = vpop.eup %2859 }
 0x29c   : > { %2865 = vrcp.f32 %v1128_v43  ;;  %v2862_v52 = vpop.eup %2861  ;;  %v1127_v58 = vadd.f32 1.0, %v2860_v44 }
 0x29d   : > { %1322 = vrot.lane.b32.xlu0 %v3415_v14, %s2976_s25  ;;  %v2864_v51 = vpop.eup %2863  ;;  %v3457_v60 = vmul.f32 %v2862_v52, %v1094_v11 }
 0x29e   : > { %v1129_v47 = vadd.f32 1.0, %v2864_v51  ;;  %2867 = vrcp.f32 %v1127_v58 }
 0x29f   : > { %1324 = vrot.lane.b32.xlu1 %v3417_v21, %s2976_s25 }
 0x2a0   : > { %2869 = vrcp.f32 %v1129_v47 }
 0x2a1   : > { %1162 = vrot.lane.b32.xlu0 %v3437_v41, %s2973_s10 }
 0x2a3   : > { %1164 = vrot.lane.b32.xlu1 %v3441_v46, %s2973_s10 }
 0x2a5   : > { %1202 = vrot.lane.b32.xlu0 %v3437_v41, %s2972_s9 }
 0x2a6   : > { %v2866_v45 = vpop.eup %2865 }
 0x2a7   : > { %1204 = vrot.lane.b32.xlu1 %v3441_v46, %s2972_s9  ;;  %v3461_v1 = vmul.f32 %v2866_v45, %v1096_v56 }
 0x2a8   : > { %v2868_v3 = vpop.eup %2867 }
 0x2a9   : > { %1242 = vrot.lane.b32.xlu0 %v3437_v41, %s2974_s11  ;;  %v3477_v8 = vmul.f32 %v2868_v3, %v1095_v30 }
 0x2aa   : > { %v2870_v48 = vpop.eup %2869 }
 0x2ab   : > { %1244 = vrot.lane.b32.xlu1 %v3441_v46, %s2974_s11  ;;  %v3481_v9 = vmul.f32 %v2870_v48, %v1097_v34 }
 0x2ad   : > { %1282 = vrot.lane.b32.xlu0 %v3437_v41, %s2975_s22 }
 0x2af   : > { %1284 = vrot.lane.b32.xlu1 %v3441_v46, %s2975_s22 }
 0x2b1   : > { %1158 = vrot.lane.b32.xlu0 %v3457_v60, %s2973_s10 }
 0x2b3   : > { %1160 = vrot.lane.b32.xlu1 %v3461_v1, %s2973_s10 }
 0x2b5   : > { %1198 = vrot.lane.b32.xlu0 %v3457_v60, %s2972_s9 }
 0x2b7   : > { %1200 = vrot.lane.b32.xlu1 %v3461_v1, %s2972_s9 }
 0x2b9   : > { %1238 = vrot.lane.b32.xlu0 %v3457_v60, %s2974_s11 }
 0x2bb   : > { %1240 = vrot.lane.b32.xlu1 %v3461_v1, %s2974_s11 }
 0x2bd   : > { %1278 = vrot.lane.b32.xlu0 %v3457_v60, %s2975_s22 }
 0x2bf   : > { %1280 = vrot.lane.b32.xlu1 %v3461_v1, %s2975_s22 }
 0x2c1   : > { %1166 = vrot.lane.b32.xlu0 %v3477_v8, %s2973_s10 }
 0x2c3   : > { %1168 = vrot.lane.b32.xlu1 %v3481_v9, %s2973_s10 }
 0x2c5   : > { %1330 = vrot.lane.b32.xlu0 %v3437_v41, %s2976_s25 }
 0x2c7   : > { %1332 = vrot.lane.b32.xlu1 %v3441_v46, %s2976_s25 }
 0x2c9   : > { %1206 = vrot.lane.b32.xlu0 %v3477_v8, %s2972_s9 }
 0x2cb   : > { %1208 = vrot.lane.b32.xlu1 %v3481_v9, %s2972_s9 }
 0x2cd   : > { %1246 = vrot.lane.b32.xlu0 %v3477_v8, %s2974_s11 }
 0x2cf   : > { %1328 = vrot.lane.b32.xlu1 %v3461_v1, %s2976_s25 }
 0x2d1   : > { %1286 = vrot.lane.b32.xlu0 %v3477_v8, %s2975_s22 }
 0x2d3   : > { %1248 = vrot.lane.b32.xlu1 %v3481_v9, %s2974_s11 }
 0x2d5   : > { %1326 = vrot.lane.b32.xlu0 %v3457_v60, %s2976_s25 }
 0x2d7   : > { %1364 = vrot.lane.b32.xlu1 %v3417_v21, %s2977_s21 }
 0x2d9   : > { %1334 = vrot.lane.b32.xlu0 %v3477_v8, %s2976_s25 }
 0x2db   : > { %1288 = vrot.lane.b32.xlu1 %v3481_v9, %s2975_s22 }
 0x2dd   : > { %1362 = vrot.lane.b32.xlu0 %v3415_v14, %s2977_s21 }
 0x2df   : > { %1372 = vrot.lane.b32.xlu1 %v3441_v46, %s2977_s21 }
 0x2e1   : > { %1370 = vrot.lane.b32.xlu0 %v3437_v41, %s2977_s21 }
 0x2e3   : > { %1368 = vrot.lane.b32.xlu1 %v3461_v1, %s2977_s21 }
 0x2e5   : > { %1366 = vrot.lane.b32.xlu0 %v3457_v60, %s2977_s21 }
 0x2e7   : > { %1404 = vrot.lane.b32.xlu1 %v3417_v21, %s2978_s24 }
 0x2e9   : > { %1374 = vrot.lane.b32.xlu0 %v3477_v8, %s2977_s21 }
 0x2eb   : > { %1336 = vrot.lane.b32.xlu1 %v3481_v9, %s2976_s25 }
 0x2ed   : > { %1402 = vrot.lane.b32.xlu0 %v3415_v14, %s2978_s24 }
 0x2ef   : > { %1412 = vrot.lane.b32.xlu1 %v3441_v46, %s2978_s24 }
 0x2f1   : > { %1410 = vrot.lane.b32.xlu0 %v3437_v41, %s2978_s24 }
 0x2f3   : > { %1376 = vrot.lane.b32.xlu1 %v3481_v9, %s2977_s21 }
 0x2f5   : > { %1406 = vrot.lane.b32.xlu0 %v3457_v60, %s2978_s24 }
 0x2f7   : > { %1408 = vrot.lane.b32.xlu1 %v3461_v1, %s2978_s24 }
 0x2f9   : > { %1414 = vrot.lane.b32.xlu0 %v3477_v8, %s2978_s24 }
 0x2fb   : > { %1416 = vrot.lane.b32.xlu1 %v3481_v9, %s2978_s24 }
 0x2fd   : > { %1442 = vrot.lane.b32.xlu0 %v3415_v14, %s2979_s17 }
 0x2ff   : > { %v1155_v54 = vpop.permute.xlu0 %1154  ;;  %1444 = vrot.lane.b32.xlu1 %v3417_v21, %s2979_s17 }
 0x301   : > { %1450 = vrot.lane.b32.xlu0 %v3437_v41, %s2979_s17  ;;  %v1157_v11 = vpop.permute.xlu1 %1156 }
 0x303   : > { %v3552_v12 = vpop.permute.xlu0 %1194  ;;  %1452 = vrot.lane.b32.xlu1 %v3441_v46, %s2979_s17 }
 0x305   : > { %1446 = vrot.lane.b32.xlu0 %v3457_v60, %s2979_s17  ;;  %v1197_v13 = vpop.permute.xlu1 %1196 }
 0x307   : > { %v3558_v56 = vpop.permute.xlu0 %1234  ;;  %1448 = vrot.lane.b32.xlu1 %v3461_v1, %s2979_s17 }
 0x309   : > { %1454 = vrot.lane.b32.xlu0 %v3477_v8, %s2979_s17  ;;  %v3564_v15 = vpop.permute.xlu1 %1236 }
 0x30b   : > { %v3569_v49 = vpop.permute.xlu0 %1274  ;;  %1456 = vrot.lane.b32.xlu1 %v3481_v9, %s2979_s17 }
 0x30d   : > { %1532 = vperm.xlu0 %2818, %v1526_v19   ;;  %v3573_v59 = vpop.permute.xlu1 %1276 }
 0x30f   : > { %v3578_v27 = vpop.permute.xlu0 %1322  ;;  %1537 = vperm.xlu1 %2822, %v1527_v28  }
 0x311   : > { %1542 = vperm.xlu0 %2818, %v1528_v25   ;;  %v3583_v50 = vpop.permute.xlu1 %1324 }
 0x313   : > { %v1163_v62 = vpop.permute.xlu0 %1162  ;;  %1547 = vperm.xlu1 %2822, %v1529_v29  }
 0x314   : > { %v1170_v30 = vsel %vm648_vm1, %v1155_v54, %v1163_v62  ;;  %v1174_v33 = vsel %vm648_vm1, %v1163_v62, %v1155_v54 }
 0x315   : > { %v1165_v34 = vpop.permute.xlu1 %1164  ;;  %v1178_v38 = vmul.f32 %v1174_v33, %v3244_v5  ;;  %v1179_v39 = vmul.f32 %v1170_v30, %v3248_v6 }
 0x316   : > { %v1171_v17 = vsel %vm648_vm1, %v1157_v11, %v1165_v34  ;;  %v1175_v37 = vsel %vm648_vm1, %v1165_v34, %v1157_v11 }
 0x317   : > { %v1180_v40 = vmul.f32 %v1175_v37, %v3244_v5  ;;  %v1181_v42 = vmul.f32 %v1171_v17, %v3248_v6  ;;  %v1203_v43 = vpop.permute.xlu0 %1202 }
 0x318   : > { %v1210_v17 = vsel %vm677_vm0, %v3552_v12, %v1203_v43 }
 0x319   : > { %v1186_v44 = vpack.c.bf16 %v1180_v40, %v1178_v38  ;;  %v1187_v52 = vpack.c.bf16 %v1181_v42, %v1179_v39  ;;  %v1205_v51 = vpop.permute.xlu1 %1204 }
 0x31a   : > { %v1211_v62 = vsel %vm677_vm0, %v1197_v13, %v1205_v51  ;;  %v1215_v38 = vsel %vm677_vm0, %v1205_v51, %v1197_v13  ;;  %v1214_v13 = vsel %vm677_vm0, %v1203_v43, %v3552_v12  ;;  %v1219_v51 = vmul.f32 %v1210_v17, %v3233_v0 }
 0x31b   : > { %v1243_v45 = vpop.permute.xlu0 %1242  ;;  %1587 = vmatprep.subr.bf16.mxu1 %v1187_v52  ;;  %v1221_v39 = vmul.f32 %v1211_v62, %v3233_v0  ;;  %v1220_v62 = vmul.f32 %v1215_v38, %v3228_v63 }
 0x31c   : > { %1588 = vmatpush1.bf16.msra.mxu1 %v1186_v44  ;;  %v1250_v38 = vsel %vm714_vm2, %v3558_v56, %v1243_v45 }
 0x31d   : > { %v1245_v58 = vpop.permute.xlu1 %1244 }
 0x31f   : > { %v3600_v47 = vpop.permute.xlu0 %1282 }
 0x321   : > { %v3602_v3 = vpop.permute.xlu1 %1284 }
 0x323   : > { %v1159_v48 = vpop.permute.xlu0 %1158 }
 0x325   : > { %v1161_v10 = vpop.permute.xlu1 %1160 }
 0x327   : > { %v1199_v54 = vpop.permute.xlu0 %1198 }
 0x329   : > { %v1201_v11 = vpop.permute.xlu1 %1200 }
 0x32b   : > { %v1239_v19 = vpop.permute.xlu0 %1238 }
 0x32d   : > { %v3604_v25 = vpop.permute.xlu1 %1240 }
 0x32f   : > { %v3606_v28 = vpop.permute.xlu0 %1278 }
 0x331   : > { %v3608_v29 = vpop.permute.xlu1 %1280 }
 0x333   : > { %v1167_v30 = vpop.permute.xlu0 %1166 }
 0x334   : > { %v1172_v33 = vsel %vm648_vm1, %v1159_v48, %v1167_v30  ;;  %v1176_v34 = vsel %vm648_vm1, %v1167_v30, %v1159_v48 }
 0x335   : > { %v1169_v37 = vpop.permute.xlu1 %1168  ;;  %v1182_v44 = vmul.f32 %v1176_v34, %v3244_v5  ;;  %v1183_v52 = vmul.f32 %v1172_v33, %v3248_v6  ;;  %v1218_v33 = vmul.f32 %v1214_v13, %v3228_v63  ;;  %v1227_v34 = vpack.c.bf16 %v1221_v39, %v1219_v51 }
 0x336   : > { %v1173_v40 = vsel %vm648_vm1, %v1161_v10, %v1169_v37  ;;  %v1177_v42 = vsel %vm648_vm1, %v1169_v37, %v1161_v10  ;;  %v1255_v39 = vsel %vm714_vm2, %v1245_v58, %v3564_v15 }
 0x337   : > { %v1184_v48 = vmul.f32 %v1177_v42, %v3244_v5  ;;  %v1185_v30 = vmul.f32 %v1173_v40, %v3248_v6  ;;  %v3630_v26 = vpop.permute.xlu0 %1330  ;;  %v1251_v40 = vsel %vm714_vm2, %v3564_v15, %v1245_v58  ;;  %v1226_v17 = vpack.c.bf16 %v1220_v62, %v1218_v33 }
 0x338   : > { %v1254_v15 = vsel %vm714_vm2, %v1243_v45, %v3558_v56  ;;  %v1259_v58 = vmul.f32 %v1250_v38, %v3270_v20  ;;  %v1290_v38 = vsel %vm751_vm3, %v3569_v49, %v3600_v47 }
 0x339   : > { %v1188_v53 = vpack.c.bf16 %v1184_v48, %v1182_v44  ;;  %v1189_v10 = vpack.c.bf16 %v1185_v30, %v1183_v52  ;;  %v3637_v37 = vpop.permute.xlu1 %1332  ;;  %v1261_v52 = vmul.f32 %v1251_v40, %v3270_v20  ;;  %v1258_v40 = vmul.f32 %v1254_v15, %v3264_v16 }
 0x33b   : > { %v1207_v42 = vpop.permute.xlu0 %1206  ;;  %1589 = vmatprep.subr.bf16.mxu1 %v1189_v10  ;;  %v1260_v10 = vmul.f32 %v1255_v39, %v3264_v16  ;;  %v1295_v39 = vsel %vm751_vm3, %v3602_v3, %v3573_v59 }
 0x33c   : > { %v1212_v12 = vsel %vm677_vm0, %v1199_v54, %v1207_v42  ;;  %v1216_v43 = vsel %vm677_vm0, %v1207_v42, %v1199_v54  ;;  %1590 = vmatpush1.bf16.msra.mxu1 %v1188_v53  ;;  %v1267_v42 = vpack.c.bf16 %v1261_v52, %v1259_v58  ;;  %v1300_v58 = vmul.f32 %v1295_v39, %v3284_v35 }
 0x33d   : > { %v1209_v44 = vpop.permute.xlu1 %1208  ;;  %1591 = vmatprep.subr.bf16.mxu1 %v1227_v34  ;;  %v1222_v53 = vmul.f32 %v1216_v43, %v3228_v63  ;;  %v1223_v30 = vmul.f32 %v1212_v12, %v3233_v0  ;;  %v1291_v12 = vsel %vm751_vm3, %v3573_v59, %v3602_v3  ;;  %v1294_v59 = vsel %vm751_vm3, %v3600_v47, %v3569_v49 }
 0x33e   : > { %v1213_v48 = vsel %vm677_vm0, %v1201_v11, %v1209_v44  ;;  %v1217_v54 = vsel %vm677_vm0, %v1209_v44, %v1201_v11  ;;  %v1301_v52 = vmul.f32 %v1291_v12, %v3287_v36  ;;  %v1299_v3 = vmul.f32 %v1290_v38, %v3287_v36 }
 0x33f   : > { %v1224_v13 = vmul.f32 %v1217_v54, %v3228_v63  ;;  %v1225_v51 = vmul.f32 %v1213_v48, %v3233_v0  ;;  %v1247_v62 = vpop.permute.xlu0 %1246 }
 0x340   : > { %1592 = vmatpush1.bf16.msra.mxu1 %v1226_v17  ;;  %v1252_v56 = vsel %vm714_vm2, %v1239_v19, %v1247_v62  ;;  %v1256_v45 = vsel %vm714_vm2, %v1247_v62, %v1239_v19  ;;  %v1266_v17 = vpack.c.bf16 %v1260_v10, %v1258_v40  ;;  %v1307_v10 = vpack.c.bf16 %v1301_v52, %v1299_v3 }
 0x341   : > { %v1228_v33 = vpack.c.bf16 %v1224_v13, %v1222_v53  ;;  %v1229_v11 = vpack.c.bf16 %v1225_v51, %v1223_v30  ;;  %v3667_v34 = vpop.permute.xlu1 %1328  ;;  %v1262_v54 = vmul.f32 %v1256_v45, %v3264_v16  ;;  %v1263_v53 = vmul.f32 %v1252_v56, %v3270_v20 }
 0x342   : > { %v1338_v3 = vsel %vm790_vm4, %v3578_v27, %v3630_v26 }
 0x343   : > { %v1287_v43 = vpop.permute.xlu0 %1286  ;;  %1593 = vmatprep.subr.bf16.mxu1 %v1229_v11  ;;  %v1298_v11 = vmul.f32 %v1294_v59, %v3284_v35  ;;  %v1317_v59 = vpack.c.bf16 %v3481_v9, %v3477_v8  ;;  %v1346_v8 = vmul.f32 %v1338_v3, %v3308_v4 }
 0x344   : > { %1594 = vmatpush1.bf16.msra.mxu1 %v1228_v33  ;;  %v1292_v40 = vsel %vm751_vm3, %v3606_v28, %v1287_v43  ;;  %v1296_v49 = vsel %vm751_vm3, %v1287_v43, %v3606_v28 }
 0x345   : > { %v1249_v44 = vpop.permute.xlu1 %1248  ;;  %1595 = vmatprep.subr.bf16.mxu1 %v1267_v42  ;;  %v1306_v42 = vpack.c.bf16 %v1300_v58, %v1298_v11  ;;  %v1302_v45 = vmul.f32 %v1296_v49, %v3284_v35 }
 0x346   : > { %v1253_v19 = vsel %vm714_vm2, %v3604_v25, %v1249_v44  ;;  %v1257_v48 = vsel %vm714_vm2, %v1249_v44, %v3604_v25 }
 0x347   : > { %v1264_v30 = vmul.f32 %v1257_v48, %v3264_v16  ;;  %v1265_v13 = vmul.f32 %v1253_v19, %v3270_v20  ;;  %v1327_v51 = vpop.permute.xlu0 %1326  ;;  %v1315_v48 = vpack.c.bf16 %v3441_v46, %v3437_v41  ;;  %v1314_v41 = vpack.c.bf16 %v3417_v21, %v3415_v14 }
 0x348   : > { %1596 = vmatpush1.bf16.msra.mxu1 %v1266_v17  ;;  %v1303_v17 = vmul.f32 %v1292_v40, %v3287_v36  ;;  %v1316_v21 = vpack.c.bf16 %v3461_v1, %v3457_v60 }
 0x349   : > { %v1268_v62 = vpack.c.bf16 %v1264_v30, %v1262_v54  ;;  %v1269_v15 = vpack.c.bf16 %v1265_v13, %v1263_v53  ;;  %v3702_v25 = vpop.permute.xlu1 %1364  ;;  %v1342_v53 = vsel %vm790_vm4, %v3630_v26, %v3578_v27  ;;  %v1339_v30 = vsel %vm790_vm4, %v3583_v50, %v3637_v37 }
 0x34b   : > { %v1335_v33 = vpop.permute.xlu0 %1334  ;;  %1597 = vmatprep.subr.bf16.mxu1 %v1269_v15  ;;  %v1348_v15 = vmul.f32 %v1339_v30, %v3308_v4 }
 0x34c   : > { %1598 = vmatpush1.bf16.msra.mxu1 %v1268_v62  ;;  %v1347_v62 = vmul.f32 %v1342_v53, %v3312_v7  ;;  %v1340_v14 = vsel %vm790_vm4, %v1327_v51, %v1335_v33  ;;  %v1344_v26 = vsel %vm790_vm4, %v1335_v33, %v1327_v51 }
 0x34d   : > { %v1289_v47 = vpop.permute.xlu1 %1288  ;;  %1599 = vmatprep.subr.bf16.mxu1 %v1307_v10  ;;  %v1354_v58 = vpack.c.bf16 %v1348_v15, %v1346_v8  ;;  %v1350_v10 = vmul.f32 %v1340_v14, %v3308_v4  ;;  %v1351_v40 = vmul.f32 %v1344_v26, %v3312_v7 }
 0x34e   : > { %v1293_v12 = vsel %vm751_vm3, %v3608_v29, %v1289_v47  ;;  %v1297_v56 = vsel %vm751_vm3, %v1289_v47, %v3608_v29  ;;  %v1343_v29 = vsel %vm790_vm4, %v3637_v37, %v3583_v50 }
 0x34f   : > { %v1304_v38 = vmul.f32 %v1297_v56, %v3284_v35  ;;  %v1305_v28 = vmul.f32 %v1293_v12, %v3287_v36  ;;  %v1363_v43 = vpop.permute.xlu0 %1362  ;;  %v1349_v46 = vmul.f32 %v1343_v29, %v3312_v7 }
 0x350   : > { %1600 = vmatpush1.bf16.msra.mxu1 %v1306_v42 }
 0x351   : > { %v1308_v44 = vpack.c.bf16 %v1304_v38, %v1302_v45  ;;  %v1309_v39 = vpack.c.bf16 %v1305_v28, %v1303_v17  ;;  %v1373_v52 = vpop.permute.xlu1 %1372  ;;  %v1355_v9 = vpack.c.bf16 %v1349_v46, %v1347_v62 }
 0x352   : > { %v1383_v60 = vsel %vm827_vm5, %v1373_v52, %v3702_v25  ;;  %v1379_v56 = vsel %vm827_vm5, %v3702_v25, %v1373_v52 }
 0x353   : > { %v1371_v19 = vpop.permute.xlu0 %1370  ;;  %1601 = vmatprep.subr.bf16.mxu1 %v1309_v39  ;;  %v1389_v45 = vmul.f32 %v1383_v60, %v3335_v23 }
 0x354   : > { %1602 = vmatpush1.bf16.msra.mxu1 %v1308_v44  ;;  %v1382_v27 = vsel %vm827_vm5, %v1371_v19, %v1363_v43  ;;  %v1378_v1 = vsel %vm827_vm5, %v1363_v43, %v1371_v19  ;;  %v1388_v44 = vmul.f32 %v1379_v56, %v3332_v22 }
 0x355   : > { %v1369_v54 = vpop.permute.xlu1 %1368  ;;  %1603 = vmatprep.subr.bf16.mxu1 %v1315_v48  ;;  %v1387_v49 = vmul.f32 %v1382_v27, %v3335_v23  ;;  %v1386_v17 = vmul.f32 %v1378_v1, %v3332_v22 }
 0x357   : > { %v1367_v13 = vpop.permute.xlu0 %1366  ;;  %v1395_v39 = vpack.c.bf16 %v1389_v45, %v1387_v49  ;;  %v1394_v52 = vpack.c.bf16 %v1388_v44, %v1386_v17  ;;  %v2831_v44 = vld [vmem:[%s4448_s15 + $0x1c] ss:$12 sps:$4 sm:$0xff]  }
 0x358   : > { %1604 = vmatpush1.bf16.msra.mxu1 %v1314_v41 }
 0x359   : > { %v1405_v50 = vpop.permute.xlu1 %1404  ;;  %1605 = vmatprep.subr.bf16.mxu1 %v1317_v59 }
 0x35b   : > { %v1375_v37 = vpop.permute.xlu0 %1374 }
 0x35c   : > { %1606 = vmatpush1.bf16.msra.mxu1 %v1316_v21  ;;  %v1380_v43 = vsel %vm827_vm5, %v1367_v13, %v1375_v37  ;;  %v1384_v19 = vsel %vm827_vm5, %v1375_v37, %v1367_v13 }
 0x35d   : > { %v1337_v11 = vpop.permute.xlu1 %1336  ;;  %1607 = vmatprep.subr.bf16.mxu1 %v1355_v9  ;;  %v1390_v29 = vmul.f32 %v1380_v43, %v3332_v22  ;;  %v1391_v30 = vmul.f32 %v1384_v19, %v3335_v23 }
 0x35e   : > { %v1341_v51 = vsel %vm790_vm4, %v3667_v34, %v1337_v11  ;;  %v1345_v33 = vsel %vm790_vm4, %v1337_v11, %v3667_v34 }
 0x35f   : > { %v1352_v47 = vmul.f32 %v1341_v51, %v3308_v4  ;;  %v1353_v42 = vmul.f32 %v1345_v33, %v3312_v7  ;;  %v1403_v12 = vpop.permute.xlu0 %1402 }
 0x360   : > { %1608 = vmatpush1.bf16.msra.mxu1 %v1354_v58 }
 0x361   : > { %v1356_v38 = vpack.c.bf16 %v1352_v47, %v1350_v10  ;;  %v1357_v34 = vpack.c.bf16 %v1353_v42, %v1351_v40  ;;  %v1413_v28 = vpop.permute.xlu1 %1412 }
 0x362   : > { %v1423_v41 = vsel %vm864_vm6, %v1413_v28, %v1405_v50  ;;  %v1419_v21 = vsel %vm864_vm6, %v1405_v50, %v1413_v28 }
 0x363   : > { %v1411_v48 = vpop.permute.xlu0 %1410  ;;  %1609 = vmatprep.subr.bf16.mxu1 %v1357_v34  ;;  %v1429_v8 = vmul.f32 %v1423_v41, %v3359_v24  ;;  %v1428_v10 = vmul.f32 %v1419_v21, %v3356_v2  ;;  %v2828_v34 = vld [vmem:[%s4448_s15] ss:$12 sps:$4 sm:$0xff]  }
 0x364   : > { %v1422_v25 = vsel %vm864_vm6, %v1411_v48, %v1403_v12  ;;  %1610 = vmatpush1.bf16.msra.mxu1 %v1356_v38  ;;  %v1418_v59 = vsel %vm864_vm6, %v1403_v12, %v1411_v48 }
 0x365   : > { %v1377_v53 = vpop.permute.xlu1 %1376  ;;  %1611 = vmatprep.subr.bf16.mxu1 %v1395_v39  ;;  %v1427_v3 = vmul.f32 %v1422_v25, %v3359_v24 }
 0x366   : > { %v1381_v46 = vsel %vm827_vm5, %v1369_v54, %v1377_v53  ;;  %v1385_v13 = vsel %vm827_vm5, %v1377_v53, %v1369_v54  ;;  %v1426_v54 = vmul.f32 %v1418_v59, %v3356_v2 }
 0x367   : > { %v1392_v62 = vmul.f32 %v1381_v46, %v3332_v22  ;;  %v1393_v15 = vmul.f32 %v1385_v13, %v3335_v23  ;;  %v1407_v14 = vpop.permute.xlu0 %1406  ;;  %v1435_v27 = vpack.c.bf16 %v1429_v8, %v1427_v3  ;;  %v2833_v3 = vld [vmem:[%s4448_s15 + $0x18] ss:$12 sps:$4 sm:$0xff]  }
 0x368   : > { %1612 = vmatpush1.bf16.msra.mxu1 %v1394_v52  ;;  %v1434_v1 = vpack.c.bf16 %v1428_v10, %v1426_v54 }
 0x369   : > { %v1396_v9 = vpack.c.bf16 %v1392_v62, %v1390_v29  ;;  %v1397_v37 = vpack.c.bf16 %v1393_v15, %v1391_v30  ;;  %v1409_v26 = vpop.permute.xlu1 %1408 }
 0x36b   : > { %v1415_v58 = vpop.permute.xlu0 %1414  ;;  %1613 = vmatprep.subr.bf16.mxu1 %v1397_v37 }
 0x36c   : > { %v1420_v11 = vsel %vm864_vm6, %v1407_v14, %v1415_v58  ;;  %v1424_v60 = vsel %vm864_vm6, %v1415_v58, %v1407_v14  ;;  %1614 = vmatpush1.bf16.msra.mxu1 %v1396_v9 }
 0x36d   : > { %v1417_v50 = vpop.permute.xlu1 %1416  ;;  %1615 = vmatprep.subr.bf16.mxu1 %v1435_v27  ;;  %v1430_v40 = vmul.f32 %v1420_v11, %v3356_v2  ;;  %v1431_v49 = vmul.f32 %v1424_v60, %v3359_v24  ;;  %v4450_v27 = vmov 0   ;;  %v2834_v11 = vld [vmem:[%s4448_s15 + $0x8] ss:$12 sps:$4 sm:$0xff]  }
 0x36e   : > { %v1421_v51 = vsel %vm864_vm6, %v1409_v26, %v1417_v50  ;;  %v1425_v33 = vsel %vm864_vm6, %v1417_v50, %v1409_v26 }
 0x36f   : > { %v1432_v47 = vmul.f32 %v1421_v51, %v3356_v2  ;;  %v1433_v42 = vmul.f32 %v1425_v33, %v3359_v24  ;;  %v1443_v12 = vpop.permute.xlu0 %1442 }
 0x370   : > { %1616 = vmatpush1.bf16.msra.mxu1 %v1434_v1 }
 0x371   : > { %v1436_v56 = vpack.c.bf16 %v1432_v47, %v1430_v40  ;;  %v1437_v45 = vpack.c.bf16 %v1433_v42, %v1431_v49  ;;  %v1445_v17 = vpop.permute.xlu1 %1444 }
 0x373   : > { %v1451_v38 = vpop.permute.xlu0 %1450  ;;  %1617 = vmatprep.subr.bf16.mxu1 %v1437_v45 }
 0x374   : > { %v1458_v28 = vsel %vm899_vm7, %v1443_v12, %v1451_v38  ;;  %v1462_v43 = vsel %vm899_vm7, %v1451_v38, %v1443_v12  ;;  %1618 = vmatpush1.bf16.msra.mxu1 %v1436_v56 }
 0x375   : > { %v1453_v39 = vpop.permute.xlu1 %1452  ;;  %v1466_v25 = vmul.f32 %v3389_v31, %v1458_v28  ;;  %v1467_v52 = vmul.f32 %v3394_v32, %v1462_v43 }
 0x376   : > { %v1459_v19 = vsel %vm899_vm7, %v1445_v17, %v1453_v39  ;;  %v1463_v48 = vsel %vm899_vm7, %v1453_v39, %v1445_v17 }
 0x377   : > { %v1468_v29 = vmul.f32 %v3389_v31, %v1459_v19  ;;  %v1469_v53 = vmul.f32 %v3394_v32, %v1463_v48  ;;  %v1447_v30 = vpop.permute.xlu0 %1446  ;;  %1620 = vmatmul.mubr.bf16.vlgmr.msra.gmra.mrb[0].mxu1 %v2828_v34 }
 0x378   : > { %1629 = vmatprep.mubr.bf16.mxu1 %v2831_v44 }
 0x379   : > { %v1474_v41 = vpack.c.bf16 %v1468_v29, %v1466_v25  ;;  %v1475_v46 = vpack.c.bf16 %v1469_v53, %v1467_v52  ;;  %v1449_v13 = vpop.permute.xlu1 %1448 }
 0x37b   : > { %v1455_v59 = vpop.permute.xlu0 %1454  ;;  %1640 = vmatprep.subr.bf16.mxu1 %v1475_v46 }
 0x37c   : > { %v1460_v62 = vsel %vm899_vm7, %v1447_v30, %v1455_v59  ;;  %v1464_v15 = vsel %vm899_vm7, %v1455_v59, %v1447_v30  ;;  %1641 = vmatpush1.bf16.msra.mxu1 %v1474_v41 }
 0x37d   : > { %v1457_v14 = vpop.permute.xlu1 %1456  ;;  %v1470_v9 = vmul.f32 %v3389_v31, %v1460_v62  ;;  %v1471_v37 = vmul.f32 %v3394_v32, %v1464_v15 }
 0x37e   : > { %v1461_v21 = vsel %vm899_vm7, %v1449_v13, %v1457_v14  ;;  %v1465_v8 = vsel %vm899_vm7, %v1457_v14, %v1449_v13 }
 0x37f   : > { %v1472_v26 = vmul.f32 %v3389_v31, %v1461_v21  ;;  %v1473_v54 = vmul.f32 %v3394_v32, %v1465_v8  ;;  %1630 = vmatmul.mubr.bf16.gmra.mrb[4].mxu1 %v2833_v3  ;;  %v2835_v31 = vld [vmem:[%s4448_s15 + $0x20] ss:$12 sps:$4 sm:$0xff]  }
 0x380   : > { %1672 = vmatprep.mubr.bf16.mxu1 %v4450_v27 }
 0x381   : > { %v1476_v58 = vpack.c.bf16 %v1472_v26, %v1470_v9  ;;  %v1477_v10 = vpack.c.bf16 %v1473_v54, %v1471_v37 }
 0x383   : > { %1642 = vmatprep.subr.bf16.mxu1 %v1477_v10 }
 0x384   : > { %1643 = vmatpush1.bf16.msra.mxu1 %v1476_v58 }
 0x387   : > { %2696 = vmatmul.mubr.msk.bf16.vlgmr.msra.gmra.mrb[0].mxu1 %vm1580_vm10, %v2834_v11 }
 0x388   : > { %1682 = vmatprep.mubr.bf16.mxu1 %v4450_v27 }
 0x38c   : > { %v1533_v32 = vpop.permute.xlu0 %1532 }
 0x38e   : > { %v1538_v51 = vpop.permute.xlu1 %1537 }
 0x38f   : > { %2697 = vmatmul.mubr.msk.bf16.gmra.mrb[4].mxu1 %vm1580_vm10, %v2835_v31 }
 0x390   : > { %2207 = vmatprep.mubr.bf16.mxu1 %v4450_v27  ;;  %v1543_v38 = vpop.permute.xlu0 %1542 }
 0x392   : > { %v1548_v44 = vpop.permute.xlu1 %1547 }
 0x45a   : > { %v1674_v60 = vpop.f32.mrb[0].mxu1 }
 0x45b   : > { %v2719_v50 = vadd.f32 %v1674_v60, %v1533_v32  ;;  %v1676_v1 = vpop.f32.mrb[1].mxu1 }
 0x45c   : > { %v2720_v33 = vadd.f32 %v1676_v1, %v1533_v32  ;;  %v1678_v40 = vpop.f32.mrb[2].mxu1 }
 0x45d   : > { %v2698_v49 = vmul.f32 -1.442695, %v2719_v50  ;;  %v2721_v47 = vadd.f32 %v1678_v40, %v1538_v51  ;;  %v1680_v42 = vpop.f32.mrb[3].mxu1 }
 0x45e   : > { %v2699_v12 = vmul.f32 -1.442695, %v2720_v33  ;;  %v2722_v56 = vadd.f32 %v1680_v42, %v1538_v51 }
 0x45f   : > { %2871 = vpow2.f32 %v2698_v49  ;;  %v2700_v45 = vmul.f32 -1.442695, %v2721_v47 }
 0x460   : > { %2873 = vpow2.f32 %v2699_v12  ;;  %v2701_v17 = vmul.f32 -1.442695, %v2722_v56 }
 0x461   : > { %2875 = vpow2.f32 %v2700_v45 }
 0x462   : > { %2877 = vpow2.f32 %v2701_v17  ;;  %v1684_v34 = vpop.f32.mrb[4].mxu1 }
 0x463   : > { %v2723_v28 = vadd.f32 %v1684_v34, %v1543_v38  ;;  %v1686_v43 = vpop.f32.mrb[5].mxu1 }
 0x464   : > { %v2724_v39 = vadd.f32 %v1686_v43, %v1543_v38  ;;  %v1688_v19 = vpop.f32.mrb[6].mxu1 }
 0x465   : > { %v2702_v48 = vmul.f32 -1.442695, %v2723_v28  ;;  %v2725_v25 = vadd.f32 %v1688_v19, %v1548_v44  ;;  %v1690_v52 = vpop.f32.mrb[7].mxu1 }
 0x466   : > { %v2703_v29 = vmul.f32 -1.442695, %v2724_v39  ;;  %v2726_v53 = vadd.f32 %v1690_v52, %v1548_v44 }
 0x467   : > { %2879 = vpow2.f32 %v2702_v48  ;;  %v2704_v30 = vmul.f32 -1.442695, %v2725_v25 }
 0x468   : > { %2881 = vpow2.f32 %v2703_v29  ;;  %v2705_v41 = vmul.f32 -1.442695, %v2726_v53 }
 0x469   : > { %v2872_v46 = vpop.eup %2871  ;;  %2883 = vpow2.f32 %v2704_v30 }
 0x46a   : > { %v2874_v13 = vpop.eup %2873  ;;  %v1717_v59 = vadd.f32 1.0, %v2872_v46  ;;  %2885 = vpow2.f32 %v2705_v41 }
 0x46b   : > { %v2876_v3 = vpop.eup %2875  ;;  %v1718_v62 = vadd.f32 1.0, %v2874_v13 }
 0x46c   : > { %v2878_v15 = vpop.eup %2877  ;;  %2887 = vrcp.f32 %v1717_v59  ;;  %v1719_v14 = vadd.f32 1.0, %v2876_v3  ;;  %v4023_v3 = vld [vmem:[%s3110_s5] sm:$0xff] }
 0x46d   : > { %2889 = vrcp.f32 %v1718_v62  ;;  %v1720_v21 = vadd.f32 1.0, %v2878_v15  ;;  %vm2450_vm13 = vcmp.gt.f32.partialorder %v4023_v3, 0.5 }
 0x46e   : > { %2891 = vrcp.f32 %v1719_v14 }
 0x46f   : > { %2893 = vrcp.f32 %v1720_v21 }
 0x471   : > { %v2880_v8 = vpop.eup %2879 }
 0x472   : > { %v2882_v9 = vpop.eup %2881  ;;  %v1721_v37 = vadd.f32 1.0, %v2880_v8 }
 0x473   : > { %v2884_v26 = vpop.eup %2883  ;;  %v1722_v54 = vadd.f32 1.0, %v2882_v9 }
 0x474   : > { %v2886_v58 = vpop.eup %2885  ;;  %2895 = vrcp.f32 %v1721_v37  ;;  %v1723_v10 = vadd.f32 1.0, %v2884_v26 }
 0x475   : > { %2897 = vrcp.f32 %v1722_v54  ;;  %v1724_v11 = vadd.f32 1.0, %v2886_v58 }
 0x476   : > { %v2888_v31 = vpop.eup %2887  ;;  %2899 = vrcp.f32 %v1723_v10 }
 0x477   : > { %v2890_v32 = vpop.eup %2889  ;;  %v3858_v60 = vmul.f32 %v2888_v31, %v2719_v50  ;;  %2901 = vrcp.f32 %v1724_v11 }
 0x478   : > { %v2892_v1 = vpop.eup %2891  ;;  %v3864_v49 = vmul.f32 %v2890_v32, %v2720_v33 }
 0x479   : > { %v2894_v51 = vpop.eup %2893  ;;  %v3860_v40 = vmul.f32 %v2892_v1, %v2721_v47  ;;  %1749 = vrot.lane.b32.xlu0 %v3858_v60, %s2973_s10 }
 0x47a   : > { %v3866_v42 = vmul.f32 %v2894_v51, %v2722_v56 }
 0x47b   : > { %1751 = vrot.lane.b32.xlu1 %v3860_v40, %s2973_s10 }
 0x47d   : > { %1789 = vrot.lane.b32.xlu0 %v3858_v60, %s2972_s9 }
 0x47e   : > { %v2896_v47 = vpop.eup %2895 }
 0x47f   : > { %v2898_v45 = vpop.eup %2897  ;;  %1791 = vrot.lane.b32.xlu1 %v3860_v40, %s2972_s9  ;;  %v3878_v17 = vmul.f32 %v2896_v47, %v2723_v28 }
 0x480   : > { %v2900_v33 = vpop.eup %2899  ;;  %v3884_v34 = vmul.f32 %v2898_v45, %v2724_v39 }
 0x481   : > { %v2902_v56 = vpop.eup %2901  ;;  %v3880_v38 = vmul.f32 %v2900_v33, %v2725_v25  ;;  %1829 = vrot.lane.b32.xlu0 %v3858_v60, %s2974_s11 }
 0x482   : > { %v3886_v43 = vmul.f32 %v2902_v56, %v2726_v53 }
 0x483   : > { %1831 = vrot.lane.b32.xlu1 %v3860_v40, %s2974_s11 }
 0x485   : > { %1869 = vrot.lane.b32.xlu0 %v3858_v60, %s2975_s22 }
 0x487   : > { %1871 = vrot.lane.b32.xlu1 %v3860_v40, %s2975_s22 }
 0x489   : > { %1917 = vrot.lane.b32.xlu0 %v3858_v60, %s2976_s25 }
 0x48b   : > { %1919 = vrot.lane.b32.xlu1 %v3860_v40, %s2976_s25 }
 0x48d   : > { %1957 = vrot.lane.b32.xlu0 %v3858_v60, %s2977_s21 }
 0x48f   : > { %1959 = vrot.lane.b32.xlu1 %v3860_v40, %s2977_s21 }
 0x491   : > { %1757 = vrot.lane.b32.xlu0 %v3864_v49, %s2973_s10 }
 0x493   : > { %1759 = vrot.lane.b32.xlu1 %v3866_v42, %s2973_s10 }
 0x495   : > { %1797 = vrot.lane.b32.xlu0 %v3864_v49, %s2972_s9 }
 0x497   : > { %1799 = vrot.lane.b32.xlu1 %v3866_v42, %s2972_s9 }
 0x499   : > { %1837 = vrot.lane.b32.xlu0 %v3864_v49, %s2974_s11 }
 0x49b   : > { %1839 = vrot.lane.b32.xlu1 %v3866_v42, %s2974_s11 }
 0x49d   : > { %1877 = vrot.lane.b32.xlu0 %v3864_v49, %s2975_s22 }
 0x49f   : > { %1879 = vrot.lane.b32.xlu1 %v3866_v42, %s2975_s22 }
 0x4a1   : > { %1925 = vrot.lane.b32.xlu0 %v3864_v49, %s2976_s25 }
 0x4a3   : > { %1927 = vrot.lane.b32.xlu1 %v3866_v42, %s2976_s25 }
 0x4a5   : > { %1753 = vrot.lane.b32.xlu0 %v3878_v17, %s2973_s10 }
 0x4a7   : > { %1755 = vrot.lane.b32.xlu1 %v3880_v38, %s2973_s10 }
 0x4a9   : > { %1793 = vrot.lane.b32.xlu0 %v3878_v17, %s2972_s9 }
 0x4ab   : > { %1795 = vrot.lane.b32.xlu1 %v3880_v38, %s2972_s9 }
 0x4ad   : > { %1833 = vrot.lane.b32.xlu0 %v3878_v17, %s2974_s11 }
 0x4af   : > { %1835 = vrot.lane.b32.xlu1 %v3880_v38, %s2974_s11 }
 0x4b1   : > { %1873 = vrot.lane.b32.xlu0 %v3878_v17, %s2975_s22 }
 0x4b3   : > { %1875 = vrot.lane.b32.xlu1 %v3880_v38, %s2975_s22 }
 0x4b5   : > { %1921 = vrot.lane.b32.xlu0 %v3878_v17, %s2976_s25 }
 0x4b7   : > { %1923 = vrot.lane.b32.xlu1 %v3880_v38, %s2976_s25 }
 0x4b9   : > { %1761 = vrot.lane.b32.xlu0 %v3884_v34, %s2973_s10 }
 0x4bb   : > { %1763 = vrot.lane.b32.xlu1 %v3886_v43, %s2973_s10 }
 0x4bd   : > { %1965 = vrot.lane.b32.xlu0 %v3864_v49, %s2977_s21 }
 0x4bf   : > { %1967 = vrot.lane.b32.xlu1 %v3866_v42, %s2977_s21 }
 0x4c1   : > { %1801 = vrot.lane.b32.xlu0 %v3884_v34, %s2972_s9 }
 0x4c3   : > { %1803 = vrot.lane.b32.xlu1 %v3886_v43, %s2972_s9 }
 0x4c5   : > { %1841 = vrot.lane.b32.xlu0 %v3884_v34, %s2974_s11 }
 0x4c7   : > { %1963 = vrot.lane.b32.xlu1 %v3880_v38, %s2977_s21 }
 0x4c9   : > { %1881 = vrot.lane.b32.xlu0 %v3884_v34, %s2975_s22 }
 0x4cb   : > { %1843 = vrot.lane.b32.xlu1 %v3886_v43, %s2974_s11  ;;  %s4451_s11 = sld [smem:[#allocation16_spill]] }
 0x4cd   : > { %1929 = vrot.lane.b32.xlu0 %v3884_v34, %s2976_s25 }
 0x4cf   : > { %1999 = vrot.lane.b32.xlu1 %v3860_v40, %s2978_s24 }
 0x4d1   : > { %1961 = vrot.lane.b32.xlu0 %v3878_v17, %s2977_s21  ;;  %v4001_v39 = vld [vmem:[%s4451_s11] sm:$0xff] }
 0x4d2   : > { %v2707_v48 = vcombine.high %v4001_v39, %v4001_v39 }
 0x4d3   : > { %1883 = vrot.lane.b32.xlu1 %v3886_v43, %s2975_s22 }
 0x4d4   : > { %2166 = vmatprep.mubr.bf16.mxu0 %v2707_v48 }
 0x4d5   : > { %1969 = vrot.lane.b32.xlu0 %v3884_v34, %s2977_s21 }
 0x4d7   : > { %2007 = vrot.lane.b32.xlu1 %v3866_v42, %s2978_s24 }
 0x4d9   : > { %1997 = vrot.lane.b32.xlu0 %v3858_v60, %s2978_s24 }
 0x4db   : > { %2039 = vrot.lane.b32.xlu1 %v3860_v40, %s2979_s17 }
 0x4dd   : > { %2005 = vrot.lane.b32.xlu0 %v3864_v49, %s2978_s24 }
 0x4df   : > { %2047 = vrot.lane.b32.xlu1 %v3866_v42, %s2979_s17 }
 0x4e1   : > { %2037 = vrot.lane.b32.xlu0 %v3858_v60, %s2979_s17 }
 0x4e3   : > { %1931 = vrot.lane.b32.xlu1 %v3886_v43, %s2976_s25 }
 0x4e5   : > { %2045 = vrot.lane.b32.xlu0 %v3864_v49, %s2979_s17 }
 0x4e7   : > { %2003 = vrot.lane.b32.xlu1 %v3880_v38, %s2978_s24 }
 0x4e9   : > { %2001 = vrot.lane.b32.xlu0 %v3878_v17, %s2978_s24 }
 0x4eb   : > { %v1750_v28 = vpop.permute.xlu0 %1749  ;;  %1971 = vrot.lane.b32.xlu1 %v3886_v43, %s2977_s21  ;;  %s4452_s21 = sld [smem:[#allocation17_spill]] }
 0x4ed   : > { %2009 = vrot.lane.b32.xlu0 %v3884_v34, %s2978_s24  ;;  %v1752_v25 = vpop.permute.xlu1 %1751 }
 0x4ef   : > { %v1790_v52 = vpop.permute.xlu0 %1789  ;;  %2043 = vrot.lane.b32.xlu1 %v3880_v38, %s2979_s17 }
 0x4f1   : > { %2041 = vrot.lane.b32.xlu0 %v3878_v17, %s2979_s17  ;;  %v1792_v29 = vpop.permute.xlu1 %1791  ;;  %v2115_v41 = vld [vmem:[%s4452_s21] sm:$0xff] }
 0x4f3   : > { %v1830_v53 = vpop.permute.xlu0 %1829  ;;  %2011 = vrot.lane.b32.xlu1 %v3886_v43, %s2978_s24  ;;  %s2983_s24 = smov 123  }
 0x4f5   : > { %2049 = vrot.lane.b32.xlu0 %v3884_v34, %s2979_s17  ;;  %v1832_v30 = vpop.permute.xlu1 %1831 }
 0x4f7   : > { %v1870_v46 = vpop.permute.xlu0 %1869  ;;  %2051 = vrot.lane.b32.xlu1 %v3886_v43, %s2979_s17 }
 0x4f9   : > { %2118 = vperm.xlu0 %2818, %v2115_v41   ;;  %v1872_v13 = vpop.permute.xlu1 %1871 }
 0x4fb   : > { %v4020_v59 = vpop.permute.xlu0 %1917  ;;  %2216 = vrot.lane.b32.xlu1 %v4023_v3, %s2982_s26 }
 0x4fd   : > { %v4026_v62 = vpop.permute.xlu1 %1919  ;;  %2223 = vrot.lane.b32.xlu0 %v4023_v3, %s2983_s24 }
 0x4ff   : > { %v4029_v15 = vpop.permute.xlu0 %1957 }
 0x501   : > { %v4031_v14 = vpop.permute.xlu1 %1959 }
 0x503   : > { %v1758_v21 = vpop.permute.xlu0 %1757 }
 0x504   : > { %v1765_v8 = vsel %vm648_vm1, %v1750_v28, %v1758_v21  ;;  %v1769_v9 = vsel %vm648_vm1, %v1758_v21, %v1750_v28 }
 0x505   : > { %v1760_v37 = vpop.permute.xlu1 %1759  ;;  %v1773_v58 = vmul.f32 %v1769_v9, %v3244_v5  ;;  %v1774_v10 = vmul.f32 %v1765_v8, %v3248_v6 }
 0x506   : > { %v1766_v26 = vsel %vm648_vm1, %v1752_v25, %v1760_v37  ;;  %v1770_v54 = vsel %vm648_vm1, %v1760_v37, %v1752_v25 }
 0x507   : > { %v1775_v11 = vmul.f32 %v1770_v54, %v3244_v5  ;;  %v1776_v31 = vmul.f32 %v1766_v26, %v3248_v6  ;;  %v1798_v32 = vpop.permute.xlu0 %1797 }
 0x508   : > { %v1805_v1 = vsel %vm677_vm0, %v1790_v52, %v1798_v32  ;;  %v1809_v51 = vsel %vm677_vm0, %v1798_v32, %v1790_v52 }
 0x509   : > { %v1781_v47 = vpack.c.bf16 %v1775_v11, %v1773_v58  ;;  %v1782_v45 = vpack.c.bf16 %v1776_v31, %v1774_v10  ;;  %v1800_v33 = vpop.permute.xlu1 %1799  ;;  %v1813_v48 = vmul.f32 %v1809_v51, %v3228_v63  ;;  %v1814_v25 = vmul.f32 %v1805_v1, %v3233_v0 }
 0x50a   : > { %v1806_v56 = vsel %vm677_vm0, %v1792_v29, %v1800_v33  ;;  %v1810_v28 = vsel %vm677_vm0, %v1800_v33, %v1792_v29 }
 0x50b   : > { %1785 = vst [vmem:[#allocation4] sm:$0xff] %v1781_v47  ;;  %1786 = vst [vmem:[#allocation4 + $0x8] sm:$0xff] %v1782_v45  ;;  %v1815_v41 = vmul.f32 %v1810_v28, %v3228_v63  ;;  %v1816_v21 = vmul.f32 %v1806_v56, %v3233_v0  ;;  %v1838_v52 = vpop.permute.xlu0 %1837  ;;  %2134 = vmatprep.subr.bf16.mxu0 %v1782_v45 }
 0x50c   : > { %v1845_v8 = vsel %vm714_vm2, %v1830_v53, %v1838_v52  ;;  %v1849_v9 = vsel %vm714_vm2, %v1838_v52, %v1830_v53  ;;  %2135 = vmatpush1.bf16.msra.mxu0 %v1781_v47 }
 0x50d   : > { %v4061_v29 = vpack.c.bf16 %v1815_v41, %v1813_v48  ;;  %v4063_v37 = vpack.c.bf16 %v1816_v21, %v1814_v25  ;;  %v1840_v26 = vpop.permute.xlu1 %1839  ;;  %v1853_v10 = vmul.f32 %v1849_v9, %v3264_v16  ;;  %v1854_v53 = vmul.f32 %v1845_v8, %v3270_v20 }
 0x50e   : > { %v1846_v54 = vsel %vm714_vm2, %v1832_v30, %v1840_v26  ;;  %v1850_v58 = vsel %vm714_vm2, %v1840_v26, %v1832_v30 }
 0x50f   : > { %1825 = vst [vmem:[#allocation4 + $0x20] sm:$0xff] %v4061_v29  ;;  %1826 = vst [vmem:[#allocation4 + $0x28] sm:$0xff] %v4063_v37  ;;  %v1855_v11 = vmul.f32 %v1850_v58, %v3264_v16  ;;  %v1856_v31 = vmul.f32 %v1846_v54, %v3270_v20  ;;  %v1878_v32 = vpop.permute.xlu0 %1877 }
 0x510   : > { %v1885_v1 = vsel %vm751_vm3, %v1870_v46, %v1878_v32  ;;  %v1889_v51 = vsel %vm751_vm3, %v1878_v32, %v1870_v46 }
 0x511   : > { %v4079_v30 = vpack.c.bf16 %v1855_v11, %v1853_v10  ;;  %v4081_v47 = vpack.c.bf16 %v1856_v31, %v1854_v53  ;;  %v1880_v45 = vpop.permute.xlu1 %1879  ;;  %v1893_v28 = vmul.f32 %v1889_v51, %v3284_v35  ;;  %v1894_v48 = vmul.f32 %v1885_v1, %v3287_v36 }
 0x512   : > { %v1886_v33 = vsel %vm751_vm3, %v1872_v13, %v1880_v45  ;;  %v1890_v56 = vsel %vm751_vm3, %v1880_v45, %v1872_v13 }
 0x513   : > { %1865 = vst [vmem:[#allocation4 + $0x40] sm:$0xff] %v4079_v30  ;;  %1866 = vst [vmem:[#allocation4 + $0x48] sm:$0xff] %v4081_v47  ;;  %v1895_v46 = vmul.f32 %v1890_v56, %v3284_v35  ;;  %v1896_v25 = vmul.f32 %v1886_v33, %v3287_v36  ;;  %v1926_v41 = vpop.permute.xlu0 %1925 }
 0x514   : > { %v1933_v21 = vsel %vm790_vm4, %v4020_v59, %v1926_v41  ;;  %v1937_v13 = vsel %vm790_vm4, %v1926_v41, %v4020_v59 }
 0x515   : > { %v4099_v52 = vpack.c.bf16 %v1895_v46, %v1893_v28  ;;  %v4101_v8 = vpack.c.bf16 %v1896_v25, %v1894_v48  ;;  %v1928_v9 = vpop.permute.xlu1 %1927  ;;  %v4112_v58 = vmul.f32 %v1933_v21, %v3308_v4  ;;  %v4115_v59 = vmul.f32 %v1937_v13, %v3312_v7 }
 0x516   : > { %v1934_v26 = vsel %vm790_vm4, %v4026_v62, %v1928_v9  ;;  %v1938_v54 = vsel %vm790_vm4, %v1928_v9, %v4026_v62 }
 0x517   : > { %1905 = vst [vmem:[#allocation4 + $0x60] sm:$0xff] %v4099_v52  ;;  %1906 = vst [vmem:[#allocation4 + $0x68] sm:$0xff] %v4101_v8  ;;  %v4118_v10 = vmul.f32 %v1934_v26, %v3308_v4  ;;  %v4121_v53 = vmul.f32 %v1938_v54, %v3312_v7  ;;  %v1754_v11 = vpop.permute.xlu0 %1753 }
 0x519   : > { %v1756_v32 = vpop.permute.xlu1 %1755 }
 0x51b   : > { %v1794_v1 = vpop.permute.xlu0 %1793 }
 0x51d   : > { %v1796_v51 = vpop.permute.xlu1 %1795 }
 0x51f   : > { %v1834_v45 = vpop.permute.xlu0 %1833 }
 0x521   : > { %v1836_v33 = vpop.permute.xlu1 %1835 }
 0x523   : > { %v4127_v56 = vpop.permute.xlu0 %1873 }
 0x525   : > { %v4129_v28 = vpop.permute.xlu1 %1875 }
 0x527   : > { %v4131_v48 = vpop.permute.xlu0 %1921 }
 0x529   : > { %v4133_v46 = vpop.permute.xlu1 %1923 }
 0x52b   : > { %v1762_v25 = vpop.permute.xlu0 %1761 }
 0x52c   : > { %v1767_v41 = vsel %vm648_vm1, %v1754_v11, %v1762_v25  ;;  %v1771_v21 = vsel %vm648_vm1, %v1762_v25, %v1754_v11 }
 0x52d   : > { %v1764_v13 = vpop.permute.xlu1 %1763  ;;  %v1777_v54 = vmul.f32 %v1771_v21, %v3244_v5  ;;  %v1778_v62 = vmul.f32 %v1767_v41, %v3248_v6 }
 0x52e   : > { %v1768_v9 = vsel %vm648_vm1, %v1756_v32, %v1764_v13  ;;  %v1772_v26 = vsel %vm648_vm1, %v1764_v13, %v1756_v32  ;;  %vm2470_vm1 = vcmp.eq.s32.totalorder %v3201_v55, 3 }
 0x52f   : > { %v1779_v31 = vmul.f32 %v1772_v26, %v3244_v5  ;;  %v1780_v44 = vmul.f32 %v1768_v9, %v3248_v6  ;;  %v1966_v19 = vpop.permute.xlu0 %1965 }
 0x530   : > { %v1973_v11 = vsel %vm827_vm5, %v4029_v15, %v1966_v19  ;;  %v1977_v25 = vsel %vm827_vm5, %v1966_v19, %v4029_v15 }
 0x531   : > { %v1783_v12 = vpack.c.bf16 %v1779_v31, %v1777_v54  ;;  %v1784_v50 = vpack.c.bf16 %v1780_v44, %v1778_v62  ;;  %v1968_v32 = vpop.permute.xlu1 %1967  ;;  %v4160_v6 = vmul.f32 %v1973_v11, %v3332_v22  ;;  %v4163_v21 = vmul.f32 %v1977_v25, %v3335_v23 }
 0x532   : > { %v1974_v41 = vsel %vm827_vm5, %v4031_v14, %v1968_v32  ;;  %v1978_v5 = vsel %vm827_vm5, %v1968_v32, %v4031_v14 }
 0x533   : > { %1787 = vst [vmem:[#allocation4 + $0x10] sm:$0xff] %v1783_v12  ;;  %1788 = vst [vmem:[#allocation4 + $0x18] sm:$0xff] %v1784_v50  ;;  %v4166_v19 = vmul.f32 %v1974_v41, %v3332_v22  ;;  %v4169_v44 = vmul.f32 %v1978_v5, %v3335_v23  ;;  %v1802_v15 = vpop.permute.xlu0 %1801  ;;  %2136 = vmatprep.subr.bf16.mxu0 %v1784_v50 }
 0x534   : > { %v1807_v62 = vsel %vm677_vm0, %v1794_v1, %v1802_v15  ;;  %v1811_v14 = vsel %vm677_vm0, %v1802_v15, %v1794_v1  ;;  %2137 = vmatpush1.bf16.msra.mxu0 %v1783_v12 }
 0x535   : > { %v1989_v31 = vpack.c.bf16 %v4166_v19, %v4160_v6  ;;  %v1990_v13 = vpack.c.bf16 %v4169_v44, %v4163_v21  ;;  %v1804_v9 = vpop.permute.xlu1 %1803  ;;  %2138 = vmatprep.subr.bf16.mxu0 %v4063_v37  ;;  %v1817_v54 = vmul.f32 %v1811_v14, %v3228_v63  ;;  %v1818_v1 = vmul.f32 %v1807_v62, %v3233_v0 }
 0x536   : > { %v1808_v26 = vsel %vm677_vm0, %v1796_v51, %v1804_v9  ;;  %v1812_v50 = vsel %vm677_vm0, %v1804_v9, %v1796_v51  ;;  %vm2467_vm0 = vcmp.eq.s32.totalorder %v3201_v55, 2 }
 0x537   : > { %v1819_v12 = vmul.f32 %v1812_v50, %v3228_v63  ;;  %v1820_v11 = vmul.f32 %v1808_v26, %v3233_v0  ;;  %v1842_v25 = vpop.permute.xlu0 %1841 }
 0x538   : > { %2139 = vmatpush1.bf16.msra.mxu0 %v4061_v29  ;;  %v1847_v51 = vsel %vm714_vm2, %v1834_v45, %v1842_v25  ;;  %v1851_v15 = vsel %vm714_vm2, %v1842_v25, %v1834_v45 }
 0x539   : > { %v1823_v32 = vpack.c.bf16 %v1819_v12, %v1817_v54  ;;  %v1824_v41 = vpack.c.bf16 %v1820_v11, %v1818_v1  ;;  %v4189_v37 = vpop.permute.xlu1 %1963  ;;  %v1857_v62 = vmul.f32 %v1851_v15, %v3264_v16  ;;  %v1858_v14 = vmul.f32 %v1847_v51, %v3270_v20 }
 0x53b   : > { %1827 = vst [vmem:[#allocation4 + $0x30] sm:$0xff] %v1823_v32  ;;  %1828 = vst [vmem:[#allocation4 + $0x38] sm:$0xff] %v1824_v41  ;;  %v1882_v5 = vpop.permute.xlu0 %1881  ;;  %2140 = vmatprep.subr.bf16.mxu0 %v1824_v41 }
 0x53c   : > { %2141 = vmatpush1.bf16.msra.mxu0 %v1823_v32 }
 0x53d   : > { %v1844_v63 = vpop.permute.xlu1 %1843  ;;  %2142 = vmatprep.subr.bf16.mxu0 %v4081_v47 }
 0x53e   : > { %v1848_v0 = vsel %vm714_vm2, %v1836_v33, %v1844_v63  ;;  %v1852_v29 = vsel %vm714_vm2, %v1844_v63, %v1836_v33  ;;  %v1887_v33 = vsel %vm751_vm3, %v4127_v56, %v1882_v5  ;;  %vm2473_vm2 = vcmp.eq.s32.totalorder %v3201_v55, 4 }
 0x53f   : > { %v1859_v9 = vmul.f32 %v1852_v29, %v3264_v16  ;;  %v1860_v26 = vmul.f32 %v1848_v0, %v3270_v20  ;;  %v1930_v50 = vpop.permute.xlu0 %1929  ;;  %v1891_v16 = vsel %vm751_vm3, %v1882_v5, %v4127_v56  ;;  %v1898_v25 = vmul.f32 %v1887_v33, %v3287_v36 }
 0x540   : > { %2143 = vmatpush1.bf16.msra.mxu0 %v4079_v30  ;;  %v1897_v11 = vmul.f32 %v1891_v16, %v3284_v35  ;;  %v1939_v33 = vsel %vm790_vm4, %v1930_v50, %v4131_v48  ;;  %v4456_v16 = vpack.c.bf16 %v3880_v38, %v3878_v17 }
 0x541   : > { %v1863_v45 = vpack.c.bf16 %v1859_v9, %v1857_v62  ;;  %v1864_v54 = vpack.c.bf16 %v1860_v26, %v1858_v14  ;;  %v2000_v47 = vpop.permute.xlu1 %1999  ;;  %v4454_v62 = vpack.c.bf16 %v3860_v40, %v3858_v60 }
 0x543   : > { %1867 = vst [vmem:[#allocation4 + $0x50] sm:$0xff] %v1863_v45  ;;  %1868 = vst [vmem:[#allocation4 + $0x58] sm:$0xff] %v1864_v54  ;;  %v4205_v1 = vpop.permute.xlu0 %1961  ;;  %2144 = vmatprep.subr.bf16.mxu0 %v1864_v54 }
 0x544   : > { %2145 = vmatpush1.bf16.msra.mxu0 %v1863_v45  ;;  %v4455_v45 = vpack.c.bf16 %v3886_v43, %v3884_v34 }
 0x545   : > { %v1884_v20 = vpop.permute.xlu1 %1883  ;;  %2146 = vmatprep.subr.bf16.mxu0 %v4101_v8 }
 0x546   : > { %v1888_v30 = vsel %vm751_vm3, %v4129_v28, %v1884_v20  ;;  %v1892_v12 = vsel %vm751_vm3, %v1884_v20, %v4129_v28  ;;  %v4453_v28 = vpack.c.bf16 %v3866_v42, %v3864_v49 }
 0x547   : > { %v1899_v32 = vmul.f32 %v1892_v12, %v3284_v35  ;;  %v1900_v56 = vmul.f32 %v1888_v30, %v3287_v36  ;;  %v1970_v41 = vpop.permute.xlu0 %1969  ;;  %v4457_v30 = vpack.c.bf16 %v4121_v53, %v4115_v59  ;;  %v2928_v59 = vld [vmem:[%s4446_s8 + $0x10] ss:$0 sm:$0xff] }
 0x548   : > { %2147 = vmatpush1.bf16.msra.mxu0 %v4099_v52 }
 0x549   : > { %v1903_v8 = vpack.c.bf16 %v1899_v32, %v1897_v11  ;;  %v1904_v5 = vpack.c.bf16 %v1900_v56, %v1898_v25  ;;  %v2008_v51 = vpop.permute.xlu1 %2007  ;;  %v2929_v32 = vld [vmem:[%s4446_s8 + $0x18] ss:$0 sm:$0xff] }
 0x54a   : > { %v2014_v0 = vsel %vm864_vm6, %v2000_v47, %v2008_v51  ;;  %v2018_v35 = vsel %vm864_vm6, %v2008_v51, %v2000_v47  ;;  %v1935_v47 = vsel %vm790_vm4, %v4131_v48, %v1930_v50  ;;  %v1946_v48 = vmul.f32 %v1939_v33, %v3312_v7 }
 0x54b   : > { %v1998_v15 = vpop.permute.xlu0 %1997  ;;  %2148 = vmatprep.subr.bf16.mxu0 %v1904_v5  ;;  %v4240_v49 = vmul.f32 %v2014_v0, %v3356_v2  ;;  %v2024_v42 = vmul.f32 %v2018_v35, %v3359_v24  ;;  %v1945_v38 = vmul.f32 %v1935_v47, %v3308_v4 }
 0x54c   : > { %2149 = vmatpush1.bf16.msra.mxu0 %v1903_v8 }
 0x54d   : > { %v2040_v63 = vpop.permute.xlu1 %2039  ;;  %2150 = vmatprep.subr.bf16.mxu0 %v4453_v28 }
 0x54f   : > { %v2006_v36 = vpop.permute.xlu0 %2005 }
 0x550   : > { %v2013_v52 = vsel %vm864_vm6, %v1998_v15, %v2006_v36  ;;  %v2017_v29 = vsel %vm864_vm6, %v2006_v36, %v1998_v15  ;;  %2151 = vmatpush1.bf16.msra.mxu0 %v4454_v62  ;;  %v1975_v36 = vsel %vm827_vm5, %v4205_v1, %v1970_v41 }
 0x551   : > { %v4244_v14 = vmul.f32 %v2013_v52, %v3356_v2  ;;  %v2022_v9 = vmul.f32 %v2017_v29, %v3359_v24  ;;  %v2048_v26 = vpop.permute.xlu1 %2047  ;;  %2152 = vmatprep.subr.bf16.mxu0 %v4455_v45  ;;  %v1979_v52 = vsel %vm827_vm5, %v1970_v41, %v4205_v1  ;;  %v1985_v62 = vmul.f32 %v1975_v36, %v3332_v22 }
 0x552   : > { %v2054_v34 = vsel %vm899_vm7, %v2040_v63, %v2048_v26  ;;  %v2058_v43 = vsel %vm899_vm7, %v2048_v26, %v2040_v63  ;;  %v1986_v1 = vmul.f32 %v1979_v52, %v3335_v23 }
 0x553   : > { %v2029_v54 = vpack.c.bf16 %v4240_v49, %v4244_v14  ;;  %v2030_v60 = vpack.c.bf16 %v2024_v42, %v2022_v9  ;;  %v2038_v40 = vpop.permute.xlu0 %2037  ;;  %v2063_v53 = vmul.f32 %v2928_v59, %v2054_v34  ;;  %v2064_v56 = vmul.f32 %v2929_v32, %v2058_v43 }
 0x554   : > { %2153 = vmatpush1.bf16.msra.mxu0 %v4456_v16 }
 0x555   : > { %v1932_v20 = vpop.permute.xlu1 %1931  ;;  %2154 = vmatprep.subr.bf16.mxu0 %v4457_v30 }
 0x556   : > { %v1936_v12 = vsel %vm790_vm4, %v4133_v46, %v1932_v20  ;;  %v1940_v17 = vsel %vm790_vm4, %v1932_v20, %v4133_v46 }
 0x557   : > { %v1947_v50 = vmul.f32 %v1936_v12, %v3308_v4  ;;  %v1948_v11 = vmul.f32 %v1940_v17, %v3312_v7  ;;  %v2046_v25 = vpop.permute.xlu0 %2045  ;;  %v4458_v4 = vpack.c.bf16 %v4118_v10, %v4112_v58 }
 0x558   : > { %v2053_v46 = vsel %vm899_vm7, %v2038_v40, %v2046_v25  ;;  %v2057_v8 = vsel %vm899_vm7, %v2046_v25, %v2038_v40 }
 0x559   : > { %2155 = vmatpush1.bf16.msra.mxu0 %v4458_v4  ;;  %v1951_v7 = vpack.c.bf16 %v1947_v50, %v1945_v38  ;;  %v1952_v5 = vpack.c.bf16 %v1948_v11, %v1946_v48  ;;  %v2061_v51 = vmul.f32 %v2928_v59, %v2053_v46  ;;  %v2062_v15 = vmul.f32 %v2929_v32, %v2057_v8  ;;  %v2004_v63 = vpop.permute.xlu1 %2003  ;;  %v2838_v50 = vld [vmem:[%s4451_s11 + $0x8] ss:$0 sps:$4 sm:$0xff]  }
 0x55b   : > { %v2069_v28 = vpack.c.bf16 %v2063_v53, %v2061_v51  ;;  %v2070_v0 = vpack.c.bf16 %v2064_v56, %v2062_v15  ;;  %v2002_v35 = vpop.permute.xlu0 %2001  ;;  %2156 = vmatprep.subr.bf16.mxu0 %v1952_v5  ;;  %v2930_v53 = vld [vmem:[%s3139_s28 + $0x10] sm:$0xff] }
 0x55d   : > { %2157 = vmatpush1.bf16.msra.mxu0 %v1951_v7  ;;  %v1972_v58 = vpop.permute.xlu1 %1971  ;;  %2175 = vmatprep.subr.bf16.mxu1 %v2070_v0 }
 0x55e   : > { %2158 = vmatprep.subr.bf16.mxu0 %v1990_v13  ;;  %v1976_v10 = vsel %vm827_vm5, %v4189_v37, %v1972_v58  ;;  %v1980_v29 = vsel %vm827_vm5, %v1972_v58, %v4189_v37  ;;  %2176 = vmatpush1.bf16.msra.mxu1 %v2069_v28 }
 0x55f   : > { %v1987_v41 = vmul.f32 %v1976_v10, %v3332_v22  ;;  %v1988_v42 = vmul.f32 %v1980_v29, %v3335_v23  ;;  %v2010_v21 = vpop.permute.xlu0 %2009 }
 0x560   : > { %v2015_v37 = vsel %vm864_vm6, %v2002_v35, %v2010_v21  ;;  %v2019_v45 = vsel %vm864_vm6, %v2010_v21, %v2002_v35 }
 0x561   : > { %2159 = vmatpush1.bf16.msra.mxu0 %v1989_v31  ;;  %v1991_v44 = vpack.c.bf16 %v1987_v41, %v1985_v62  ;;  %v1992_v13 = vpack.c.bf16 %v1988_v42, %v1986_v1  ;;  %v2044_v9 = vpop.permute.xlu1 %2043  ;;  %v2025_v19 = vmul.f32 %v2015_v37, %v3356_v2  ;;  %v2026_v31 = vmul.f32 %v2019_v45, %v3359_v24 }
 0x563   : > { %v2042_v26 = vpop.permute.xlu0 %2041  ;;  %2160 = vmatprep.subr.bf16.mxu0 %v1992_v13 }
 0x565   : > { %2161 = vmatpush1.bf16.msra.mxu0 %v1991_v44  ;;  %v2012_v22 = vpop.permute.xlu1 %2011 }
 0x566   : > { %2162 = vmatprep.subr.bf16.mxu0 %v2030_v60  ;;  %v2016_v23 = vsel %vm864_vm6, %v2004_v63, %v2012_v22  ;;  %v2020_v6 = vsel %vm864_vm6, %v2012_v22, %v2004_v63 }
 0x567   : > { %v2027_v40 = vmul.f32 %v2016_v23, %v3356_v2  ;;  %v2028_v47 = vmul.f32 %v2020_v6, %v3359_v24  ;;  %v2050_v33 = vpop.permute.xlu0 %2049  ;;  %v2706_v24 = vcombine.low %v4001_v39, %v4001_v39 }
 0x568   : > { %v2055_v16 = vsel %vm899_vm7, %v2042_v26, %v2050_v33  ;;  %v2059_v60 = vsel %vm899_vm7, %v2050_v33, %v2042_v26 }
 0x569   : > { %2163 = vmatpush1.bf16.msra.mxu0 %v2029_v54  ;;  %v2031_v34 = vpack.c.bf16 %v2027_v40, %v2025_v19  ;;  %v2032_v43 = vpack.c.bf16 %v2028_v47, %v2026_v31  ;;  %v2052_v20 = vpop.permute.xlu1 %2051  ;;  %v2065_v12 = vmul.f32 %v2928_v59, %v2055_v16  ;;  %v2066_v17 = vmul.f32 %v2929_v32, %v2059_v60 }
 0x56a   : > { %v2056_v30 = vsel %vm899_vm7, %v2044_v9, %v2052_v20  ;;  %v2060_v2 = vsel %vm899_vm7, %v2052_v20, %v2044_v9 }
 0x56b   : > { %v2067_v38 = vmul.f32 %v2928_v59, %v2056_v30  ;;  %v2068_v48 = vmul.f32 %v2929_v32, %v2060_v2  ;;  %2164 = vmatprep.subr.bf16.mxu0 %v2032_v43 }
 0x56d   : > { %2165 = vmatpush1.bf16.msra.mxu0 %v2031_v34  ;;  %v2071_v49 = vpack.c.bf16 %v2067_v38, %v2065_v12  ;;  %v2072_v14 = vpack.c.bf16 %v2068_v48, %v2066_v17  ;;  %v2217_v54 = vpop.permute.xlu1 %2216 }
 0x56e   : > { %2742 = vpush %v2217_v54 }
 0x56f   : > { %2177 = vmatprep.subr.bf16.mxu1 %v2072_v14 }
 0x570   : > { %2167 = vmatmul.mubr.bf16.vlgmr.msra.gmra.mrb[8].mxu0 %v2706_v24  ;;  %2178 = vmatpush1.bf16.msra.mxu1 %v2071_v49  ;;  %v2249_v49 = vld [vmem:[%s549_s29] sm:$0x3]  ;;  %s2986_s29 = smov 122  }
 0x571   : > { %v2374_v54 = vrot.slane %v2249_v49, %v3222_v61 }
 0x573   : > { %2709 = vmatmul.mubr.msk.bf16.vlgmr.msra.gmra.mrb[8].mxu1 %vm1580_vm10, %v2838_v50  ;;  %v2378_v50 = vrot.slane %v2249_v49, %v3206_v57 }
 0x578   : > { %v2119_v39 = vpop.permute.xlu0 %2118 }
 0x57c   : > { %v2224_v11 = vpop.permute.xlu0 %2223 }
 0x57d   : > { %2744 = vpush %v2224_v11 }
 0x59f   : > { %s2743_s20 = spop %2742 }
 0x5a0   : > { %v2219_v25 = vstv %s2743_s20 }
 0x5a1   : > { %v2221_v59 = vmul.f32 %v2219_v25, %v3143_v18 }
 0x5a3   : > { %v2222_v32 = vsub.f32 %v2930_v53, %v2221_v59 }
 0x5ae   : > { %s2745_s30 = spop %2744 }
 0x5af   : > { %v2226_v46 = vstv %s2745_s30 }
 0x5b0   : > { %v2228_v5 = vmul.f32 %v2226_v46, %v2222_v32 }
 0x5b2   : > { %v2230_v52 = vcombine.high %v2228_v5, %v2228_v5 }
 0x643   : > { %v2168_v56 = vpop.f32.mrb[8].mxu0 }
 0x644   : > { %v2170_v8 = vpop.f32.mrb[9].mxu0  ;;  %v2169_v7 = vadd.f32 %v2168_v56, %v2119_v39  ;;  %v2984_v56 = vmov 1966171168  }
 0x645   : > { %v2172_v4 = vpop.f32.mrb[10].mxu0  ;;  %v2171_v15 = vadd.f32 %v2170_v8, %v2119_v39  ;;  %v2277_v46 = vunpack.c.l.s4 %v2984_v56 }
 0x646   : > { %v2173_v51 = vpop.f32.mrb[11].mxu0  ;;  %v2209_v63 = vpop.f32.mrb[8].mxu1 }
 0x647   : > { %v4344_v28 = vadd.f32 %v2209_v63, %v2169_v7  ;;  %v2211_v0 = vpop.f32.mrb[9].mxu1 }
 0x648   : > { %v4346_v35 = vadd.f32 %v2211_v0, %v2171_v15  ;;  %v2213_v36 = vpop.f32.mrb[10].mxu1 }
 0x649   : > { %v2251_v18 = vsub.f32 0.0, %v4344_v28  ;;  %v2295_v58 = vand.u32 2147483647, %v4344_v28  ;;  %v2710_v10 = vmul.f32 -1.442695, %v4344_v28  ;;  %v2214_v21 = vpop.f32.mrb[11].mxu1  ;;  %v2232_v37 = vsub.f32 %v4344_v28, %v2228_v5 }
 0x64a   : > { %v2252_v29 = vsub.f32 0.0, %v4346_v35  ;;  %v2296_v62 = vand.u32 2147483647, %v4346_v35  ;;  %v2711_v1 = vmul.f32 -1.442695, %v4346_v35  ;;  %v2233_v45 = vsub.f32 %v4346_v35, %v2230_v52 }
 0x64b   : > { %v2255_v41 = vand.u32 2147483647, %v2251_v18  ;;  %v2297_v42 = vsub.f32 0.0, %v2295_v58  ;;  %2903 = vpow2.f32 %v2710_v10  ;;  %v2234_v19 = vmul.f32 %v2232_v37, %v2232_v37 }
 0x64c   : > { %v2256_v44 = vand.u32 2147483647, %v2252_v29  ;;  %v2298_v13 = vsub.f32 0.0, %v2296_v62  ;;  %2905 = vpow2.f32 %v2711_v1  ;;  %v2235_v31 = vmul.f32 %v2233_v45, %v2233_v45 }
 0x64d   : > { %v2257_v9 = vsub.f32 0.0, %v2255_v41  ;;  %v2299_v26 = vmul.f32 1.442695, %v2297_v42  ;;  %v2237_v47 = vsel %vm2236_vm11, %v2234_v19, 0.0  ;;  %v2293_v63 = vmax.f32 %v4344_v28, 0.0  ;;  %v4459_v19 = vld [vmem:[#allocation10_spill] sm:$0xff] }
 0x64e   : > { %v2258_v22 = vsub.f32 0.0, %v2256_v44  ;;  %v2301_v23 = vmul.f32 1.442695, %v2298_v13  ;;  %v2238_v33 = vsel %vm2236_vm11, %v2235_v31, 0.0  ;;  %v2294_v10 = vmax.f32 %v4346_v35, 0.0 }
 0x64f   : > { %v2259_v6 = vmul.f32 1.442695, %v2257_v9  ;;  %2907 = vpow2.f32 %v2299_v26  ;;  %v2239_v16 = vadd.f32 %v2238_v33, %v2237_v47  ;;  %v2278_v1 = vunpack.c.0.s8 %v2277_v46 }
 0x650   : > { %v2261_v40 = vmul.f32 1.442695, %v2258_v22  ;;  %2909 = vpow2.f32 %v2301_v23  ;;  %v2253_v21 = vmax.f32 %v2251_v18, 0.0  ;;  %v2254_v26 = vmax.f32 %v2252_v29, 0.0 }
 0x651   : > { %2911 = vpow2.f32 %v2259_v6  ;;  %2240 = vadd.xlane.f32.xlu1 %v2239_v16  ;;  %v2281_v31 = vsub.s32 %v2278_v1, %v4459_v19 }
 0x652   : > { %2913 = vpow2.f32 %v2261_v40 }
 0x655   : > { %v2904_v60 = vpop.eup %2903 }
 0x656   : > { %v2906_v34 = vpop.eup %2905  ;;  %v2340_v43 = vadd.f32 1.0, %v2904_v60  ;;  %v2250_v60 = vmul.f32 10.0, %v2249_v49 }
 0x657   : > { %v2341_v20 = vadd.f32 1.0, %v2906_v34 }
 0x658   : > { %2915 = vrcp.f32 %v2340_v43  ;;  %v2292_v43 = vsub.f32 1.0, %v2249_v49  ;;  %v2420_v49 = vsel %vm2357_vm12, %v2378_v50, 0.0 }
 0x659   : > { %v2908_v30 = vpop.eup %2907  ;;  %2917 = vrcp.f32 %v2341_v20 }
 0x65a   : > { %v2910_v2 = vpop.eup %2909  ;;  %v2303_v24 = vadd.f32 1.0, %v2908_v30 }
 0x65b   : > { %v2912_v12 = vpop.eup %2911  ;;  %v2304_v17 = vadd.f32 1.0, %v2910_v2 }
 0x65c   : > { %v2914_v38 = vpop.eup %2913  ;;  %v2263_v48 = vadd.f32 1.0, %v2912_v12  ;;  %2919 = vlog2.f32 %v2303_v24 }
 0x65d   : > { %v2264_v14 = vadd.f32 1.0, %v2914_v38  ;;  %2921 = vlog2.f32 %v2304_v17 }
 0x65e   : > { %2923 = vlog2.f32 %v2263_v48 }
 0x65f   : > { %2925 = vlog2.f32 %v2264_v14  ;;  %v2419_v14 = vsel %vm2357_vm12, %v2374_v54, 0.0 }
 0x662   : > { %v2916_v39 = vpop.eup %2915 }
 0x663   : > { %v2918_v11 = vpop.eup %2917  ;;  %v2403_v25 = vrot.slane %v2916_v39, 4  ;;  %v2381_v59 = vmul.f32 %v2916_v39, %v2374_v54 }
 0x664   : > { %v2404_v53 = vrot.slane %v2918_v11, 4  ;;  %v2382_v32 = vmul.f32 %v2918_v11, %v2378_v50  ;;  %v2421_v11 = vadd.f32 %v2420_v49, %v2419_v14 }
 0x665   : > { %v2407_v8 = vsel %vm2357_vm12, %v2403_v25, 0.0  ;;  %v2385_v4 = vrot.slane %v2381_v59, 4  ;;  %v2451_v25 = vsel %vm2450_vm13, 1, %v4450_v27 }
 0x666   : > { %v2920_v7 = vpop.eup %2919  ;;  %v2408_v5 = vsel %vm2357_vm12, %v2404_v53, 0.0  ;;  %v2386_v51 = vrot.slane %v2382_v32, 4 }
 0x667   : > { %v2922_v15 = vpop.eup %2921  ;;  %v2409_v0 = vadd.f32 %v2408_v5, %v2407_v8  ;;  %v2389_v36 = vsel %vm2357_vm12, %v2385_v4, 0.0  ;;  %v2306_v52 = vmul.f32 0.6931472, %v2920_v7 }
 0x668   : > { %v2924_v58 = vpop.eup %2923  ;;  %v2390_v62 = vsel %vm2357_vm12, %v2386_v51, 0.0  ;;  %v2308_v41 = vmul.f32 0.6931472, %v2922_v15 }
 0x669   : > { %v2926_v42 = vpop.eup %2925  ;;  %2410 = vadd.xlane.f32.xlu1 %v2409_v0  ;;  %v2391_v44 = vadd.f32 %v2390_v62, %v2389_v36  ;;  %v2266_v13 = vmul.f32 0.6931472, %v2924_v58  ;;  %v2309_v9 = vadd.f32 %v2306_v52, %v2293_v63 }
 0x66a   : > { %v2268_v37 = vmul.f32 0.6931472, %v2926_v42  ;;  %v2310_v45 = vadd.f32 %v2308_v41, %v2294_v10 }
 0x66b   : > { %2392 = vadd.xlane.f32.xlu0 %v2391_v44  ;;  %v2269_v22 = vadd.f32 %v2266_v13, %v2253_v21  ;;  %v2311_v23 = vsub.f32 0.0, %v2309_v9 }
 0x66c   : > { %v2270_v6 = vadd.f32 %v2268_v37, %v2254_v26  ;;  %v2312_v40 = vsub.f32 0.0, %v2310_v45 }
 0x66d   : > { %v2271_v47 = vsub.f32 0.0, %v2269_v22 }
 0x66e   : > { %v2272_v33 = vsub.f32 0.0, %v2270_v6  ;;  %v2315_v28 = vcombine.high %v2311_v23, %v2312_v40 }
 0x670   : > { %v2275_v18 = vcombine.high %v2271_v47, %v2272_v33  ;;  %v2322_v16 = vrot.slane %v2315_v28, %v2281_v31 }
 0x672   : > { %v2282_v34 = vrot.slane %v2275_v18, %v2281_v31  ;;  %v2329_v20 = vrot.slane %v2322_v16, %v2281_v31 }
 0x674   : > { %v2289_v35 = vrot.slane %v2282_v34, %v2281_v31  ;;  %v2331_v30 = vmul.f32 %v2329_v20, %v2292_v43 }
 0x676   : > { %v2291_v29 = vmul.f32 %v2289_v35, %v2250_v60 }
 0x678   : > { %v2332_v2 = vadd.f32 %v2331_v30, %v2291_v29 }
 0x67a   : > { %v2333_v24 = vsub.f32 0.0, %v2332_v2  ;;  %2431 = vrot.lane.b32.xlu1 %v4023_v3, %s2985_s18 }
 0x67c   : > { %v2350_v12 = vrot.slane %v2333_v24, %v3222_v61  ;;  %v2354_v17 = vrot.slane %v2333_v24, %v3206_v57 }
 0x67e   : > { %v2358_v38 = vsel %vm2357_vm12, %v2350_v12, 0.0  ;;  %v2359_v48 = vsel %vm2357_vm12, %v2354_v17, 0.0 }
 0x67f   : > { %v2360_v39 = vadd.f32 %v2359_v48, %v2358_v38 }
 0x681   : > { %2361 = vadd.xlane.f32.xlu0 %v2360_v39 }
 0x685   : > { %2422 = vadd.xlane.f32.xlu0 %v2421_v11 }
 0x69b   : > { %2452 = vrot.lane.b32.xlu0 %v2451_v25, %s2986_s29 }
 0x6de   : > { %v2241_v61 = vpop.xlane.xlu1 %2240 }
 0x6df   : > { %v2242_v57 = vrot.slane %v2241_v61, 4 }
 0x6e1   : > { %v2243_v59 = vadd.f32 %v2242_v57, %v2241_v61 }
 0x6e3   : > { %v2244_v53 = vrot.slane %v2243_v59, 2 }
 0x6e5   : > { %v2245_v32 = vadd.f32 %v2244_v53, %v2243_v59 }
 0x6e7   : > { %v2246_v56 = vrot.slane %v2245_v32, 1 }
 0x6e9   : > { %v2247_v46 = vadd.f32 %v2246_v56, %v2245_v32 }
 0x6eb   : > { %2746 = vpush %v2247_v46 }
 0x6f6   : > { %v2411_v50 = vpop.xlane.xlu1 %2410 }
 0x6f7   : > { %v2412_v4 = vrot.slane %v2411_v50, 4 }
 0x6f8   : > { %v2393_v54 = vpop.xlane.xlu0 %2392 }
 0x6f9   : > { %v2394_v8 = vrot.slane %v2393_v54, 4  ;;  %v2413_v5 = vadd.f32 %v2412_v4, %v2411_v50 }
 0x6fa   : > { %v2432_v22 = vpop.permute.xlu1 %2431 }
 0x6fb   : > { %v2395_v7 = vadd.f32 %v2394_v8, %v2393_v54  ;;  %v2414_v15 = vrot.slane %v2413_v5, 2 }
 0x6fd   : > { %v2396_v51 = vrot.slane %v2395_v7, 2  ;;  %v2415_v10 = vadd.f32 %v2414_v15, %v2413_v5 }
 0x6ff   : > { %v2397_v36 = vadd.f32 %v2396_v51, %v2395_v7  ;;  %v2416_v44 = vrot.slane %v2415_v10, 1 }
 0x701   : > { %v2398_v41 = vrot.slane %v2397_v36, 1  ;;  %v2417_v37 = vadd.f32 %v2416_v44, %v2415_v10 }
 0x703   : > { %v2399_v26 = vadd.f32 %v2398_v41, %v2397_v36 }
 0x70e   : > { %v2362_v3 = vpop.xlane.xlu0 %2361 }
 0x70f   : > { %v2363_v27 = vrot.slane %v2362_v3, 4 }
 0x711   : > { %v2364_v63 = vadd.f32 %v2363_v27, %v2362_v3 }
 0x712   : > { %v2423_v0 = vpop.xlane.xlu0 %2422 }
 0x713   : > { %v2365_v52 = vrot.slane %v2364_v63, 2  ;;  %v2424_v58 = vrot.slane %v2423_v0, 4 }
 0x715   : > { %v2425_v62 = vadd.f32 %v2424_v58, %v2423_v0  ;;  %v2366_v1 = vadd.f32 %v2365_v52, %v2364_v63 }
 0x716   : > { %v2453_v6 = vpop.permute.xlu0 %2452 }
 0x717   : > { %v2426_v42 = vrot.slane %v2425_v62, 2  ;;  %v2367_v21 = vrot.slane %v2366_v1, 1 }
 0x719   : > { %v2368_v13 = vadd.f32 %v2367_v21, %v2366_v1  ;;  %v2427_v9 = vadd.f32 %v2426_v42, %v2425_v62 }
 0x71b   : > { %2748 = vpush %v2368_v13  ;;  %v2428_v45 = vrot.slane %v2427_v9, 1 }
 0x71c   : > { %2750 = vpush %v2399_v26  ;;  %s2747_s9 = spop %2746 }
 0x71d   : > { %2752 = vpush %v2417_v37  ;;  %v2429_v23 = vadd.f32 %v2428_v45, %v2427_v9  ;;  %v2462_v19 = vstv %s2747_s9 }
 0x71e   : > { %v2463_v31 = vsel %vm2461_vm14, %v2462_v19, 0.0 }
 0x71f   : > { %2754 = vpush %v2429_v23 }
 0x720   : > { %2756 = vpush %v2432_v22 }
 0x721   : > { %2758 = vpush %v2453_v6 }
 0x74c   : > { %s2749_s10 = spop %2748 }
 0x74d   : > { %v2465_v40 = vstv %s2749_s10  ;;  %s2751_s22 = spop %2750 }
 0x74e   : > { %v2466_v47 = vsel %vm2464_vm15, %v2465_v40, %v2463_v31  ;;  %v2468_v33 = vstv %s2751_s22  ;;  %s2753_s25 = spop %2752 }
 0x74f   : > { %v2469_v28 = vsel %vm2467_vm0, %v2468_v33, %v2466_v47  ;;  %v2471_v18 = vstv %s2753_s25 }
 0x750   : > { %v2472_v16 = vsel %vm2470_vm1, %v2471_v18, %v2469_v28  ;;  %s2755_s21 = spop %2754 }
 0x751   : > { %v2474_v60 = vstv %s2755_s21  ;;  %s2757_s26 = spop %2756 }
 0x752   : > { %v2475_v34 = vsel %vm2473_vm2, %v2474_v60, %v2472_v16  ;;  %s2759_s24 = spop %2758 }
 0x753   : > { %2476 = vst [vmem:[%s3115_s23] sm:$0xff] %v2475_v34 }
 0x754 PF: > { %s4460_s5 = sld [smem:[#allocation7_spill]]  ;;  %s4461_s21 = sld [smem:[#allocation5_spill]] }
 0x755   : > { %s4462_s22 = sld [smem:[#allocation6_spill]]  ;;  %s4463_s23 = sld [smem:[#allocation8_spill]] }
 0x756   : > { %s4464_s24 = sld [smem:[#allocation9_spill]] }
 0x75a   : > { %s22_s25 = sadd.s32 1, %s4460_s5  }
 0x75b   : > { %p19_p8 = scmp.ge.s32.totalorder %s22_s25, 10  }
 0x75d   :  { %21 = sbr.rel (!%p19_p8) target bundleno = 8 (0x8), region = 118 }

</bundles_post_ra>
